<compile_context>
chip_gen: v6e
topology: v6e:2x2x1
jax: 0.10.0
libtpu: 0.0.40
codegen_flags: <defaults>
</compile_context>

<pallas_src>
import functools

import jax
import jax.numpy as jnp
from jax import lax
from jax.experimental import pallas as pl
from jax.experimental.pallas import tpu as pltpu


VOCAB = 100
HIDDEN = 32
N_LAYERS = 2
N_HEADS = 2
D_HEAD = HIDDEN // N_HEADS
FFN_DIM = 64
SEQ = 8
BATCH = 2
MAX_POS = SEQ + 2   # RoBERTa offsets positions by padding_idx + 1
REG_OUT = 3
REG_PAD = 128       # lane-dense padded regressor width


# --------------------------------------------------------------------------
# Single fused Pallas kernel: embeddings -> N encoder layers -> CLS regressor
# --------------------------------------------------------------------------

def _layernorm(x, g, b):
    # LayerNorm over last dim (eps = 1e-5, like HF RoBERTa), f32 math.
    mean = jnp.mean(x, axis=-1, keepdims=True)
    var = jnp.mean((x - mean) ** 2, axis=-1, keepdims=True)
    return (x - mean) * lax.rsqrt(var + 1e-5) * g + b


def _matmul_bias(x, w_ref, b_ref):
    # x: [M, K] f32, w_ref: [K, N] (pre-transposed nn.Linear weight), b: [1, N]
    y = lax.dot_general(x, w_ref[...], (((1,), (0,)), ((), ())),
                        preferred_element_type=jnp.float32)
    return y + b_ref[...]


def _fused_forward_kernel(*refs, B, S, n_heads, d_head, n_layers, max_pos):
    H = n_heads * d_head
    (ids_ref, mask_s_ref, mask_v_ref, word_ref, pos_ref, type_ref,
     eg_ref, eb_ref) = refs[:8]
    layer_refs = refs[8:8 + 12 * n_layers]
    reg_w_ref, reg_b_ref, out_ref = refs[8 + 12 * n_layers:]

    # ---- Embeddings: token/position row gathers from VMEM-resident tables,
    # scalar ids/mask from SMEM; RoBERTa position ids (padding_idx=1, only
    # non-pad tokens advance) computed with an in-kernel scalar running sum.
    type_row = type_ref[...]                                     # [1, H]
    rows = []
    for b in range(B):
        run = 0
        for s in range(S):
            tok = ids_ref[b, s]
            m = mask_s_ref[b, s]
            run = run + m
            pos = jnp.minimum(run * m + 1, max_pos - 1)
            rows.append(word_ref[pl.ds(tok, 1), :]
                        + pos_ref[pl.ds(pos, 1), :]
                        + type_row)
    x = jnp.concatenate(rows, axis=0).astype(jnp.float32)        # [M, H]
    x = _layernorm(x, eg_ref[...], eb_ref[...])

    # Additive attention mask built in-kernel: 0 keep / -1e9 pad.
    # TODO(synk): a fully-padded example would give a ~0 softmax row sum
    # (reciprocal -> inf); unguarded, as in the reference semantics.
    mask_add = (mask_v_ref[...].astype(jnp.float32) - 1.0) * 1e9   # [B, S]

    for li in range(n_layers):
        (wqkv_s, bqkv_s, wo, bo, ln1_g, ln1_b,
         w1, b1, w2, b2, ln2_g, ln2_b) = layer_refs[12 * li:12 * (li + 1)]

        # Per-(proj, head) projections over all M rows. Each weight slab is a
        # static first-axis ref view (zero runtime cost), so every matmul
        # operand starts at lane 0 — no 16-lane slices at lane offsets
        # 16/48/80. 1/sqrt(d_head) is pre-folded into Q weights/bias.
        proj = []
        for i in range(3 * n_heads):
            proj.append(
                lax.dot_general(x, wqkv_s[i], (((1,), (0,)), ((), ())),
                                preferred_element_type=jnp.float32)
                + bqkv_s[i])                                     # [M, d_head]

        ctx_rows = []
        for b in range(B):
            r0, r1 = b * S, (b + 1) * S                          # sublane-aligned
            m_add = mask_add[b:b + 1, :]                         # [1, S]
            ctx_heads = []
            for h in range(n_heads):
                q = proj[h][r0:r1, :]                            # [S, d_head]
                k = proj[n_heads + h][r0:r1, :]
                v = proj[2 * n_heads + h][r0:r1, :]
                s = lax.dot_general(q, k, (((1,), (1,)), ((), ())),
                                    preferred_element_type=jnp.float32)
                s = s + m_add
                s = s - jnp.max(s, axis=-1, keepdims=True)
                p = jnp.exp(s)
                p = p * pl.reciprocal(jnp.sum(p, axis=-1, keepdims=True),
                                      approx=True)
                ctx_heads.append(jnp.dot(p, v,
                                         preferred_element_type=jnp.float32))
            ctx_rows.append(jnp.concatenate(ctx_heads, axis=-1))   # [S, H]

        # Heads + batches re-fused in vregs (no VMEM scratch round-trip);
        # a single output-projection matmul per layer.
        ctx_all = jnp.concatenate(ctx_rows, axis=0)              # [M, H]
        attn = _matmul_bias(ctx_all, wo, bo)
        x = _layernorm(attn + x, ln1_g[...], ln1_b[...])

        h1 = _matmul_bias(x, w1, b1)                             # [M, F]
        # TODO(synk): HF RoBERTa uses exact erf-GELU; tanh approximation kept
        # for robust Mosaic lowering.
        h1 = jax.nn.gelu(h1, approximate=True)
        x = _layernorm(_matmul_bias(h1, w2, b2) + x, ln2_g[...], ln2_b[...])

    # Regressor on the B CLS rows only (rows b*S, static & sublane-aligned);
    # dropout(p=0.2) is identity at inference. Lane-dense 128-wide output.
    x_cls = jnp.concatenate([x[b * S:b * S + 1, :] for b in range(B)], axis=0)
    out_ref[...] = _matmul_bias(x_cls, reg_w_ref, reg_b_ref).astype(out_ref.dtype)


# --------------------------------------------------------------------------
# Host-side param init + one-time weight prep + wrapper
# --------------------------------------------------------------------------

def init_params(key):
    def nrm(k, shape, scale=0.02):
        return scale * jax.random.normal(k, shape, dtype=jnp.float32)

    keys = jax.random.split(key, 4 + N_LAYERS)
    params = {
        "word_emb": nrm(keys[0], (VOCAB, HIDDEN)),
        "pos_emb": nrm(keys[1], (MAX_POS, HIDDEN)),
        "type_emb": nrm(keys[2], (1, HIDDEN)),
        "emb_ln_g": jnp.ones((HIDDEN,), jnp.float32),
        "emb_ln_b": jnp.zeros((HIDDEN,), jnp.float32),
        "reg_w": nrm(keys[3], (REG_OUT, HIDDEN)),       # nn.Linear layout [N, K]
        "reg_b": jnp.zeros((REG_OUT,), jnp.float32),
        "layers": [],
    }
    for li in range(N_LAYERS):
        lk = jax.random.split(keys[4 + li], 6)
        params["layers"].append({
            "wq": nrm(lk[0], (HIDDEN, HIDDEN)), "bq": jnp.zeros((HIDDEN,), jnp.float32),
            "wk": nrm(lk[1], (HIDDEN, HIDDEN)), "bk": jnp.zeros((HIDDEN,), jnp.float32),
            "wv": nrm(lk[2], (HIDDEN, HIDDEN)), "bv": jnp.zeros((HIDDEN,), jnp.float32),
            "wo": nrm(lk[3], (HIDDEN, HIDDEN)), "bo": jnp.zeros((HIDDEN,), jnp.float32),
            "ln1_g": jnp.ones((HIDDEN,), jnp.float32), "ln1_b": jnp.zeros((HIDDEN,), jnp.float32),
            "w1": nrm(lk[4], (FFN_DIM, HIDDEN)), "b1": jnp.zeros((FFN_DIM,), jnp.float32),
            "w2": nrm(lk[5], (HIDDEN, FFN_DIM)), "b2": jnp.zeros((HIDDEN,), jnp.float32),
            "ln2_g": jnp.ones((HIDDEN,), jnp.float32), "ln2_b": jnp.zeros((HIDDEN,), jnp.float32),
        })
    return params


def prepare_kernel_params(params):
    """One-time host-side prep: pre-transpose nn.Linear weights to [K, N],
    split QKV into per-(proj, head) slabs stacked on axis 0, fold the
    1/sqrt(d_head) scale into Q, zero-pad the regressor to 128 lanes."""
    H, F, Dh, nH = HIDDEN, FFN_DIM, D_HEAD, N_HEADS
    scale = 1.0 / (Dh ** 0.5)
    flat = [params["word_emb"], params["pos_emb"], params["type_emb"],
            params["emb_ln_g"].reshape(1, H), params["emb_ln_b"].reshape(1, H)]
    for p in params["layers"]:
        wq_t, wk_t, wv_t = p["wq"].T * scale, p["wk"].T, p["wv"].T      # [H, H]
        bq, bk, bv = p["bq"] * scale, p["bk"], p["bv"]
        w_stack, b_stack = [], []
        for w, b_ in ((wq_t, bq), (wk_t, bk), (wv_t, bv)):
            for h in range(nH):
                w_stack.append(w[:, h * Dh:(h + 1) * Dh])
                b_stack.append(b_[h * Dh:(h + 1) * Dh].reshape(1, Dh))
        flat += [
            jnp.stack(w_stack, axis=0),                 # [3*nH, H, Dh]
            jnp.stack(b_stack, axis=0),                 # [3*nH, 1, Dh]
            p["wo"].T, p["bo"].reshape(1, H),
            p["ln1_g"].reshape(1, H), p["ln1_b"].reshape(1, H),
            p["w1"].T, p["b1"].reshape(1, F),
            p["w2"].T, p["b2"].reshape(1, H),
            p["ln2_g"].reshape(1, H), p["ln2_b"].reshape(1, H),
        ]
    reg_w = jnp.zeros((H, REG_PAD), jnp.float32).at[:, :REG_OUT].set(params["reg_w"].T)
    reg_b = jnp.zeros((1, REG_PAD), jnp.float32).at[:, :REG_OUT].set(
        params["reg_b"].reshape(1, REG_OUT))
    flat += [reg_w, reg_b]
    return tuple(flat)


def roberta_regression_forward(kparams, input_ids, attention_mask):
    B, S = input_ids.shape
    ids = input_ids.astype(jnp.int32)
    mask = attention_mask.astype(jnp.int32)

    kernel = functools.partial(
        _fused_forward_kernel, B=B, S=S, n_heads=N_HEADS, d_head=D_HEAD,
        n_layers=N_LAYERS, max_pos=MAX_POS)

    smem = pl.BlockSpec(memory_space=pltpu.MemorySpace.SMEM)
    vmem = pl.BlockSpec(memory_space=pltpu.MemorySpace.VMEM)

    # Single gridless pallas_call: ids/mask in SMEM for scalar gathers + pos
    # ids, mask again in VMEM for the additive attention mask, and every
    # weight/table resident in VMEM (< 200 KiB total at this toy size).
    out_full = pl.pallas_call(
        kernel,
        out_shape=jax.ShapeDtypeStruct((B, REG_PAD), jnp.float32),
        in_specs=[smem, smem] + [vmem] * (1 + len(kparams)),
        out_specs=vmem,
    )(ids, mask, mask, *kparams)

    # Only remaining wrapper op: pick the 3 real regressor lanes.
    return out_full[:, :REG_OUT]


# --------------------------------------------------------------------------

if __name__ == "__main__":
    key = jax.random.PRNGKey(0)
    pkey, ikey = jax.random.split(key)
    params = init_params(pkey)
    kparams = prepare_kernel_params(params)     # host-side, once

    input_ids = jax.random.randint(ikey, (BATCH, SEQ), 0, VOCAB, dtype=jnp.int32)
    attention_mask = jnp.ones((BATCH, SEQ), dtype=jnp.int32)
    attention_mask = attention_mask.at[1, -2:].set(0)   # pad tail of 2nd example

    fwd = jax.jit(roberta_regression_forward)
    out = jax.block_until_ready(fwd(kparams, input_ids, attention_mask))

    assert out.shape == (BATCH, REG_OUT) and out.dtype == jnp.float32
    print("KERNEL_OK")
</pallas_src>

<mosaic_0001>
module attributes {stable_mosaic.version = 11 : i64} {
  func.func @_fused_forward_kernel(%arg0: memref<2x8xi32, #tpu.memory_space<smem>>, %arg1: memref<2x8xi32, #tpu.memory_space<smem>>, %arg2: memref<2x8xi32, #tpu.memory_space<vmem>>, %arg3: memref<100x32xf32, #tpu.memory_space<vmem>>, %arg4: memref<10x32xf32, #tpu.memory_space<vmem>>, %arg5: memref<1x32xf32, #tpu.memory_space<vmem>>, %arg6: memref<1x32xf32, #tpu.memory_space<vmem>>, %arg7: memref<1x32xf32, #tpu.memory_space<vmem>>, %arg8: memref<6x32x16xf32, #tpu.memory_space<vmem>>, %arg9: memref<6x1x16xf32, #tpu.memory_space<vmem>>, %arg10: memref<32x32xf32, #tpu.memory_space<vmem>>, %arg11: memref<1x32xf32, #tpu.memory_space<vmem>>, %arg12: memref<1x32xf32, #tpu.memory_space<vmem>>, %arg13: memref<1x32xf32, #tpu.memory_space<vmem>>, %arg14: memref<32x64xf32, #tpu.memory_space<vmem>>, %arg15: memref<1x64xf32, #tpu.memory_space<vmem>>, %arg16: memref<64x32xf32, #tpu.memory_space<vmem>>, %arg17: memref<1x32xf32, #tpu.memory_space<vmem>>, %arg18: memref<1x32xf32, #tpu.memory_space<vmem>>, %arg19: memref<1x32xf32, #tpu.memory_space<vmem>>, %arg20: memref<6x32x16xf32, #tpu.memory_space<vmem>>, %arg21: memref<6x1x16xf32, #tpu.memory_space<vmem>>, %arg22: memref<32x32xf32, #tpu.memory_space<vmem>>, %arg23: memref<1x32xf32, #tpu.memory_space<vmem>>, %arg24: memref<1x32xf32, #tpu.memory_space<vmem>>, %arg25: memref<1x32xf32, #tpu.memory_space<vmem>>, %arg26: memref<32x64xf32, #tpu.memory_space<vmem>>, %arg27: memref<1x64xf32, #tpu.memory_space<vmem>>, %arg28: memref<64x32xf32, #tpu.memory_space<vmem>>, %arg29: memref<1x32xf32, #tpu.memory_space<vmem>>, %arg30: memref<1x32xf32, #tpu.memory_space<vmem>>, %arg31: memref<1x32xf32, #tpu.memory_space<vmem>>, %arg32: memref<32x128xf32, #tpu.memory_space<vmem>>, %arg33: memref<1x128xf32, #tpu.memory_space<vmem>>, %arg34: memref<2x128xf32, #tpu.memory_space<vmem>>) attributes {dimension_semantics = [], scalar_prefetch = 0 : i64, scratch_operands = 0 : i64, tpu.core_type = #tpu.core_type<tc>} {
    %c0 = arith.constant 0 : index
    %c0_0 = arith.constant 0 : index
    %0 = vector.load %arg5[%c0, %c0_0] : memref<1x32xf32, #tpu.memory_space<vmem>>, vector<1x32xf32>
    %c0_1 = arith.constant 0 : index
    %c0_2 = arith.constant 0 : index
    %1 = memref.load %arg0[%c0_1, %c0_2] : memref<2x8xi32, #tpu.memory_space<smem>>
    %c0_3 = arith.constant 0 : index
    %c0_4 = arith.constant 0 : index
    %2 = memref.load %arg1[%c0_3, %c0_4] : memref<2x8xi32, #tpu.memory_space<smem>>
    %c0_i32 = arith.constant 0 : i32
    %3 = arith.addi %c0_i32, %2 : i32
    %4 = arith.muli %3, %2 : i32
    %c1_i32 = arith.constant 1 : i32
    %5 = arith.addi %4, %c1_i32 : i32
    %c9_i32 = arith.constant 9 : i32
    %6 = arith.minsi %5, %c9_i32 : i32
    %7 = arith.index_cast %1 : i32 to index
    %c0_5 = arith.constant 0 : index
    %8 = vector.load %arg3[%7, %c0_5] : memref<100x32xf32, #tpu.memory_space<vmem>>, vector<1x32xf32>
    %9 = arith.index_cast %6 : i32 to index
    %c0_6 = arith.constant 0 : index
    %10 = vector.load %arg4[%9, %c0_6] : memref<10x32xf32, #tpu.memory_space<vmem>>, vector<1x32xf32>
    %11 = arith.addf %8, %10 : vector<1x32xf32>
    %12 = arith.addf %11, %0 : vector<1x32xf32>
    %c0_7 = arith.constant 0 : index
    %c1 = arith.constant 1 : index
    %13 = memref.load %arg0[%c0_7, %c1] : memref<2x8xi32, #tpu.memory_space<smem>>
    %c0_8 = arith.constant 0 : index
    %c1_9 = arith.constant 1 : index
    %14 = memref.load %arg1[%c0_8, %c1_9] : memref<2x8xi32, #tpu.memory_space<smem>>
    %15 = arith.addi %3, %14 : i32
    %16 = arith.muli %15, %14 : i32
    %c1_i32_10 = arith.constant 1 : i32
    %17 = arith.addi %16, %c1_i32_10 : i32
    %c9_i32_11 = arith.constant 9 : i32
    %18 = arith.minsi %17, %c9_i32_11 : i32
    %19 = arith.index_cast %13 : i32 to index
    %c0_12 = arith.constant 0 : index
    %20 = vector.load %arg3[%19, %c0_12] : memref<100x32xf32, #tpu.memory_space<vmem>>, vector<1x32xf32>
    %21 = arith.index_cast %18 : i32 to index
    %c0_13 = arith.constant 0 : index
    %22 = vector.load %arg4[%21, %c0_13] : memref<10x32xf32, #tpu.memory_space<vmem>>, vector<1x32xf32>
    %23 = arith.addf %20, %22 : vector<1x32xf32>
    %24 = arith.addf %23, %0 : vector<1x32xf32>
    %c0_14 = arith.constant 0 : index
    %c2 = arith.constant 2 : index
    %25 = memref.load %arg0[%c0_14, %c2] : memref<2x8xi32, #tpu.memory_space<smem>>
    %c0_15 = arith.constant 0 : index
    %c2_16 = arith.constant 2 : index
    %26 = memref.load %arg1[%c0_15, %c2_16] : memref<2x8xi32, #tpu.memory_space<smem>>
    %27 = arith.addi %15, %26 : i32
    %28 = arith.muli %27, %26 : i32
    %c1_i32_17 = arith.constant 1 : i32
    %29 = arith.addi %28, %c1_i32_17 : i32
    %c9_i32_18 = arith.constant 9 : i32
    %30 = arith.minsi %29, %c9_i32_18 : i32
    %31 = arith.index_cast %25 : i32 to index
    %c0_19 = arith.constant 0 : index
    %32 = vector.load %arg3[%31, %c0_19] : memref<100x32xf32, #tpu.memory_space<vmem>>, vector<1x32xf32>
    %33 = arith.index_cast %30 : i32 to index
    %c0_20 = arith.constant 0 : index
    %34 = vector.load %arg4[%33, %c0_20] : memref<10x32xf32, #tpu.memory_space<vmem>>, vector<1x32xf32>
    %35 = arith.addf %32, %34 : vector<1x32xf32>
    %36 = arith.addf %35, %0 : vector<1x32xf32>
    %c0_21 = arith.constant 0 : index
    %c3 = arith.constant 3 : index
    %37 = memref.load %arg0[%c0_21, %c3] : memref<2x8xi32, #tpu.memory_space<smem>>
    %c0_22 = arith.constant 0 : index
    %c3_23 = arith.constant 3 : index
    %38 = memref.load %arg1[%c0_22, %c3_23] : memref<2x8xi32, #tpu.memory_space<smem>>
    %39 = arith.addi %27, %38 : i32
    %40 = arith.muli %39, %38 : i32
    %c1_i32_24 = arith.constant 1 : i32
    %41 = arith.addi %40, %c1_i32_24 : i32
    %c9_i32_25 = arith.constant 9 : i32
    %42 = arith.minsi %41, %c9_i32_25 : i32
    %43 = arith.index_cast %37 : i32 to index
    %c0_26 = arith.constant 0 : index
    %44 = vector.load %arg3[%43, %c0_26] : memref<100x32xf32, #tpu.memory_space<vmem>>, vector<1x32xf32>
    %45 = arith.index_cast %42 : i32 to index
    %c0_27 = arith.constant 0 : index
    %46 = vector.load %arg4[%45, %c0_27] : memref<10x32xf32, #tpu.memory_space<vmem>>, vector<1x32xf32>
    %47 = arith.addf %44, %46 : vector<1x32xf32>
    %48 = arith.addf %47, %0 : vector<1x32xf32>
    %c0_28 = arith.constant 0 : index
    %c4 = arith.constant 4 : index
    %49 = memref.load %arg0[%c0_28, %c4] : memref<2x8xi32, #tpu.memory_space<smem>>
    %c0_29 = arith.constant 0 : index
    %c4_30 = arith.constant 4 : index
    %50 = memref.load %arg1[%c0_29, %c4_30] : memref<2x8xi32, #tpu.memory_space<smem>>
    %51 = arith.addi %39, %50 : i32
    %52 = arith.muli %51, %50 : i32
    %c1_i32_31 = arith.constant 1 : i32
    %53 = arith.addi %52, %c1_i32_31 : i32
    %c9_i32_32 = arith.constant 9 : i32
    %54 = arith.minsi %53, %c9_i32_32 : i32
    %55 = arith.index_cast %49 : i32 to index
    %c0_33 = arith.constant 0 : index
    %56 = vector.load %arg3[%55, %c0_33] : memref<100x32xf32, #tpu.memory_space<vmem>>, vector<1x32xf32>
    %57 = arith.index_cast %54 : i32 to index
    %c0_34 = arith.constant 0 : index
    %58 = vector.load %arg4[%57, %c0_34] : memref<10x32xf32, #tpu.memory_space<vmem>>, vector<1x32xf32>
    %59 = arith.addf %56, %58 : vector<1x32xf32>
    %60 = arith.addf %59, %0 : vector<1x32xf32>
    %c0_35 = arith.constant 0 : index
    %c5 = arith.constant 5 : index
    %61 = memref.load %arg0[%c0_35, %c5] : memref<2x8xi32, #tpu.memory_space<smem>>
    %c0_36 = arith.constant 0 : index
    %c5_37 = arith.constant 5 : index
    %62 = memref.load %arg1[%c0_36, %c5_37] : memref<2x8xi32, #tpu.memory_space<smem>>
    %63 = arith.addi %51, %62 : i32
    %64 = arith.muli %63, %62 : i32
    %c1_i32_38 = arith.constant 1 : i32
    %65 = arith.addi %64, %c1_i32_38 : i32
    %c9_i32_39 = arith.constant 9 : i32
    %66 = arith.minsi %65, %c9_i32_39 : i32
    %67 = arith.index_cast %61 : i32 to index
    %c0_40 = arith.constant 0 : index
    %68 = vector.load %arg3[%67, %c0_40] : memref<100x32xf32, #tpu.memory_space<vmem>>, vector<1x32xf32>
    %69 = arith.index_cast %66 : i32 to index
    %c0_41 = arith.constant 0 : index
    %70 = vector.load %arg4[%69, %c0_41] : memref<10x32xf32, #tpu.memory_space<vmem>>, vector<1x32xf32>
    %71 = arith.addf %68, %70 : vector<1x32xf32>
    %72 = arith.addf %71, %0 : vector<1x32xf32>
    %c0_42 = arith.constant 0 : index
    %c6 = arith.constant 6 : index
    %73 = memref.load %arg0[%c0_42, %c6] : memref<2x8xi32, #tpu.memory_space<smem>>
    %c0_43 = arith.constant 0 : index
    %c6_44 = arith.constant 6 : index
    %74 = memref.load %arg1[%c0_43, %c6_44] : memref<2x8xi32, #tpu.memory_space<smem>>
    %75 = arith.addi %63, %74 : i32
    %76 = arith.muli %75, %74 : i32
    %c1_i32_45 = arith.constant 1 : i32
    %77 = arith.addi %76, %c1_i32_45 : i32
    %c9_i32_46 = arith.constant 9 : i32
    %78 = arith.minsi %77, %c9_i32_46 : i32
    %79 = arith.index_cast %73 : i32 to index
    %c0_47 = arith.constant 0 : index
    %80 = vector.load %arg3[%79, %c0_47] : memref<100x32xf32, #tpu.memory_space<vmem>>, vector<1x32xf32>
    %81 = arith.index_cast %78 : i32 to index
    %c0_48 = arith.constant 0 : index
    %82 = vector.load %arg4[%81, %c0_48] : memref<10x32xf32, #tpu.memory_space<vmem>>, vector<1x32xf32>
    %83 = arith.addf %80, %82 : vector<1x32xf32>
    %84 = arith.addf %83, %0 : vector<1x32xf32>
    %c0_49 = arith.constant 0 : index
    %c7 = arith.constant 7 : index
    %85 = memref.load %arg0[%c0_49, %c7] : memref<2x8xi32, #tpu.memory_space<smem>>
    %c0_50 = arith.constant 0 : index
    %c7_51 = arith.constant 7 : index
    %86 = memref.load %arg1[%c0_50, %c7_51] : memref<2x8xi32, #tpu.memory_space<smem>>
    %87 = arith.addi %75, %86 : i32
    %88 = arith.muli %87, %86 : i32
    %c1_i32_52 = arith.constant 1 : i32
    %89 = arith.addi %88, %c1_i32_52 : i32
    %c9_i32_53 = arith.constant 9 : i32
    %90 = arith.minsi %89, %c9_i32_53 : i32
    %91 = arith.index_cast %85 : i32 to index
    %c0_54 = arith.constant 0 : index
    %92 = vector.load %arg3[%91, %c0_54] : memref<100x32xf32, #tpu.memory_space<vmem>>, vector<1x32xf32>
    %93 = arith.index_cast %90 : i32 to index
    %c0_55 = arith.constant 0 : index
    %94 = vector.load %arg4[%93, %c0_55] : memref<10x32xf32, #tpu.memory_space<vmem>>, vector<1x32xf32>
    %95 = arith.addf %92, %94 : vector<1x32xf32>
    %96 = arith.addf %95, %0 : vector<1x32xf32>
    %c1_56 = arith.constant 1 : index
    %c0_57 = arith.constant 0 : index
    %97 = memref.load %arg0[%c1_56, %c0_57] : memref<2x8xi32, #tpu.memory_space<smem>>
    %c1_58 = arith.constant 1 : index
    %c0_59 = arith.constant 0 : index
    %98 = memref.load %arg1[%c1_58, %c0_59] : memref<2x8xi32, #tpu.memory_space<smem>>
    %c0_i32_60 = arith.constant 0 : i32
    %99 = arith.addi %c0_i32_60, %98 : i32
    %100 = arith.muli %99, %98 : i32
    %c1_i32_61 = arith.constant 1 : i32
    %101 = arith.addi %100, %c1_i32_61 : i32
    %c9_i32_62 = arith.constant 9 : i32
    %102 = arith.minsi %101, %c9_i32_62 : i32
    %103 = arith.index_cast %97 : i32 to index
    %c0_63 = arith.constant 0 : index
    %104 = vector.load %arg3[%103, %c0_63] : memref<100x32xf32, #tpu.memory_space<vmem>>, vector<1x32xf32>
    %105 = arith.index_cast %102 : i32 to index
    %c0_64 = arith.constant 0 : index
    %106 = vector.load %arg4[%105, %c0_64] : memref<10x32xf32, #tpu.memory_space<vmem>>, vector<1x32xf32>
    %107 = arith.addf %104, %106 : vector<1x32xf32>
    %108 = arith.addf %107, %0 : vector<1x32xf32>
    %c1_65 = arith.constant 1 : index
    %c1_66 = arith.constant 1 : index
    %109 = memref.load %arg0[%c1_65, %c1_66] : memref<2x8xi32, #tpu.memory_space<smem>>
    %c1_67 = arith.constant 1 : index
    %c1_68 = arith.constant 1 : index
    %110 = memref.load %arg1[%c1_67, %c1_68] : memref<2x8xi32, #tpu.memory_space<smem>>
    %111 = arith.addi %99, %110 : i32
    %112 = arith.muli %111, %110 : i32
    %c1_i32_69 = arith.constant 1 : i32
    %113 = arith.addi %112, %c1_i32_69 : i32
    %c9_i32_70 = arith.constant 9 : i32
    %114 = arith.minsi %113, %c9_i32_70 : i32
    %115 = arith.index_cast %109 : i32 to index
    %c0_71 = arith.constant 0 : index
    %116 = vector.load %arg3[%115, %c0_71] : memref<100x32xf32, #tpu.memory_space<vmem>>, vector<1x32xf32>
    %117 = arith.index_cast %114 : i32 to index
    %c0_72 = arith.constant 0 : index
    %118 = vector.load %arg4[%117, %c0_72] : memref<10x32xf32, #tpu.memory_space<vmem>>, vector<1x32xf32>
    %119 = arith.addf %116, %118 : vector<1x32xf32>
    %120 = arith.addf %119, %0 : vector<1x32xf32>
    %c1_73 = arith.constant 1 : index
    %c2_74 = arith.constant 2 : index
    %121 = memref.load %arg0[%c1_73, %c2_74] : memref<2x8xi32, #tpu.memory_space<smem>>
    %c1_75 = arith.constant 1 : index
    %c2_76 = arith.constant 2 : index
    %122 = memref.load %arg1[%c1_75, %c2_76] : memref<2x8xi32, #tpu.memory_space<smem>>
    %123 = arith.addi %111, %122 : i32
    %124 = arith.muli %123, %122 : i32
    %c1_i32_77 = arith.constant 1 : i32
    %125 = arith.addi %124, %c1_i32_77 : i32
    %c9_i32_78 = arith.constant 9 : i32
    %126 = arith.minsi %125, %c9_i32_78 : i32
    %127 = arith.index_cast %121 : i32 to index
    %c0_79 = arith.constant 0 : index
    %128 = vector.load %arg3[%127, %c0_79] : memref<100x32xf32, #tpu.memory_space<vmem>>, vector<1x32xf32>
    %129 = arith.index_cast %126 : i32 to index
    %c0_80 = arith.constant 0 : index
    %130 = vector.load %arg4[%129, %c0_80] : memref<10x32xf32, #tpu.memory_space<vmem>>, vector<1x32xf32>
    %131 = arith.addf %128, %130 : vector<1x32xf32>
    %132 = arith.addf %131, %0 : vector<1x32xf32>
    %c1_81 = arith.constant 1 : index
    %c3_82 = arith.constant 3 : index
    %133 = memref.load %arg0[%c1_81, %c3_82] : memref<2x8xi32, #tpu.memory_space<smem>>
    %c1_83 = arith.constant 1 : index
    %c3_84 = arith.constant 3 : index
    %134 = memref.load %arg1[%c1_83, %c3_84] : memref<2x8xi32, #tpu.memory_space<smem>>
    %135 = arith.addi %123, %134 : i32
    %136 = arith.muli %135, %134 : i32
    %c1_i32_85 = arith.constant 1 : i32
    %137 = arith.addi %136, %c1_i32_85 : i32
    %c9_i32_86 = arith.constant 9 : i32
    %138 = arith.minsi %137, %c9_i32_86 : i32
    %139 = arith.index_cast %133 : i32 to index
    %c0_87 = arith.constant 0 : index
    %140 = vector.load %arg3[%139, %c0_87] : memref<100x32xf32, #tpu.memory_space<vmem>>, vector<1x32xf32>
    %141 = arith.index_cast %138 : i32 to index
    %c0_88 = arith.constant 0 : index
    %142 = vector.load %arg4[%141, %c0_88] : memref<10x32xf32, #tpu.memory_space<vmem>>, vector<1x32xf32>
    %143 = arith.addf %140, %142 : vector<1x32xf32>
    %144 = arith.addf %143, %0 : vector<1x32xf32>
    %c1_89 = arith.constant 1 : index
    %c4_90 = arith.constant 4 : index
    %145 = memref.load %arg0[%c1_89, %c4_90] : memref<2x8xi32, #tpu.memory_space<smem>>
    %c1_91 = arith.constant 1 : index
    %c4_92 = arith.constant 4 : index
    %146 = memref.load %arg1[%c1_91, %c4_92] : memref<2x8xi32, #tpu.memory_space<smem>>
    %147 = arith.addi %135, %146 : i32
    %148 = arith.muli %147, %146 : i32
    %c1_i32_93 = arith.constant 1 : i32
    %149 = arith.addi %148, %c1_i32_93 : i32
    %c9_i32_94 = arith.constant 9 : i32
    %150 = arith.minsi %149, %c9_i32_94 : i32
    %151 = arith.index_cast %145 : i32 to index
    %c0_95 = arith.constant 0 : index
    %152 = vector.load %arg3[%151, %c0_95] : memref<100x32xf32, #tpu.memory_space<vmem>>, vector<1x32xf32>
    %153 = arith.index_cast %150 : i32 to index
    %c0_96 = arith.constant 0 : index
    %154 = vector.load %arg4[%153, %c0_96] : memref<10x32xf32, #tpu.memory_space<vmem>>, vector<1x32xf32>
    %155 = arith.addf %152, %154 : vector<1x32xf32>
    %156 = arith.addf %155, %0 : vector<1x32xf32>
    %c1_97 = arith.constant 1 : index
    %c5_98 = arith.constant 5 : index
    %157 = memref.load %arg0[%c1_97, %c5_98] : memref<2x8xi32, #tpu.memory_space<smem>>
    %c1_99 = arith.constant 1 : index
    %c5_100 = arith.constant 5 : index
    %158 = memref.load %arg1[%c1_99, %c5_100] : memref<2x8xi32, #tpu.memory_space<smem>>
    %159 = arith.addi %147, %158 : i32
    %160 = arith.muli %159, %158 : i32
    %c1_i32_101 = arith.constant 1 : i32
    %161 = arith.addi %160, %c1_i32_101 : i32
    %c9_i32_102 = arith.constant 9 : i32
    %162 = arith.minsi %161, %c9_i32_102 : i32
    %163 = arith.index_cast %157 : i32 to index
    %c0_103 = arith.constant 0 : index
    %164 = vector.load %arg3[%163, %c0_103] : memref<100x32xf32, #tpu.memory_space<vmem>>, vector<1x32xf32>
    %165 = arith.index_cast %162 : i32 to index
    %c0_104 = arith.constant 0 : index
    %166 = vector.load %arg4[%165, %c0_104] : memref<10x32xf32, #tpu.memory_space<vmem>>, vector<1x32xf32>
    %167 = arith.addf %164, %166 : vector<1x32xf32>
    %168 = arith.addf %167, %0 : vector<1x32xf32>
    %c1_105 = arith.constant 1 : index
    %c6_106 = arith.constant 6 : index
    %169 = memref.load %arg0[%c1_105, %c6_106] : memref<2x8xi32, #tpu.memory_space<smem>>
    %c1_107 = arith.constant 1 : index
    %c6_108 = arith.constant 6 : index
    %170 = memref.load %arg1[%c1_107, %c6_108] : memref<2x8xi32, #tpu.memory_space<smem>>
    %171 = arith.addi %159, %170 : i32
    %172 = arith.muli %171, %170 : i32
    %c1_i32_109 = arith.constant 1 : i32
    %173 = arith.addi %172, %c1_i32_109 : i32
    %c9_i32_110 = arith.constant 9 : i32
    %174 = arith.minsi %173, %c9_i32_110 : i32
    %175 = arith.index_cast %169 : i32 to index
    %c0_111 = arith.constant 0 : index
    %176 = vector.load %arg3[%175, %c0_111] : memref<100x32xf32, #tpu.memory_space<vmem>>, vector<1x32xf32>
    %177 = arith.index_cast %174 : i32 to index
    %c0_112 = arith.constant 0 : index
    %178 = vector.load %arg4[%177, %c0_112] : memref<10x32xf32, #tpu.memory_space<vmem>>, vector<1x32xf32>
    %179 = arith.addf %176, %178 : vector<1x32xf32>
    %180 = arith.addf %179, %0 : vector<1x32xf32>
    %c1_113 = arith.constant 1 : index
    %c7_114 = arith.constant 7 : index
    %181 = memref.load %arg0[%c1_113, %c7_114] : memref<2x8xi32, #tpu.memory_space<smem>>
    %c1_115 = arith.constant 1 : index
    %c7_116 = arith.constant 7 : index
    %182 = memref.load %arg1[%c1_115, %c7_116] : memref<2x8xi32, #tpu.memory_space<smem>>
    %183 = arith.addi %171, %182 : i32
    %184 = arith.muli %183, %182 : i32
    %c1_i32_117 = arith.constant 1 : i32
    %185 = arith.addi %184, %c1_i32_117 : i32
    %c9_i32_118 = arith.constant 9 : i32
    %186 = arith.minsi %185, %c9_i32_118 : i32
    %187 = arith.index_cast %181 : i32 to index
    %c0_119 = arith.constant 0 : index
    %188 = vector.load %arg3[%187, %c0_119] : memref<100x32xf32, #tpu.memory_space<vmem>>, vector<1x32xf32>
    %189 = arith.index_cast %186 : i32 to index
    %c0_120 = arith.constant 0 : index
    %190 = vector.load %arg4[%189, %c0_120] : memref<10x32xf32, #tpu.memory_space<vmem>>, vector<1x32xf32>
    %191 = arith.addf %188, %190 : vector<1x32xf32>
    %192 = arith.addf %191, %0 : vector<1x32xf32>
    %193 = tpu.concatenate %12, %24, %36, %48, %60, %72, %84, %96, %108, %120, %132, %144, %156, %168, %180, %192 in 0 : vector<1x32xf32>, vector<1x32xf32>, vector<1x32xf32>, vector<1x32xf32>, vector<1x32xf32>, vector<1x32xf32>, vector<1x32xf32>, vector<1x32xf32>, vector<1x32xf32>, vector<1x32xf32>, vector<1x32xf32>, vector<1x32xf32>, vector<1x32xf32>, vector<1x32xf32>, vector<1x32xf32>, vector<1x32xf32> -> vector<16x32xf32>
    %c0_121 = arith.constant 0 : index
    %c0_122 = arith.constant 0 : index
    %194 = vector.load %arg6[%c0_121, %c0_122] : memref<1x32xf32, #tpu.memory_space<vmem>>, vector<1x32xf32>
    %c0_123 = arith.constant 0 : index
    %c0_124 = arith.constant 0 : index
    %195 = vector.load %arg7[%c0_123, %c0_124] : memref<1x32xf32, #tpu.memory_space<vmem>>, vector<1x32xf32>
    %cst = arith.constant dense<0.000000e+00> : vector<16xf32>
    %196 = vector.multi_reduction <add>, %193, %cst [1] : vector<16x32xf32> to vector<16xf32>
    %197 = vector.shape_cast %196 : vector<16xf32> to vector<16x1xf32>
    %cst_125 = arith.constant 3.200000e+01 : f32
    %198 = vector.broadcast %cst_125 : f32 to vector<16x1xf32>
    %199 = arith.divf %197, %198 : vector<16x1xf32>
    %200 = vector.broadcast %199 : vector<16x1xf32> to vector<16x32xf32>
    %201 = arith.subf %193, %200 : vector<16x32xf32>
    %202 = arith.mulf %201, %201 : vector<16x32xf32>
    %cst_126 = arith.constant dense<0.000000e+00> : vector<16xf32>
    %203 = vector.multi_reduction <add>, %202, %cst_126 [1] : vector<16x32xf32> to vector<16xf32>
    %204 = vector.shape_cast %203 : vector<16xf32> to vector<16x1xf32>
    %cst_127 = arith.constant 3.200000e+01 : f32
    %205 = vector.broadcast %cst_127 : f32 to vector<16x1xf32>
    %206 = arith.divf %204, %205 : vector<16x1xf32>
    %207 = vector.broadcast %199 : vector<16x1xf32> to vector<16x32xf32>
    %208 = arith.subf %193, %207 : vector<16x32xf32>
    %cst_128 = arith.constant 9.99999974E-6 : f32
    %209 = vector.broadcast %cst_128 : f32 to vector<16x1xf32>
    %210 = arith.addf %206, %209 : vector<16x1xf32>
    %211 = math.rsqrt %210 : vector<16x1xf32>
    %212 = vector.broadcast %211 : vector<16x1xf32> to vector<16x32xf32>
    %213 = arith.mulf %208, %212 : vector<16x32xf32>
    %214 = vector.broadcast %194 : vector<1x32xf32> to vector<16x32xf32>
    %215 = arith.mulf %213, %214 : vector<16x32xf32>
    %216 = vector.broadcast %195 : vector<1x32xf32> to vector<16x32xf32>
    %217 = arith.addf %215, %216 : vector<16x32xf32>
    %c0_129 = arith.constant 0 : index
    %c0_130 = arith.constant 0 : index
    %218 = vector.load %arg2[%c0_129, %c0_130] : memref<2x8xi32, #tpu.memory_space<vmem>>, vector<2x8xi32>
    %219 = arith.sitofp %218 : vector<2x8xi32> to vector<2x8xf32>
    %cst_131 = arith.constant 1.000000e+00 : f32
    %220 = vector.broadcast %cst_131 : f32 to vector<2x8xf32>
    %221 = arith.subf %219, %220 : vector<2x8xf32>
    %cst_132 = arith.constant 1.000000e+09 : f32
    %222 = vector.broadcast %cst_132 : f32 to vector<2x8xf32>
    %223 = arith.mulf %221, %222 : vector<2x8xf32>
    %c0_133 = arith.constant 0 : index
    %c0_134 = arith.constant 0 : index
    %c0_135 = arith.constant 0 : index
    %224 = vector.load %arg8[%c0_133, %c0_134, %c0_135] : memref<6x32x16xf32, #tpu.memory_space<vmem>>, vector<1x32x16xf32>
    %225 = vector.shape_cast %224 : vector<1x32x16xf32> to vector<32x16xf32>
    %cst_136 = arith.constant dense<0.000000e+00> : vector<16x16xf32>
    %226 = tpu.matmul %217, %225, %cst_136 {dimension_numbers = #tpu.dot_dimension_numbers<[1], [0], [0], [1], [0, 0, 1, 1], [], []>} : vector<16x32xf32>, vector<32x16xf32>, vector<16x16xf32> -> vector<16x16xf32>
    %c0_137 = arith.constant 0 : index
    %c0_138 = arith.constant 0 : index
    %c0_139 = arith.constant 0 : index
    %227 = vector.load %arg9[%c0_137, %c0_138, %c0_139] : memref<6x1x16xf32, #tpu.memory_space<vmem>>, vector<1x1x16xf32>
    %228 = vector.shape_cast %227 : vector<1x1x16xf32> to vector<1x16xf32>
    %229 = vector.broadcast %228 : vector<1x16xf32> to vector<16x16xf32>
    %230 = arith.addf %226, %229 : vector<16x16xf32>
    %c1_140 = arith.constant 1 : index
    %c0_141 = arith.constant 0 : index
    %c0_142 = arith.constant 0 : index
    %231 = vector.load %arg8[%c1_140, %c0_141, %c0_142] : memref<6x32x16xf32, #tpu.memory_space<vmem>>, vector<1x32x16xf32>
    %232 = vector.shape_cast %231 : vector<1x32x16xf32> to vector<32x16xf32>
    %cst_143 = arith.constant dense<0.000000e+00> : vector<16x16xf32>
    %233 = tpu.matmul %217, %232, %cst_143 {dimension_numbers = #tpu.dot_dimension_numbers<[1], [0], [0], [1], [0, 0, 1, 1], [], []>} : vector<16x32xf32>, vector<32x16xf32>, vector<16x16xf32> -> vector<16x16xf32>
    %c1_144 = arith.constant 1 : index
    %c0_145 = arith.constant 0 : index
    %c0_146 = arith.constant 0 : index
    %234 = vector.load %arg9[%c1_144, %c0_145, %c0_146] : memref<6x1x16xf32, #tpu.memory_space<vmem>>, vector<1x1x16xf32>
    %235 = vector.shape_cast %234 : vector<1x1x16xf32> to vector<1x16xf32>
    %236 = vector.broadcast %235 : vector<1x16xf32> to vector<16x16xf32>
    %237 = arith.addf %233, %236 : vector<16x16xf32>
    %c2_147 = arith.constant 2 : index
    %c0_148 = arith.constant 0 : index
    %c0_149 = arith.constant 0 : index
    %238 = vector.load %arg8[%c2_147, %c0_148, %c0_149] : memref<6x32x16xf32, #tpu.memory_space<vmem>>, vector<1x32x16xf32>
    %239 = vector.shape_cast %238 : vector<1x32x16xf32> to vector<32x16xf32>
    %cst_150 = arith.constant dense<0.000000e+00> : vector<16x16xf32>
    %240 = tpu.matmul %217, %239, %cst_150 {dimension_numbers = #tpu.dot_dimension_numbers<[1], [0], [0], [1], [0, 0, 1, 1], [], []>} : vector<16x32xf32>, vector<32x16xf32>, vector<16x16xf32> -> vector<16x16xf32>
    %c2_151 = arith.constant 2 : index
    %c0_152 = arith.constant 0 : index
    %c0_153 = arith.constant 0 : index
    %241 = vector.load %arg9[%c2_151, %c0_152, %c0_153] : memref<6x1x16xf32, #tpu.memory_space<vmem>>, vector<1x1x16xf32>
    %242 = vector.shape_cast %241 : vector<1x1x16xf32> to vector<1x16xf32>
    %243 = vector.broadcast %242 : vector<1x16xf32> to vector<16x16xf32>
    %244 = arith.addf %240, %243 : vector<16x16xf32>
    %c3_154 = arith.constant 3 : index
    %c0_155 = arith.constant 0 : index
    %c0_156 = arith.constant 0 : index
    %245 = vector.load %arg8[%c3_154, %c0_155, %c0_156] : memref<6x32x16xf32, #tpu.memory_space<vmem>>, vector<1x32x16xf32>
    %246 = vector.shape_cast %245 : vector<1x32x16xf32> to vector<32x16xf32>
    %cst_157 = arith.constant dense<0.000000e+00> : vector<16x16xf32>
    %247 = tpu.matmul %217, %246, %cst_157 {dimension_numbers = #tpu.dot_dimension_numbers<[1], [0], [0], [1], [0, 0, 1, 1], [], []>} : vector<16x32xf32>, vector<32x16xf32>, vector<16x16xf32> -> vector<16x16xf32>
    %c3_158 = arith.constant 3 : index
    %c0_159 = arith.constant 0 : index
    %c0_160 = arith.constant 0 : index
    %248 = vector.load %arg9[%c3_158, %c0_159, %c0_160] : memref<6x1x16xf32, #tpu.memory_space<vmem>>, vector<1x1x16xf32>
    %249 = vector.shape_cast %248 : vector<1x1x16xf32> to vector<1x16xf32>
    %250 = vector.broadcast %249 : vector<1x16xf32> to vector<16x16xf32>
    %251 = arith.addf %247, %250 : vector<16x16xf32>
    %c4_161 = arith.constant 4 : index
    %c0_162 = arith.constant 0 : index
    %c0_163 = arith.constant 0 : index
    %252 = vector.load %arg8[%c4_161, %c0_162, %c0_163] : memref<6x32x16xf32, #tpu.memory_space<vmem>>, vector<1x32x16xf32>
    %253 = vector.shape_cast %252 : vector<1x32x16xf32> to vector<32x16xf32>
    %cst_164 = arith.constant dense<0.000000e+00> : vector<16x16xf32>
    %254 = tpu.matmul %217, %253, %cst_164 {dimension_numbers = #tpu.dot_dimension_numbers<[1], [0], [0], [1], [0, 0, 1, 1], [], []>} : vector<16x32xf32>, vector<32x16xf32>, vector<16x16xf32> -> vector<16x16xf32>
    %c4_165 = arith.constant 4 : index
    %c0_166 = arith.constant 0 : index
    %c0_167 = arith.constant 0 : index
    %255 = vector.load %arg9[%c4_165, %c0_166, %c0_167] : memref<6x1x16xf32, #tpu.memory_space<vmem>>, vector<1x1x16xf32>
    %256 = vector.shape_cast %255 : vector<1x1x16xf32> to vector<1x16xf32>
    %257 = vector.broadcast %256 : vector<1x16xf32> to vector<16x16xf32>
    %258 = arith.addf %254, %257 : vector<16x16xf32>
    %c5_168 = arith.constant 5 : index
    %c0_169 = arith.constant 0 : index
    %c0_170 = arith.constant 0 : index
    %259 = vector.load %arg8[%c5_168, %c0_169, %c0_170] : memref<6x32x16xf32, #tpu.memory_space<vmem>>, vector<1x32x16xf32>
    %260 = vector.shape_cast %259 : vector<1x32x16xf32> to vector<32x16xf32>
    %cst_171 = arith.constant dense<0.000000e+00> : vector<16x16xf32>
    %261 = tpu.matmul %217, %260, %cst_171 {dimension_numbers = #tpu.dot_dimension_numbers<[1], [0], [0], [1], [0, 0, 1, 1], [], []>} : vector<16x32xf32>, vector<32x16xf32>, vector<16x16xf32> -> vector<16x16xf32>
    %c5_172 = arith.constant 5 : index
    %c0_173 = arith.constant 0 : index
    %c0_174 = arith.constant 0 : index
    %262 = vector.load %arg9[%c5_172, %c0_173, %c0_174] : memref<6x1x16xf32, #tpu.memory_space<vmem>>, vector<1x1x16xf32>
    %263 = vector.shape_cast %262 : vector<1x1x16xf32> to vector<1x16xf32>
    %264 = vector.broadcast %263 : vector<1x16xf32> to vector<16x16xf32>
    %265 = arith.addf %261, %264 : vector<16x16xf32>
    %266 = vector.extract_strided_slice %223 {offsets = [0, 0], sizes = [1, 8], strides = [1, 1]} : vector<2x8xf32> to vector<1x8xf32>
    %267 = vector.extract_strided_slice %230 {offsets = [0, 0], sizes = [8, 16], strides = [1, 1]} : vector<16x16xf32> to vector<8x16xf32>
    %268 = vector.extract_strided_slice %244 {offsets = [0, 0], sizes = [8, 16], strides = [1, 1]} : vector<16x16xf32> to vector<8x16xf32>
    %269 = vector.extract_strided_slice %258 {offsets = [0, 0], sizes = [8, 16], strides = [1, 1]} : vector<16x16xf32> to vector<8x16xf32>
    %cst_175 = arith.constant dense<0.000000e+00> : vector<8x8xf32>
    %270 = tpu.matmul %267, %268, %cst_175 {dimension_numbers = #tpu.dot_dimension_numbers<[1], [1], [0], [0], [0, 0, 1, 0], [], []>} : vector<8x16xf32>, vector<8x16xf32>, vector<8x8xf32> -> vector<8x8xf32>
    %271 = vector.broadcast %266 : vector<1x8xf32> to vector<8x8xf32>
    %272 = arith.addf %270, %271 : vector<8x8xf32>
    %cst_176 = arith.constant dense<0xFF800000> : vector<8xf32>
    %273 = vector.multi_reduction <maximumf>, %272, %cst_176 [1] : vector<8x8xf32> to vector<8xf32>
    %274 = vector.shape_cast %273 : vector<8xf32> to vector<8x1xf32>
    %275 = vector.broadcast %274 : vector<8x1xf32> to vector<8x8xf32>
    %276 = arith.subf %272, %275 : vector<8x8xf32>
    %277 = math.exp %276 : vector<8x8xf32>
    %cst_177 = arith.constant dense<0.000000e+00> : vector<8xf32>
    %278 = vector.multi_reduction <add>, %277, %cst_177 [1] : vector<8x8xf32> to vector<8xf32>
    %279 = vector.shape_cast %278 : vector<8xf32> to vector<8x1xf32>
    %280 = tpu.reciprocal %279 {approx = true} : vector<8x1xf32> -> vector<8x1xf32>
    %281 = vector.broadcast %280 : vector<8x1xf32> to vector<8x8xf32>
    %282 = arith.mulf %277, %281 : vector<8x8xf32>
    %cst_178 = arith.constant dense<0.000000e+00> : vector<8x16xf32>
    %283 = tpu.matmul %282, %269, %cst_178 {dimension_numbers = #tpu.dot_dimension_numbers<[1], [0], [0], [1], [0, 0, 1, 1], [], []>} : vector<8x8xf32>, vector<8x16xf32>, vector<8x16xf32> -> vector<8x16xf32>
    %284 = vector.extract_strided_slice %237 {offsets = [0, 0], sizes = [8, 16], strides = [1, 1]} : vector<16x16xf32> to vector<8x16xf32>
    %285 = vector.extract_strided_slice %251 {offsets = [0, 0], sizes = [8, 16], strides = [1, 1]} : vector<16x16xf32> to vector<8x16xf32>
    %286 = vector.extract_strided_slice %265 {offsets = [0, 0], sizes = [8, 16], strides = [1, 1]} : vector<16x16xf32> to vector<8x16xf32>
    %cst_179 = arith.constant dense<0.000000e+00> : vector<8x8xf32>
    %287 = tpu.matmul %284, %285, %cst_179 {dimension_numbers = #tpu.dot_dimension_numbers<[1], [1], [0], [0], [0, 0, 1, 0], [], []>} : vector<8x16xf32>, vector<8x16xf32>, vector<8x8xf32> -> vector<8x8xf32>
    %288 = vector.broadcast %266 : vector<1x8xf32> to vector<8x8xf32>
    %289 = arith.addf %287, %288 : vector<8x8xf32>
    %cst_180 = arith.constant dense<0xFF800000> : vector<8xf32>
    %290 = vector.multi_reduction <maximumf>, %289, %cst_180 [1] : vector<8x8xf32> to vector<8xf32>
    %291 = vector.shape_cast %290 : vector<8xf32> to vector<8x1xf32>
    %292 = vector.broadcast %291 : vector<8x1xf32> to vector<8x8xf32>
    %293 = arith.subf %289, %292 : vector<8x8xf32>
    %294 = math.exp %293 : vector<8x8xf32>
    %cst_181 = arith.constant dense<0.000000e+00> : vector<8xf32>
    %295 = vector.multi_reduction <add>, %294, %cst_181 [1] : vector<8x8xf32> to vector<8xf32>
    %296 = vector.shape_cast %295 : vector<8xf32> to vector<8x1xf32>
    %297 = tpu.reciprocal %296 {approx = true} : vector<8x1xf32> -> vector<8x1xf32>
    %298 = vector.broadcast %297 : vector<8x1xf32> to vector<8x8xf32>
    %299 = arith.mulf %294, %298 : vector<8x8xf32>
    %cst_182 = arith.constant dense<0.000000e+00> : vector<8x16xf32>
    %300 = tpu.matmul %299, %286, %cst_182 {dimension_numbers = #tpu.dot_dimension_numbers<[1], [0], [0], [1], [0, 0, 1, 1], [], []>} : vector<8x8xf32>, vector<8x16xf32>, vector<8x16xf32> -> vector<8x16xf32>
    %301 = tpu.concatenate %283, %300 in 1 : vector<8x16xf32>, vector<8x16xf32> -> vector<8x32xf32>
    %302 = vector.extract_strided_slice %223 {offsets = [1, 0], sizes = [1, 8], strides = [1, 1]} : vector<2x8xf32> to vector<1x8xf32>
    %303 = vector.extract_strided_slice %230 {offsets = [8, 0], sizes = [8, 16], strides = [1, 1]} : vector<16x16xf32> to vector<8x16xf32>
    %304 = vector.extract_strided_slice %244 {offsets = [8, 0], sizes = [8, 16], strides = [1, 1]} : vector<16x16xf32> to vector<8x16xf32>
    %305 = vector.extract_strided_slice %258 {offsets = [8, 0], sizes = [8, 16], strides = [1, 1]} : vector<16x16xf32> to vector<8x16xf32>
    %cst_183 = arith.constant dense<0.000000e+00> : vector<8x8xf32>
    %306 = tpu.matmul %303, %304, %cst_183 {dimension_numbers = #tpu.dot_dimension_numbers<[1], [1], [0], [0], [0, 0, 1, 0], [], []>} : vector<8x16xf32>, vector<8x16xf32>, vector<8x8xf32> -> vector<8x8xf32>
    %307 = vector.broadcast %302 : vector<1x8xf32> to vector<8x8xf32>
    %308 = arith.addf %306, %307 : vector<8x8xf32>
    %cst_184 = arith.constant dense<0xFF800000> : vector<8xf32>
    %309 = vector.multi_reduction <maximumf>, %308, %cst_184 [1] : vector<8x8xf32> to vector<8xf32>
    %310 = vector.shape_cast %309 : vector<8xf32> to vector<8x1xf32>
    %311 = vector.broadcast %310 : vector<8x1xf32> to vector<8x8xf32>
    %312 = arith.subf %308, %311 : vector<8x8xf32>
    %313 = math.exp %312 : vector<8x8xf32>
    %cst_185 = arith.constant dense<0.000000e+00> : vector<8xf32>
    %314 = vector.multi_reduction <add>, %313, %cst_185 [1] : vector<8x8xf32> to vector<8xf32>
    %315 = vector.shape_cast %314 : vector<8xf32> to vector<8x1xf32>
    %316 = tpu.reciprocal %315 {approx = true} : vector<8x1xf32> -> vector<8x1xf32>
    %317 = vector.broadcast %316 : vector<8x1xf32> to vector<8x8xf32>
    %318 = arith.mulf %313, %317 : vector<8x8xf32>
    %cst_186 = arith.constant dense<0.000000e+00> : vector<8x16xf32>
    %319 = tpu.matmul %318, %305, %cst_186 {dimension_numbers = #tpu.dot_dimension_numbers<[1], [0], [0], [1], [0, 0, 1, 1], [], []>} : vector<8x8xf32>, vector<8x16xf32>, vector<8x16xf32> -> vector<8x16xf32>
    %320 = vector.extract_strided_slice %237 {offsets = [8, 0], sizes = [8, 16], strides = [1, 1]} : vector<16x16xf32> to vector<8x16xf32>
    %321 = vector.extract_strided_slice %251 {offsets = [8, 0], sizes = [8, 16], strides = [1, 1]} : vector<16x16xf32> to vector<8x16xf32>
    %322 = vector.extract_strided_slice %265 {offsets = [8, 0], sizes = [8, 16], strides = [1, 1]} : vector<16x16xf32> to vector<8x16xf32>
    %cst_187 = arith.constant dense<0.000000e+00> : vector<8x8xf32>
    %323 = tpu.matmul %320, %321, %cst_187 {dimension_numbers = #tpu.dot_dimension_numbers<[1], [1], [0], [0], [0, 0, 1, 0], [], []>} : vector<8x16xf32>, vector<8x16xf32>, vector<8x8xf32> -> vector<8x8xf32>
    %324 = vector.broadcast %302 : vector<1x8xf32> to vector<8x8xf32>
    %325 = arith.addf %323, %324 : vector<8x8xf32>
    %cst_188 = arith.constant dense<0xFF800000> : vector<8xf32>
    %326 = vector.multi_reduction <maximumf>, %325, %cst_188 [1] : vector<8x8xf32> to vector<8xf32>
    %327 = vector.shape_cast %326 : vector<8xf32> to vector<8x1xf32>
    %328 = vector.broadcast %327 : vector<8x1xf32> to vector<8x8xf32>
    %329 = arith.subf %325, %328 : vector<8x8xf32>
    %330 = math.exp %329 : vector<8x8xf32>
    %cst_189 = arith.constant dense<0.000000e+00> : vector<8xf32>
    %331 = vector.multi_reduction <add>, %330, %cst_189 [1] : vector<8x8xf32> to vector<8xf32>
    %332 = vector.shape_cast %331 : vector<8xf32> to vector<8x1xf32>
    %333 = tpu.reciprocal %332 {approx = true} : vector<8x1xf32> -> vector<8x1xf32>
    %334 = vector.broadcast %333 : vector<8x1xf32> to vector<8x8xf32>
    %335 = arith.mulf %330, %334 : vector<8x8xf32>
    %cst_190 = arith.constant dense<0.000000e+00> : vector<8x16xf32>
    %336 = tpu.matmul %335, %322, %cst_190 {dimension_numbers = #tpu.dot_dimension_numbers<[1], [0], [0], [1], [0, 0, 1, 1], [], []>} : vector<8x8xf32>, vector<8x16xf32>, vector<8x16xf32> -> vector<8x16xf32>
    %337 = tpu.concatenate %319, %336 in 1 : vector<8x16xf32>, vector<8x16xf32> -> vector<8x32xf32>
    %338 = tpu.concatenate %301, %337 in 0 : vector<8x32xf32>, vector<8x32xf32> -> vector<16x32xf32>
    %c0_191 = arith.constant 0 : index
    %c0_192 = arith.constant 0 : index
    %339 = vector.load %arg10[%c0_191, %c0_192] : memref<32x32xf32, #tpu.memory_space<vmem>>, vector<32x32xf32>
    %cst_193 = arith.constant dense<0.000000e+00> : vector<16x32xf32>
    %340 = tpu.matmul %338, %339, %cst_193 {dimension_numbers = #tpu.dot_dimension_numbers<[1], [0], [0], [1], [0, 0, 1, 1], [], []>} : vector<16x32xf32>, vector<32x32xf32>, vector<16x32xf32> -> vector<16x32xf32>
    %c0_194 = arith.constant 0 : index
    %c0_195 = arith.constant 0 : index
    %341 = vector.load %arg11[%c0_194, %c0_195] : memref<1x32xf32, #tpu.memory_space<vmem>>, vector<1x32xf32>
    %342 = vector.broadcast %341 : vector<1x32xf32> to vector<16x32xf32>
    %343 = arith.addf %340, %342 : vector<16x32xf32>
    %344 = arith.addf %343, %217 : vector<16x32xf32>
    %c0_196 = arith.constant 0 : index
    %c0_197 = arith.constant 0 : index
    %345 = vector.load %arg12[%c0_196, %c0_197] : memref<1x32xf32, #tpu.memory_space<vmem>>, vector<1x32xf32>
    %c0_198 = arith.constant 0 : index
    %c0_199 = arith.constant 0 : index
    %346 = vector.load %arg13[%c0_198, %c0_199] : memref<1x32xf32, #tpu.memory_space<vmem>>, vector<1x32xf32>
    %cst_200 = arith.constant dense<0.000000e+00> : vector<16xf32>
    %347 = vector.multi_reduction <add>, %344, %cst_200 [1] : vector<16x32xf32> to vector<16xf32>
    %348 = vector.shape_cast %347 : vector<16xf32> to vector<16x1xf32>
    %cst_201 = arith.constant 3.200000e+01 : f32
    %349 = vector.broadcast %cst_201 : f32 to vector<16x1xf32>
    %350 = arith.divf %348, %349 : vector<16x1xf32>
    %351 = vector.broadcast %350 : vector<16x1xf32> to vector<16x32xf32>
    %352 = arith.subf %344, %351 : vector<16x32xf32>
    %353 = arith.mulf %352, %352 : vector<16x32xf32>
    %cst_202 = arith.constant dense<0.000000e+00> : vector<16xf32>
    %354 = vector.multi_reduction <add>, %353, %cst_202 [1] : vector<16x32xf32> to vector<16xf32>
    %355 = vector.shape_cast %354 : vector<16xf32> to vector<16x1xf32>
    %cst_203 = arith.constant 3.200000e+01 : f32
    %356 = vector.broadcast %cst_203 : f32 to vector<16x1xf32>
    %357 = arith.divf %355, %356 : vector<16x1xf32>
    %358 = vector.broadcast %350 : vector<16x1xf32> to vector<16x32xf32>
    %359 = arith.subf %344, %358 : vector<16x32xf32>
    %cst_204 = arith.constant 9.99999974E-6 : f32
    %360 = vector.broadcast %cst_204 : f32 to vector<16x1xf32>
    %361 = arith.addf %357, %360 : vector<16x1xf32>
    %362 = math.rsqrt %361 : vector<16x1xf32>
    %363 = vector.broadcast %362 : vector<16x1xf32> to vector<16x32xf32>
    %364 = arith.mulf %359, %363 : vector<16x32xf32>
    %365 = vector.broadcast %345 : vector<1x32xf32> to vector<16x32xf32>
    %366 = arith.mulf %364, %365 : vector<16x32xf32>
    %367 = vector.broadcast %346 : vector<1x32xf32> to vector<16x32xf32>
    %368 = arith.addf %366, %367 : vector<16x32xf32>
    %c0_205 = arith.constant 0 : index
    %c0_206 = arith.constant 0 : index
    %369 = vector.load %arg14[%c0_205, %c0_206] : memref<32x64xf32, #tpu.memory_space<vmem>>, vector<32x64xf32>
    %cst_207 = arith.constant dense<0.000000e+00> : vector<16x64xf32>
    %370 = tpu.matmul %368, %369, %cst_207 {dimension_numbers = #tpu.dot_dimension_numbers<[1], [0], [0], [1], [0, 0, 1, 1], [], []>} : vector<16x32xf32>, vector<32x64xf32>, vector<16x64xf32> -> vector<16x64xf32>
    %c0_208 = arith.constant 0 : index
    %c0_209 = arith.constant 0 : index
    %371 = vector.load %arg15[%c0_208, %c0_209] : memref<1x64xf32, #tpu.memory_space<vmem>>, vector<1x64xf32>
    %372 = vector.broadcast %371 : vector<1x64xf32> to vector<16x64xf32>
    %373 = arith.addf %370, %372 : vector<16x64xf32>
    %374 = arith.mulf %373, %373 : vector<16x64xf32>
    %375 = arith.mulf %373, %374 : vector<16x64xf32>
    %cst_210 = arith.constant 4.471500e-02 : f32
    %376 = vector.broadcast %cst_210 : f32 to vector<16x64xf32>
    %377 = arith.mulf %376, %375 : vector<16x64xf32>
    %378 = arith.addf %373, %377 : vector<16x64xf32>
    %cst_211 = arith.constant 0.797884583 : f32
    %379 = vector.broadcast %cst_211 : f32 to vector<16x64xf32>
    %380 = arith.mulf %379, %378 : vector<16x64xf32>
    %381 = math.tanh %380 : vector<16x64xf32>
    %cst_212 = arith.constant 1.000000e+00 : f32
    %382 = vector.broadcast %cst_212 : f32 to vector<16x64xf32>
    %383 = arith.addf %382, %381 : vector<16x64xf32>
    %cst_213 = arith.constant 5.000000e-01 : f32
    %384 = vector.broadcast %cst_213 : f32 to vector<16x64xf32>
    %385 = arith.mulf %384, %383 : vector<16x64xf32>
    %386 = arith.mulf %373, %385 : vector<16x64xf32>
    %c0_214 = arith.constant 0 : index
    %c0_215 = arith.constant 0 : index
    %387 = vector.load %arg16[%c0_214, %c0_215] : memref<64x32xf32, #tpu.memory_space<vmem>>, vector<64x32xf32>
    %cst_216 = arith.constant dense<0.000000e+00> : vector<16x32xf32>
    %388 = tpu.matmul %386, %387, %cst_216 {dimension_numbers = #tpu.dot_dimension_numbers<[1], [0], [0], [1], [0, 0, 1, 1], [], []>} : vector<16x64xf32>, vector<64x32xf32>, vector<16x32xf32> -> vector<16x32xf32>
    %c0_217 = arith.constant 0 : index
    %c0_218 = arith.constant 0 : index
    %389 = vector.load %arg17[%c0_217, %c0_218] : memref<1x32xf32, #tpu.memory_space<vmem>>, vector<1x32xf32>
    %390 = vector.broadcast %389 : vector<1x32xf32> to vector<16x32xf32>
    %391 = arith.addf %388, %390 : vector<16x32xf32>
    %392 = arith.addf %391, %368 : vector<16x32xf32>
    %c0_219 = arith.constant 0 : index
    %c0_220 = arith.constant 0 : index
    %393 = vector.load %arg18[%c0_219, %c0_220] : memref<1x32xf32, #tpu.memory_space<vmem>>, vector<1x32xf32>
    %c0_221 = arith.constant 0 : index
    %c0_222 = arith.constant 0 : index
    %394 = vector.load %arg19[%c0_221, %c0_222] : memref<1x32xf32, #tpu.memory_space<vmem>>, vector<1x32xf32>
    %cst_223 = arith.constant dense<0.000000e+00> : vector<16xf32>
    %395 = vector.multi_reduction <add>, %392, %cst_223 [1] : vector<16x32xf32> to vector<16xf32>
    %396 = vector.shape_cast %395 : vector<16xf32> to vector<16x1xf32>
    %cst_224 = arith.constant 3.200000e+01 : f32
    %397 = vector.broadcast %cst_224 : f32 to vector<16x1xf32>
    %398 = arith.divf %396, %397 : vector<16x1xf32>
    %399 = vector.broadcast %398 : vector<16x1xf32> to vector<16x32xf32>
    %400 = arith.subf %392, %399 : vector<16x32xf32>
    %401 = arith.mulf %400, %400 : vector<16x32xf32>
    %cst_225 = arith.constant dense<0.000000e+00> : vector<16xf32>
    %402 = vector.multi_reduction <add>, %401, %cst_225 [1] : vector<16x32xf32> to vector<16xf32>
    %403 = vector.shape_cast %402 : vector<16xf32> to vector<16x1xf32>
    %cst_226 = arith.constant 3.200000e+01 : f32
    %404 = vector.broadcast %cst_226 : f32 to vector<16x1xf32>
    %405 = arith.divf %403, %404 : vector<16x1xf32>
    %406 = vector.broadcast %398 : vector<16x1xf32> to vector<16x32xf32>
    %407 = arith.subf %392, %406 : vector<16x32xf32>
    %cst_227 = arith.constant 9.99999974E-6 : f32
    %408 = vector.broadcast %cst_227 : f32 to vector<16x1xf32>
    %409 = arith.addf %405, %408 : vector<16x1xf32>
    %410 = math.rsqrt %409 : vector<16x1xf32>
    %411 = vector.broadcast %410 : vector<16x1xf32> to vector<16x32xf32>
    %412 = arith.mulf %407, %411 : vector<16x32xf32>
    %413 = vector.broadcast %393 : vector<1x32xf32> to vector<16x32xf32>
    %414 = arith.mulf %412, %413 : vector<16x32xf32>
    %415 = vector.broadcast %394 : vector<1x32xf32> to vector<16x32xf32>
    %416 = arith.addf %414, %415 : vector<16x32xf32>
    %c0_228 = arith.constant 0 : index
    %c0_229 = arith.constant 0 : index
    %c0_230 = arith.constant 0 : index
    %417 = vector.load %arg20[%c0_228, %c0_229, %c0_230] : memref<6x32x16xf32, #tpu.memory_space<vmem>>, vector<1x32x16xf32>
    %418 = vector.shape_cast %417 : vector<1x32x16xf32> to vector<32x16xf32>
    %cst_231 = arith.constant dense<0.000000e+00> : vector<16x16xf32>
    %419 = tpu.matmul %416, %418, %cst_231 {dimension_numbers = #tpu.dot_dimension_numbers<[1], [0], [0], [1], [0, 0, 1, 1], [], []>} : vector<16x32xf32>, vector<32x16xf32>, vector<16x16xf32> -> vector<16x16xf32>
    %c0_232 = arith.constant 0 : index
    %c0_233 = arith.constant 0 : index
    %c0_234 = arith.constant 0 : index
    %420 = vector.load %arg21[%c0_232, %c0_233, %c0_234] : memref<6x1x16xf32, #tpu.memory_space<vmem>>, vector<1x1x16xf32>
    %421 = vector.shape_cast %420 : vector<1x1x16xf32> to vector<1x16xf32>
    %422 = vector.broadcast %421 : vector<1x16xf32> to vector<16x16xf32>
    %423 = arith.addf %419, %422 : vector<16x16xf32>
    %c1_235 = arith.constant 1 : index
    %c0_236 = arith.constant 0 : index
    %c0_237 = arith.constant 0 : index
    %424 = vector.load %arg20[%c1_235, %c0_236, %c0_237] : memref<6x32x16xf32, #tpu.memory_space<vmem>>, vector<1x32x16xf32>
    %425 = vector.shape_cast %424 : vector<1x32x16xf32> to vector<32x16xf32>
    %cst_238 = arith.constant dense<0.000000e+00> : vector<16x16xf32>
    %426 = tpu.matmul %416, %425, %cst_238 {dimension_numbers = #tpu.dot_dimension_numbers<[1], [0], [0], [1], [0, 0, 1, 1], [], []>} : vector<16x32xf32>, vector<32x16xf32>, vector<16x16xf32> -> vector<16x16xf32>
    %c1_239 = arith.constant 1 : index
    %c0_240 = arith.constant 0 : index
    %c0_241 = arith.constant 0 : index
    %427 = vector.load %arg21[%c1_239, %c0_240, %c0_241] : memref<6x1x16xf32, #tpu.memory_space<vmem>>, vector<1x1x16xf32>
    %428 = vector.shape_cast %427 : vector<1x1x16xf32> to vector<1x16xf32>
    %429 = vector.broadcast %428 : vector<1x16xf32> to vector<16x16xf32>
    %430 = arith.addf %426, %429 : vector<16x16xf32>
    %c2_242 = arith.constant 2 : index
    %c0_243 = arith.constant 0 : index
    %c0_244 = arith.constant 0 : index
    %431 = vector.load %arg20[%c2_242, %c0_243, %c0_244] : memref<6x32x16xf32, #tpu.memory_space<vmem>>, vector<1x32x16xf32>
    %432 = vector.shape_cast %431 : vector<1x32x16xf32> to vector<32x16xf32>
    %cst_245 = arith.constant dense<0.000000e+00> : vector<16x16xf32>
    %433 = tpu.matmul %416, %432, %cst_245 {dimension_numbers = #tpu.dot_dimension_numbers<[1], [0], [0], [1], [0, 0, 1, 1], [], []>} : vector<16x32xf32>, vector<32x16xf32>, vector<16x16xf32> -> vector<16x16xf32>
    %c2_246 = arith.constant 2 : index
    %c0_247 = arith.constant 0 : index
    %c0_248 = arith.constant 0 : index
    %434 = vector.load %arg21[%c2_246, %c0_247, %c0_248] : memref<6x1x16xf32, #tpu.memory_space<vmem>>, vector<1x1x16xf32>
    %435 = vector.shape_cast %434 : vector<1x1x16xf32> to vector<1x16xf32>
    %436 = vector.broadcast %435 : vector<1x16xf32> to vector<16x16xf32>
    %437 = arith.addf %433, %436 : vector<16x16xf32>
    %c3_249 = arith.constant 3 : index
    %c0_250 = arith.constant 0 : index
    %c0_251 = arith.constant 0 : index
    %438 = vector.load %arg20[%c3_249, %c0_250, %c0_251] : memref<6x32x16xf32, #tpu.memory_space<vmem>>, vector<1x32x16xf32>
    %439 = vector.shape_cast %438 : vector<1x32x16xf32> to vector<32x16xf32>
    %cst_252 = arith.constant dense<0.000000e+00> : vector<16x16xf32>
    %440 = tpu.matmul %416, %439, %cst_252 {dimension_numbers = #tpu.dot_dimension_numbers<[1], [0], [0], [1], [0, 0, 1, 1], [], []>} : vector<16x32xf32>, vector<32x16xf32>, vector<16x16xf32> -> vector<16x16xf32>
    %c3_253 = arith.constant 3 : index
    %c0_254 = arith.constant 0 : index
    %c0_255 = arith.constant 0 : index
    %441 = vector.load %arg21[%c3_253, %c0_254, %c0_255] : memref<6x1x16xf32, #tpu.memory_space<vmem>>, vector<1x1x16xf32>
    %442 = vector.shape_cast %441 : vector<1x1x16xf32> to vector<1x16xf32>
    %443 = vector.broadcast %442 : vector<1x16xf32> to vector<16x16xf32>
    %444 = arith.addf %440, %443 : vector<16x16xf32>
    %c4_256 = arith.constant 4 : index
    %c0_257 = arith.constant 0 : index
    %c0_258 = arith.constant 0 : index
    %445 = vector.load %arg20[%c4_256, %c0_257, %c0_258] : memref<6x32x16xf32, #tpu.memory_space<vmem>>, vector<1x32x16xf32>
    %446 = vector.shape_cast %445 : vector<1x32x16xf32> to vector<32x16xf32>
    %cst_259 = arith.constant dense<0.000000e+00> : vector<16x16xf32>
    %447 = tpu.matmul %416, %446, %cst_259 {dimension_numbers = #tpu.dot_dimension_numbers<[1], [0], [0], [1], [0, 0, 1, 1], [], []>} : vector<16x32xf32>, vector<32x16xf32>, vector<16x16xf32> -> vector<16x16xf32>
    %c4_260 = arith.constant 4 : index
    %c0_261 = arith.constant 0 : index
    %c0_262 = arith.constant 0 : index
    %448 = vector.load %arg21[%c4_260, %c0_261, %c0_262] : memref<6x1x16xf32, #tpu.memory_space<vmem>>, vector<1x1x16xf32>
    %449 = vector.shape_cast %448 : vector<1x1x16xf32> to vector<1x16xf32>
    %450 = vector.broadcast %449 : vector<1x16xf32> to vector<16x16xf32>
    %451 = arith.addf %447, %450 : vector<16x16xf32>
    %c5_263 = arith.constant 5 : index
    %c0_264 = arith.constant 0 : index
    %c0_265 = arith.constant 0 : index
    %452 = vector.load %arg20[%c5_263, %c0_264, %c0_265] : memref<6x32x16xf32, #tpu.memory_space<vmem>>, vector<1x32x16xf32>
    %453 = vector.shape_cast %452 : vector<1x32x16xf32> to vector<32x16xf32>
    %cst_266 = arith.constant dense<0.000000e+00> : vector<16x16xf32>
    %454 = tpu.matmul %416, %453, %cst_266 {dimension_numbers = #tpu.dot_dimension_numbers<[1], [0], [0], [1], [0, 0, 1, 1], [], []>} : vector<16x32xf32>, vector<32x16xf32>, vector<16x16xf32> -> vector<16x16xf32>
    %c5_267 = arith.constant 5 : index
    %c0_268 = arith.constant 0 : index
    %c0_269 = arith.constant 0 : index
    %455 = vector.load %arg21[%c5_267, %c0_268, %c0_269] : memref<6x1x16xf32, #tpu.memory_space<vmem>>, vector<1x1x16xf32>
    %456 = vector.shape_cast %455 : vector<1x1x16xf32> to vector<1x16xf32>
    %457 = vector.broadcast %456 : vector<1x16xf32> to vector<16x16xf32>
    %458 = arith.addf %454, %457 : vector<16x16xf32>
    %459 = vector.extract_strided_slice %223 {offsets = [0, 0], sizes = [1, 8], strides = [1, 1]} : vector<2x8xf32> to vector<1x8xf32>
    %460 = vector.extract_strided_slice %423 {offsets = [0, 0], sizes = [8, 16], strides = [1, 1]} : vector<16x16xf32> to vector<8x16xf32>
    %461 = vector.extract_strided_slice %437 {offsets = [0, 0], sizes = [8, 16], strides = [1, 1]} : vector<16x16xf32> to vector<8x16xf32>
    %462 = vector.extract_strided_slice %451 {offsets = [0, 0], sizes = [8, 16], strides = [1, 1]} : vector<16x16xf32> to vector<8x16xf32>
    %cst_270 = arith.constant dense<0.000000e+00> : vector<8x8xf32>
    %463 = tpu.matmul %460, %461, %cst_270 {dimension_numbers = #tpu.dot_dimension_numbers<[1], [1], [0], [0], [0, 0, 1, 0], [], []>} : vector<8x16xf32>, vector<8x16xf32>, vector<8x8xf32> -> vector<8x8xf32>
    %464 = vector.broadcast %459 : vector<1x8xf32> to vector<8x8xf32>
    %465 = arith.addf %463, %464 : vector<8x8xf32>
    %cst_271 = arith.constant dense<0xFF800000> : vector<8xf32>
    %466 = vector.multi_reduction <maximumf>, %465, %cst_271 [1] : vector<8x8xf32> to vector<8xf32>
    %467 = vector.shape_cast %466 : vector<8xf32> to vector<8x1xf32>
    %468 = vector.broadcast %467 : vector<8x1xf32> to vector<8x8xf32>
    %469 = arith.subf %465, %468 : vector<8x8xf32>
    %470 = math.exp %469 : vector<8x8xf32>
    %cst_272 = arith.constant dense<0.000000e+00> : vector<8xf32>
    %471 = vector.multi_reduction <add>, %470, %cst_272 [1] : vector<8x8xf32> to vector<8xf32>
    %472 = vector.shape_cast %471 : vector<8xf32> to vector<8x1xf32>
    %473 = tpu.reciprocal %472 {approx = true} : vector<8x1xf32> -> vector<8x1xf32>
    %474 = vector.broadcast %473 : vector<8x1xf32> to vector<8x8xf32>
    %475 = arith.mulf %470, %474 : vector<8x8xf32>
    %cst_273 = arith.constant dense<0.000000e+00> : vector<8x16xf32>
    %476 = tpu.matmul %475, %462, %cst_273 {dimension_numbers = #tpu.dot_dimension_numbers<[1], [0], [0], [1], [0, 0, 1, 1], [], []>} : vector<8x8xf32>, vector<8x16xf32>, vector<8x16xf32> -> vector<8x16xf32>
    %477 = vector.extract_strided_slice %430 {offsets = [0, 0], sizes = [8, 16], strides = [1, 1]} : vector<16x16xf32> to vector<8x16xf32>
    %478 = vector.extract_strided_slice %444 {offsets = [0, 0], sizes = [8, 16], strides = [1, 1]} : vector<16x16xf32> to vector<8x16xf32>
    %479 = vector.extract_strided_slice %458 {offsets = [0, 0], sizes = [8, 16], strides = [1, 1]} : vector<16x16xf32> to vector<8x16xf32>
    %cst_274 = arith.constant dense<0.000000e+00> : vector<8x8xf32>
    %480 = tpu.matmul %477, %478, %cst_274 {dimension_numbers = #tpu.dot_dimension_numbers<[1], [1], [0], [0], [0, 0, 1, 0], [], []>} : vector<8x16xf32>, vector<8x16xf32>, vector<8x8xf32> -> vector<8x8xf32>
    %481 = vector.broadcast %459 : vector<1x8xf32> to vector<8x8xf32>
    %482 = arith.addf %480, %481 : vector<8x8xf32>
    %cst_275 = arith.constant dense<0xFF800000> : vector<8xf32>
    %483 = vector.multi_reduction <maximumf>, %482, %cst_275 [1] : vector<8x8xf32> to vector<8xf32>
    %484 = vector.shape_cast %483 : vector<8xf32> to vector<8x1xf32>
    %485 = vector.broadcast %484 : vector<8x1xf32> to vector<8x8xf32>
    %486 = arith.subf %482, %485 : vector<8x8xf32>
    %487 = math.exp %486 : vector<8x8xf32>
    %cst_276 = arith.constant dense<0.000000e+00> : vector<8xf32>
    %488 = vector.multi_reduction <add>, %487, %cst_276 [1] : vector<8x8xf32> to vector<8xf32>
    %489 = vector.shape_cast %488 : vector<8xf32> to vector<8x1xf32>
    %490 = tpu.reciprocal %489 {approx = true} : vector<8x1xf32> -> vector<8x1xf32>
    %491 = vector.broadcast %490 : vector<8x1xf32> to vector<8x8xf32>
    %492 = arith.mulf %487, %491 : vector<8x8xf32>
    %cst_277 = arith.constant dense<0.000000e+00> : vector<8x16xf32>
    %493 = tpu.matmul %492, %479, %cst_277 {dimension_numbers = #tpu.dot_dimension_numbers<[1], [0], [0], [1], [0, 0, 1, 1], [], []>} : vector<8x8xf32>, vector<8x16xf32>, vector<8x16xf32> -> vector<8x16xf32>
    %494 = tpu.concatenate %476, %493 in 1 : vector<8x16xf32>, vector<8x16xf32> -> vector<8x32xf32>
    %495 = vector.extract_strided_slice %223 {offsets = [1, 0], sizes = [1, 8], strides = [1, 1]} : vector<2x8xf32> to vector<1x8xf32>
    %496 = vector.extract_strided_slice %423 {offsets = [8, 0], sizes = [8, 16], strides = [1, 1]} : vector<16x16xf32> to vector<8x16xf32>
    %497 = vector.extract_strided_slice %437 {offsets = [8, 0], sizes = [8, 16], strides = [1, 1]} : vector<16x16xf32> to vector<8x16xf32>
    %498 = vector.extract_strided_slice %451 {offsets = [8, 0], sizes = [8, 16], strides = [1, 1]} : vector<16x16xf32> to vector<8x16xf32>
    %cst_278 = arith.constant dense<0.000000e+00> : vector<8x8xf32>
    %499 = tpu.matmul %496, %497, %cst_278 {dimension_numbers = #tpu.dot_dimension_numbers<[1], [1], [0], [0], [0, 0, 1, 0], [], []>} : vector<8x16xf32>, vector<8x16xf32>, vector<8x8xf32> -> vector<8x8xf32>
    %500 = vector.broadcast %495 : vector<1x8xf32> to vector<8x8xf32>
    %501 = arith.addf %499, %500 : vector<8x8xf32>
    %cst_279 = arith.constant dense<0xFF800000> : vector<8xf32>
    %502 = vector.multi_reduction <maximumf>, %501, %cst_279 [1] : vector<8x8xf32> to vector<8xf32>
    %503 = vector.shape_cast %502 : vector<8xf32> to vector<8x1xf32>
    %504 = vector.broadcast %503 : vector<8x1xf32> to vector<8x8xf32>
    %505 = arith.subf %501, %504 : vector<8x8xf32>
    %506 = math.exp %505 : vector<8x8xf32>
    %cst_280 = arith.constant dense<0.000000e+00> : vector<8xf32>
    %507 = vector.multi_reduction <add>, %506, %cst_280 [1] : vector<8x8xf32> to vector<8xf32>
    %508 = vector.shape_cast %507 : vector<8xf32> to vector<8x1xf32>
    %509 = tpu.reciprocal %508 {approx = true} : vector<8x1xf32> -> vector<8x1xf32>
    %510 = vector.broadcast %509 : vector<8x1xf32> to vector<8x8xf32>
    %511 = arith.mulf %506, %510 : vector<8x8xf32>
    %cst_281 = arith.constant dense<0.000000e+00> : vector<8x16xf32>
    %512 = tpu.matmul %511, %498, %cst_281 {dimension_numbers = #tpu.dot_dimension_numbers<[1], [0], [0], [1], [0, 0, 1, 1], [], []>} : vector<8x8xf32>, vector<8x16xf32>, vector<8x16xf32> -> vector<8x16xf32>
    %513 = vector.extract_strided_slice %430 {offsets = [8, 0], sizes = [8, 16], strides = [1, 1]} : vector<16x16xf32> to vector<8x16xf32>
    %514 = vector.extract_strided_slice %444 {offsets = [8, 0], sizes = [8, 16], strides = [1, 1]} : vector<16x16xf32> to vector<8x16xf32>
    %515 = vector.extract_strided_slice %458 {offsets = [8, 0], sizes = [8, 16], strides = [1, 1]} : vector<16x16xf32> to vector<8x16xf32>
    %cst_282 = arith.constant dense<0.000000e+00> : vector<8x8xf32>
    %516 = tpu.matmul %513, %514, %cst_282 {dimension_numbers = #tpu.dot_dimension_numbers<[1], [1], [0], [0], [0, 0, 1, 0], [], []>} : vector<8x16xf32>, vector<8x16xf32>, vector<8x8xf32> -> vector<8x8xf32>
    %517 = vector.broadcast %495 : vector<1x8xf32> to vector<8x8xf32>
    %518 = arith.addf %516, %517 : vector<8x8xf32>
    %cst_283 = arith.constant dense<0xFF800000> : vector<8xf32>
    %519 = vector.multi_reduction <maximumf>, %518, %cst_283 [1] : vector<8x8xf32> to vector<8xf32>
    %520 = vector.shape_cast %519 : vector<8xf32> to vector<8x1xf32>
    %521 = vector.broadcast %520 : vector<8x1xf32> to vector<8x8xf32>
    %522 = arith.subf %518, %521 : vector<8x8xf32>
    %523 = math.exp %522 : vector<8x8xf32>
    %cst_284 = arith.constant dense<0.000000e+00> : vector<8xf32>
    %524 = vector.multi_reduction <add>, %523, %cst_284 [1] : vector<8x8xf32> to vector<8xf32>
    %525 = vector.shape_cast %524 : vector<8xf32> to vector<8x1xf32>
    %526 = tpu.reciprocal %525 {approx = true} : vector<8x1xf32> -> vector<8x1xf32>
    %527 = vector.broadcast %526 : vector<8x1xf32> to vector<8x8xf32>
    %528 = arith.mulf %523, %527 : vector<8x8xf32>
    %cst_285 = arith.constant dense<0.000000e+00> : vector<8x16xf32>
    %529 = tpu.matmul %528, %515, %cst_285 {dimension_numbers = #tpu.dot_dimension_numbers<[1], [0], [0], [1], [0, 0, 1, 1], [], []>} : vector<8x8xf32>, vector<8x16xf32>, vector<8x16xf32> -> vector<8x16xf32>
    %530 = tpu.concatenate %512, %529 in 1 : vector<8x16xf32>, vector<8x16xf32> -> vector<8x32xf32>
    %531 = tpu.concatenate %494, %530 in 0 : vector<8x32xf32>, vector<8x32xf32> -> vector<16x32xf32>
    %c0_286 = arith.constant 0 : index
    %c0_287 = arith.constant 0 : index
    %532 = vector.load %arg22[%c0_286, %c0_287] : memref<32x32xf32, #tpu.memory_space<vmem>>, vector<32x32xf32>
    %cst_288 = arith.constant dense<0.000000e+00> : vector<16x32xf32>
    %533 = tpu.matmul %531, %532, %cst_288 {dimension_numbers = #tpu.dot_dimension_numbers<[1], [0], [0], [1], [0, 0, 1, 1], [], []>} : vector<16x32xf32>, vector<32x32xf32>, vector<16x32xf32> -> vector<16x32xf32>
    %c0_289 = arith.constant 0 : index
    %c0_290 = arith.constant 0 : index
    %534 = vector.load %arg23[%c0_289, %c0_290] : memref<1x32xf32, #tpu.memory_space<vmem>>, vector<1x32xf32>
    %535 = vector.broadcast %534 : vector<1x32xf32> to vector<16x32xf32>
    %536 = arith.addf %533, %535 : vector<16x32xf32>
    %537 = arith.addf %536, %416 : vector<16x32xf32>
    %c0_291 = arith.constant 0 : index
    %c0_292 = arith.constant 0 : index
    %538 = vector.load %arg24[%c0_291, %c0_292] : memref<1x32xf32, #tpu.memory_space<vmem>>, vector<1x32xf32>
    %c0_293 = arith.constant 0 : index
    %c0_294 = arith.constant 0 : index
    %539 = vector.load %arg25[%c0_293, %c0_294] : memref<1x32xf32, #tpu.memory_space<vmem>>, vector<1x32xf32>
    %cst_295 = arith.constant dense<0.000000e+00> : vector<16xf32>
    %540 = vector.multi_reduction <add>, %537, %cst_295 [1] : vector<16x32xf32> to vector<16xf32>
    %541 = vector.shape_cast %540 : vector<16xf32> to vector<16x1xf32>
    %cst_296 = arith.constant 3.200000e+01 : f32
    %542 = vector.broadcast %cst_296 : f32 to vector<16x1xf32>
    %543 = arith.divf %541, %542 : vector<16x1xf32>
    %544 = vector.broadcast %543 : vector<16x1xf32> to vector<16x32xf32>
    %545 = arith.subf %537, %544 : vector<16x32xf32>
    %546 = arith.mulf %545, %545 : vector<16x32xf32>
    %cst_297 = arith.constant dense<0.000000e+00> : vector<16xf32>
    %547 = vector.multi_reduction <add>, %546, %cst_297 [1] : vector<16x32xf32> to vector<16xf32>
    %548 = vector.shape_cast %547 : vector<16xf32> to vector<16x1xf32>
    %cst_298 = arith.constant 3.200000e+01 : f32
    %549 = vector.broadcast %cst_298 : f32 to vector<16x1xf32>
    %550 = arith.divf %548, %549 : vector<16x1xf32>
    %551 = vector.broadcast %543 : vector<16x1xf32> to vector<16x32xf32>
    %552 = arith.subf %537, %551 : vector<16x32xf32>
    %cst_299 = arith.constant 9.99999974E-6 : f32
    %553 = vector.broadcast %cst_299 : f32 to vector<16x1xf32>
    %554 = arith.addf %550, %553 : vector<16x1xf32>
    %555 = math.rsqrt %554 : vector<16x1xf32>
    %556 = vector.broadcast %555 : vector<16x1xf32> to vector<16x32xf32>
    %557 = arith.mulf %552, %556 : vector<16x32xf32>
    %558 = vector.broadcast %538 : vector<1x32xf32> to vector<16x32xf32>
    %559 = arith.mulf %557, %558 : vector<16x32xf32>
    %560 = vector.broadcast %539 : vector<1x32xf32> to vector<16x32xf32>
    %561 = arith.addf %559, %560 : vector<16x32xf32>
    %c0_300 = arith.constant 0 : index
    %c0_301 = arith.constant 0 : index
    %562 = vector.load %arg26[%c0_300, %c0_301] : memref<32x64xf32, #tpu.memory_space<vmem>>, vector<32x64xf32>
    %cst_302 = arith.constant dense<0.000000e+00> : vector<16x64xf32>
    %563 = tpu.matmul %561, %562, %cst_302 {dimension_numbers = #tpu.dot_dimension_numbers<[1], [0], [0], [1], [0, 0, 1, 1], [], []>} : vector<16x32xf32>, vector<32x64xf32>, vector<16x64xf32> -> vector<16x64xf32>
    %c0_303 = arith.constant 0 : index
    %c0_304 = arith.constant 0 : index
    %564 = vector.load %arg27[%c0_303, %c0_304] : memref<1x64xf32, #tpu.memory_space<vmem>>, vector<1x64xf32>
    %565 = vector.broadcast %564 : vector<1x64xf32> to vector<16x64xf32>
    %566 = arith.addf %563, %565 : vector<16x64xf32>
    %567 = arith.mulf %566, %566 : vector<16x64xf32>
    %568 = arith.mulf %566, %567 : vector<16x64xf32>
    %cst_305 = arith.constant 4.471500e-02 : f32
    %569 = vector.broadcast %cst_305 : f32 to vector<16x64xf32>
    %570 = arith.mulf %569, %568 : vector<16x64xf32>
    %571 = arith.addf %566, %570 : vector<16x64xf32>
    %cst_306 = arith.constant 0.797884583 : f32
    %572 = vector.broadcast %cst_306 : f32 to vector<16x64xf32>
    %573 = arith.mulf %572, %571 : vector<16x64xf32>
    %574 = math.tanh %573 : vector<16x64xf32>
    %cst_307 = arith.constant 1.000000e+00 : f32
    %575 = vector.broadcast %cst_307 : f32 to vector<16x64xf32>
    %576 = arith.addf %575, %574 : vector<16x64xf32>
    %cst_308 = arith.constant 5.000000e-01 : f32
    %577 = vector.broadcast %cst_308 : f32 to vector<16x64xf32>
    %578 = arith.mulf %577, %576 : vector<16x64xf32>
    %579 = arith.mulf %566, %578 : vector<16x64xf32>
    %c0_309 = arith.constant 0 : index
    %c0_310 = arith.constant 0 : index
    %580 = vector.load %arg28[%c0_309, %c0_310] : memref<64x32xf32, #tpu.memory_space<vmem>>, vector<64x32xf32>
    %cst_311 = arith.constant dense<0.000000e+00> : vector<16x32xf32>
    %581 = tpu.matmul %579, %580, %cst_311 {dimension_numbers = #tpu.dot_dimension_numbers<[1], [0], [0], [1], [0, 0, 1, 1], [], []>} : vector<16x64xf32>, vector<64x32xf32>, vector<16x32xf32> -> vector<16x32xf32>
    %c0_312 = arith.constant 0 : index
    %c0_313 = arith.constant 0 : index
    %582 = vector.load %arg29[%c0_312, %c0_313] : memref<1x32xf32, #tpu.memory_space<vmem>>, vector<1x32xf32>
    %583 = vector.broadcast %582 : vector<1x32xf32> to vector<16x32xf32>
    %584 = arith.addf %581, %583 : vector<16x32xf32>
    %585 = arith.addf %584, %561 : vector<16x32xf32>
    %c0_314 = arith.constant 0 : index
    %c0_315 = arith.constant 0 : index
    %586 = vector.load %arg30[%c0_314, %c0_315] : memref<1x32xf32, #tpu.memory_space<vmem>>, vector<1x32xf32>
    %c0_316 = arith.constant 0 : index
    %c0_317 = arith.constant 0 : index
    %587 = vector.load %arg31[%c0_316, %c0_317] : memref<1x32xf32, #tpu.memory_space<vmem>>, vector<1x32xf32>
    %cst_318 = arith.constant dense<0.000000e+00> : vector<16xf32>
    %588 = vector.multi_reduction <add>, %585, %cst_318 [1] : vector<16x32xf32> to vector<16xf32>
    %589 = vector.shape_cast %588 : vector<16xf32> to vector<16x1xf32>
    %cst_319 = arith.constant 3.200000e+01 : f32
    %590 = vector.broadcast %cst_319 : f32 to vector<16x1xf32>
    %591 = arith.divf %589, %590 : vector<16x1xf32>
    %592 = vector.broadcast %591 : vector<16x1xf32> to vector<16x32xf32>
    %593 = arith.subf %585, %592 : vector<16x32xf32>
    %594 = arith.mulf %593, %593 : vector<16x32xf32>
    %cst_320 = arith.constant dense<0.000000e+00> : vector<16xf32>
    %595 = vector.multi_reduction <add>, %594, %cst_320 [1] : vector<16x32xf32> to vector<16xf32>
    %596 = vector.shape_cast %595 : vector<16xf32> to vector<16x1xf32>
    %cst_321 = arith.constant 3.200000e+01 : f32
    %597 = vector.broadcast %cst_321 : f32 to vector<16x1xf32>
    %598 = arith.divf %596, %597 : vector<16x1xf32>
    %599 = vector.broadcast %591 : vector<16x1xf32> to vector<16x32xf32>
    %600 = arith.subf %585, %599 : vector<16x32xf32>
    %cst_322 = arith.constant 9.99999974E-6 : f32
    %601 = vector.broadcast %cst_322 : f32 to vector<16x1xf32>
    %602 = arith.addf %598, %601 : vector<16x1xf32>
    %603 = math.rsqrt %602 : vector<16x1xf32>
    %604 = vector.broadcast %603 : vector<16x1xf32> to vector<16x32xf32>
    %605 = arith.mulf %600, %604 : vector<16x32xf32>
    %606 = vector.broadcast %586 : vector<1x32xf32> to vector<16x32xf32>
    %607 = arith.mulf %605, %606 : vector<16x32xf32>
    %608 = vector.broadcast %587 : vector<1x32xf32> to vector<16x32xf32>
    %609 = arith.addf %607, %608 : vector<16x32xf32>
    %610 = vector.extract_strided_slice %609 {offsets = [0, 0], sizes = [1, 32], strides = [1, 1]} : vector<16x32xf32> to vector<1x32xf32>
    %611 = vector.extract_strided_slice %609 {offsets = [8, 0], sizes = [1, 32], strides = [1, 1]} : vector<16x32xf32> to vector<1x32xf32>
    %612 = tpu.concatenate %610, %611 in 0 : vector<1x32xf32>, vector<1x32xf32> -> vector<2x32xf32>
    %c0_323 = arith.constant 0 : index
    %c0_324 = arith.constant 0 : index
    %613 = vector.load %arg32[%c0_323, %c0_324] : memref<32x128xf32, #tpu.memory_space<vmem>>, vector<32x128xf32>
    %cst_325 = arith.constant dense<0.000000e+00> : vector<2x128xf32>
    %614 = tpu.matmul %612, %613, %cst_325 {dimension_numbers = #tpu.dot_dimension_numbers<[1], [0], [0], [1], [0, 0, 1, 1], [], []>} : vector<2x32xf32>, vector<32x128xf32>, vector<2x128xf32> -> vector<2x128xf32>
    %c0_326 = arith.constant 0 : index
    %c0_327 = arith.constant 0 : index
    %615 = vector.load %arg33[%c0_326, %c0_327] : memref<1x128xf32, #tpu.memory_space<vmem>>, vector<1x128xf32>
    %616 = vector.broadcast %615 : vector<1x128xf32> to vector<2x128xf32>
    %617 = arith.addf %614, %616 : vector<2x128xf32>
    %c0_328 = arith.constant 0 : index
    %c0_329 = arith.constant 0 : index
    %618 = vector.load %arg34[%c0_328, %c0_329] : memref<2x128xf32, #tpu.memory_space<vmem>>, vector<2x128xf32>
    tpu.vector_store %arg34[%c0_328, %c0_329], %617 {strides = array<i32>} : memref<2x128xf32, #tpu.memory_space<vmem>>, vector<2x128xf32>,
    return
  }
}

</mosaic_0001>

<bundles_post_ra>
// kernel: roberta_regression_forward.1
= control target key start
LH: loop header
LB: loop body
LE: loop exit
PB: predicated region body
PF: predicated region fallthrough
CT: control target
= control target key end

     0   :  { %s4593_s6 = smov 1   ;;  %s4594_s10 = smov 2   ;;  %s5317_s0 = inlined_call_operand.smem [shape: u32[35], index: -1, kind: input, shape index: {}] }
   0x1   :  { %s4641_s5 = sld [smem:[%s5317_s0]]   ;;  %s4595_s14 = smov 3  }
   0x2   :  { %s4646_s9 = sld [smem:[%s5317_s0 + %s4593_s6]]   ;;  %s4596_s18 = smov 4  }
   0x3   :  { %s4651_s13 = sld [smem:[%s5317_s0 + %s4594_s10]]   ;;  %s4597_s22 = smov 5  }
   0x4   :  { %s4656_s17 = sld [smem:[%s5317_s0 + %s4595_s14]]   ;;  %s4598_s26 = smov 6  }
   0x5   :  { %s4661_s21 = sld [smem:[%s5317_s0 + %s4596_s18]]   ;;  %s4599_s30 = smov 7  }
   0x6   :  { %s4666_s25 = sld [smem:[%s5317_s0 + %s4597_s22]]   ;;  %s4600_s4 = smov 8  }
   0x7   :  { %s4671_s29 = sld [smem:[%s5317_s0 + %s4598_s26]]   ;;  %s4601_s10 = smov 9  }
   0x8   :  { %s4676_s3 = sld [smem:[%s5317_s0 + %s4599_s30]]   ;;  %s4602_s15 = smov 10  }
   0x9   :  { %s4681_s8 = sld [smem:[%s5317_s0 + %s4600_s4]]   ;;  %s4603_s20 = smov 11  }
   0xa   :  { %s4686_s14 = sld [smem:[%s5317_s0 + %s4601_s10]]   ;;  %s4604_s26 = smov 12  }
   0xb   :  { %s4691_s19 = sld [smem:[%s5317_s0 + %s4602_s15]]   ;;  %s4605_s1 = smov 13  }
   0xc   :  { %s4696_s24 = sld [smem:[%s5317_s0 + %s4603_s20]]   ;;  %s4606_s7 = smov 14  }
   0xd   :  { %s4701_s30 = sld [smem:[%s5317_s0 + %s4604_s26]]   ;;  %s4607_s15 = smov 15  }
   0xe   :  { %s4706_s6 = sld [smem:[%s5317_s0 + %s4605_s1]]   ;;  %s4608_s22 = smov 16  }
   0xf   :  { %s4711_s12 = sld [smem:[%s5317_s0 + %s4606_s7]]   ;;  %s4609_s28 = smov 17  }
  0x10   :  { %s4716_s20 = sld [smem:[%s5317_s0 + %s4607_s15]]   ;;  %s4610_s7 = smov 18  }
  0x11   :  { %s4721_s27 = sld [smem:[%s5317_s0 + %s4608_s22]]   ;;  %s4611_s15 = smov 19  }
  0x12   :  { %s4726_s4 = sld [smem:[%s5317_s0 + %s4609_s28]]   ;;  %s4612_s22 = smov 20  }
  0x13   :  { %s4613_s28 = smov 21  }
  0x14   :  { %5325 = sst [smem:[#allocation11_spill]] %s4706_s6 }
  0x15   :  { %s4731_s6 = sld [smem:[%s5317_s0 + %s4610_s7]]   ;;  %s4614_s7 = smov 22  }
  0x16   :  { %5326 = sst [smem:[#allocation12_spill]] %s4716_s20 }
  0x17   :  { %5327 = sst [smem:[#allocation13_spill]] %s4721_s27 }
  0x18   :  { %5328 = sst [smem:[#allocation14_spill]] %s4726_s4 }
  0x19   :  { %s4736_s20 = sld [smem:[%s5317_s0 + %s4611_s15]]   ;;  %s4615_s15 = smov 23  }
  0x1a   :  { %s4741_s27 = sld [smem:[%s5317_s0 + %s4612_s22]]   ;;  %s4616_s22 = smov 24  }
  0x1b   :  { %5329 = sst [smem:[#allocation15_spill]] %s4731_s6 }
  0x1c   :  { %s4746_s4 = sld [smem:[%s5317_s0 + %s4613_s28]]   ;;  %s4617_s28 = smov 25  }
  0x1d   :  { %s4751_s6 = sld [smem:[%s5317_s0 + %s4614_s7]]   ;;  %s4618_s7 = smov 26  }
  0x1f   :  { %5330 = sst [smem:[#allocation16_spill]] %s4736_s20 }
  0x20   :  { %5331 = sst [smem:[#allocation17_spill]] %s4741_s27 }
  0x21   :  { %s4756_s20 = sld [smem:[%s5317_s0 + %s4615_s15]]   ;;  %s4619_s15 = smov 27  }
  0x22   :  { %5332 = sst [smem:[#allocation18_spill]] %s4746_s4 }
  0x23   :  { %5333 = sst [smem:[#allocation19_spill]] %s4751_s6 }
  0x24   :  { %s4761_s27 = sld [smem:[%s5317_s0 + %s4616_s22]]   ;;  %s4620_s22 = smov 28  }
  0x25   :  { %s4766_s4 = sld [smem:[%s5317_s0 + %s4617_s28]]   ;;  %s4621_s28 = smov 29  }
  0x26   :  { %s4771_s6 = sld [smem:[%s5317_s0 + %s4618_s7]]   ;;  %s4622_s7 = smov 30  }
  0x27   :  { %5334 = sst [smem:[#allocation20_spill]] %s4756_s20 }
  0x28   :  { %s4776_s20 = sld [smem:[%s5317_s0 + %s4619_s15]]   ;;  %s4623_s15 = smov 31  }
  0x2a   :  { %5335 = sst [smem:[#allocation21_spill]] %s4761_s27 }
  0x2b   :  { %5336 = sst [smem:[#allocation22_spill]] %s4766_s4 }
  0x2c   :  { %5337 = sst [smem:[#allocation23_spill]] %s4771_s6 }
  0x2d   :  { %s4781_s27 = sld [smem:[%s5317_s0 + %s4620_s22]]   ;;  %s4624_s22 = smov 32  }
  0x2e   :  { %5338 = sst [smem:[#allocation24_spill]] %s4776_s20 }
  0x2f   :  { %s4786_s4 = sld [smem:[%s5317_s0 + %s4621_s28]]   ;;  %s4625_s28 = smov 33  }
  0x30   :  { %s4791_s6 = sld [smem:[%s5317_s0 + %s4622_s7]]   ;;  %s4626_s7 = smov 34  }
  0x31   :  { %s4796_s20 = sld [smem:[%s5317_s0 + %s4623_s15]]  }
  0x33   :  { %5339 = sst [smem:[#allocation25_spill]] %s4781_s27 }
  0x34   :  { %s4801_s27 = sld [smem:[%s5317_s0 + %s4624_s22]]  }
  0x35   :  { %5340 = sst [smem:[#allocation26_spill]] %s4786_s4 }
  0x36   :  { %5341 = sst [smem:[#allocation27_spill]] %s4791_s6 }
  0x37   :  { %5342 = sst [smem:[#allocation28_spill]] %s4796_s20 }
  0x38   :  { %s4806_s4 = sld [smem:[%s5317_s0 + %s4625_s28]]  }
  0x39   :  { %s4811_s6 = sld [smem:[%s5317_s0 + %s4626_s7]]  }
  0x3a   :  { %5343 = sst [smem:[#allocation29_spill]] %s4801_s27 }
  0x3e   :  { %5344 = sst [smem:[#allocation30_spill]] %s4806_s4 }
  0x3f   :  { %5345 = sst [smem:[#allocation31_spill]] %s4811_s6 }
  0x40   :  { %74 = vsyncpa [#allocation4], 0 }
  0x41   :  { %75 = vsyncpa [#allocation6], 0 }
  0x42   :  { %76 = vsyncpa [#allocation3], 0  ;;  %s83_s15 = sshll.u32 %s4641_s5, 4  ;;  %s93_s16 = sshll.u32 %s4646_s9, 4  ;;  %s84_s15 = int_to_ptr.vmem [resolvable:$true] %s83_s15  ;;  %s94_s16 = int_to_ptr.vmem [resolvable:$true] %s93_s16 }
  0x43   :  { %s4543_s18 = scalar_lea.vmem %s84_s15, 32  ;;  %p4548_p1 = scmp.lt.s32.totalorder %s84_s15, %s84_s15 }
  0x44   :  { %p4544_p0 = scmp.ne.s32.totalorder %s84_s15, %s4543_s18  ;;  %p4549_p2 = scmp.lt.s32.totalorder %s4543_s18, %s4543_s18 }
  0x46   :  { %p4550_p3 = por %p4549_p2, %p4548_p1 }
  0x48   :  { %p4551_p4 = pnand %p4550_p3, %p4544_p0 }
  0x4a   :  { %4554 = shalt.err (!%p4551_p4)
}
  0x4b   :  { %s4627_s22 = smov [#allocation2]   ;;  %s4555_s0 = scalar_lea.vmem %s94_s16, 32 }
  0x4c   :  { %86 = dma.vmem_to_smem %s84_s15, 32, %s4627_s22, [#allocation4]  }
  0x4d   :  { %p4556_p5 = scmp.ne.s32.totalorder %s94_s16, %s4555_s0  ;;  %p4560_p6 = scmp.lt.s32.totalorder %s94_s16, %s94_s16 }
  0x4e   :  { %p4561_p7 = scmp.lt.s32.totalorder %s4555_s0, %s4555_s0 }
  0x50   :  { %p4562_p8 = por %p4561_p7, %p4560_p6 }
  0x52   :  { %p4563_p9 = pnand %p4562_p8, %p4556_p5 }
  0x54   :  { %4566 = shalt.err (!%p4563_p9)
}
  0x55   :  { %s4628_s5 = smov [#allocation5]  }
  0x56   :  { %96 = dma.vmem_to_smem %s94_s16, 32, %s4628_s5, [#allocation6]  }
  0x57   :  { %4587 = dma.done.wait [#allocation4], 32  }
  0x58   :  { %4588 = vsyncadd [#allocation4], 4294967264 }
  0x59   :  { %4589 = dma.done.wait [#allocation6], 32  }
  0x5a   :  { %4590 = vsyncadd [#allocation6], 4294967264 }
  0x5b   :  { %167 = sfence }
  0x5c   :  { %s4815_s9 = sld [smem:[#allocation2]]  ;;  %v4832_v2 = vld [vmem:[%s4666_s25] sm:$0x1]  ;;  %vm417_vm0 = vcmask 1040384   ;;  %vm419_vm1 = vcmask 1041408   ;;  %vm421_vm2 = vcmask 1042432  }
  0x5d   :  { %s170_s23 = sld [smem:[#allocation5]]  ;;  %vm423_vm3 = vcmask 1043456   ;;  %vm425_vm4 = vcmask 1044480   ;;  %vm427_vm5 = vcmask 1045504   ;;  %vm429_vm6 = vcmask 1046528  }
  0x5e   :  { %s3814_s26 = sld [smem:[#allocation2 + $0x1]]  ;;  %vm440_vm7 = vcmask 261120   ;;  %vm4630_vm8 = vmmov 0   ;;  %vm1024_vm9 = vcmask 130048   ;;  %vm1101_vm10 = vcmask 64512  }
  0x5f   :  { %s3815_s28 = sld [smem:[#allocation5 + $0x1]]  ;;  %vm1943_vm11 = vcmask 523264  }
  0x60   :  { %s3817_s1 = sld [smem:[#allocation5 + $0x2]] }
  0x61   :  { %s4819_s7 = sld [smem:[#allocation2 + $0x2]] }
  0x62   :  { %s3819_s11 = sld [smem:[#allocation5 + $0x3]] }
  0x63   :  { %s171_s10 = smul.u32 %s170_s23, %s170_s23  ;;  %s4822_s16 = sld [smem:[#allocation2 + $0x3]] }
  0x64   :  { %s188_s15 = scalar_lea.vmem %s4656_s17, %s3814_s26  ;;  %s4824_s6 = sld [smem:[#allocation2 + $0x4]] }
  0x65   :  { %s172_s18 = sadd.s32 1, %s171_s10  ;;  %s183_s22 = sadd.s32 %s3815_s28, %s170_s23  ;;  %v189_v0 = vld [vmem:[%s188_s15] sm:$0x1] }
  0x66   :  { %p173_p10 = scmp.lt.s32.totalorder %s172_s18, 9  ;;  %s184_s0 = smul.u32 %s3815_s28, %s183_s22 }
  0x67   :  { %s196_s5 = sadd.s32 %s3817_s1, %s183_s22  ;;  %s201_s20 = scalar_lea.vmem %s4656_s17, %s4819_s7 }
  0x68   :  { %s5369_s18 = smov (!%p173_p10, %s172_s18), 9  ;;  %s185_s2 = sadd.s32 1, %s184_s0  ;;  %v202_v4 = vld [vmem:[%s201_s20] sm:$0x1] }
  0x69   :  { %s197_s4 = smul.u32 %s3817_s1, %s196_s5  ;;  %p186_p11 = scmp.lt.s32.totalorder %s185_s2, 9 }
  0x6a   :  { %s209_s27 = sadd.s32 %s3819_s11, %s196_s5  ;;  %s177_s10 = scalar_lea.vmem %s4661_s21, %s5369_s18 }
  0x6b   :  { %s198_s26 = sadd.s32 1, %s197_s4  ;;  %s5371_s2 = smov (!%p186_p11, %s185_s2), 9  ;;  %v178_v7 = vld [vmem:[%s177_s10] sm:$0x1] }
  0x6c   :  { %p199_p12 = scmp.lt.s32.totalorder %s198_s26, 9  ;;  %s210_s23 = smul.u32 %s3819_s11, %s209_s27 }
  0x6d   :  { %s190_s28 = scalar_lea.vmem %s4661_s21, %s5371_s2  ;;  %s3821_s1 = sld [smem:[#allocation5 + $0x4]] }
  0x6e   :  { %s5373_s26 = smov (!%p199_p12, %s198_s26), 9  ;;  %v191_v1 = vld [vmem:[%s190_s28] sm:$0x1]  ;;  %s211_s22 = sadd.s32 1, %s210_s23 }
  0x6f   :  { %s203_s0 = scalar_lea.vmem %s4661_s21, %s5373_s26  ;;  %p212_p13 = scmp.lt.s32.totalorder %s211_s22, 9  ;;  %v192_v3 = vadd.f32 %v191_v1, %v189_v0 }
  0x70   :  { %s214_s7 = scalar_lea.vmem %s4656_s17, %s4822_s16  ;;  %s4836_s4 = sld [smem:[#allocation2 + $0x5]]  ;;  %v204_v5 = vld [vmem:[%s203_s0] sm:$0x1] }
  0x71   :  { %s5375_s22 = smov (!%p212_p13, %s211_s22), 9  ;;  %s5346_s2 = scalar_lea.vmem %s4656_s17, %s4815_s9  ;;  %v205_v8 = vadd.f32 %v204_v5, %v202_v4  ;;  %v215_v9 = vld [vmem:[%s214_s7] sm:$0x1]  ;;  %v193_v12 = vadd.f32 %v192_v3, %v4832_v2 }
  0x72   :  { %v176_v6 = vld [vmem:[%s5346_s2] sm:$0x1]  ;;  %s3823_s11 = sld [smem:[#allocation5 + $0x5]]  ;;  %s216_s15 = scalar_lea.vmem %s4661_s21, %s5375_s22 }
  0x73   :  { %s4842_s18 = sld [smem:[#allocation2 + $0x6]]  ;;  %v217_v10 = vld [vmem:[%s216_s15] sm:$0x1]  ;;  %s222_s25 = sadd.s32 %s3821_s1, %s209_s27  ;;  %v179_v11 = vadd.f32 %v178_v7, %v176_v6  ;;  %v206_v14 = vadd.f32 %v205_v8, %v4832_v2  ;;  %v376_v16 = vrot.slane %v193_v12, 7 }
  0x74   :  { %s4844_s20 = sld [smem:[#allocation5 + $0x6]]  ;;  %s223_s9 = smul.u32 %s3821_s1, %s222_s25  ;;  %v218_v13 = vadd.f32 %v217_v10, %v215_v9 }
  0x75   :  { %s4847_s16 = sld [smem:[#allocation2 + $0x7]]  ;;  %s227_s5 = scalar_lea.vmem %s4656_s17, %s4824_s6  ;;  %v180_v15 = vadd.f32 %v179_v11, %v4832_v2  ;;  %v379_v19 = vrot.slane %v206_v14, 6 }
  0x76   :  { %s4851_s26 = sld [smem:[#allocation5 + $0x7]]  ;;  %s224_s23 = sadd.s32 1, %s223_s9  ;;  %v219_v17 = vadd.f32 %v218_v13, %v4832_v2  ;;  %v228_v18 = vld [vmem:[%s227_s5] sm:$0x1] }
  0x77   :  { %s240_s10 = scalar_lea.vmem %s4656_s17, %s4836_s4  ;;  %p225_p0 = scmp.lt.s32.totalorder %s224_s23, 9  ;;  %v418_v21 = vsel %vm417_vm0, %v180_v15, %v376_v16 }
  0x78   :  { %s235_s27 = sadd.s32 %s3823_s11, %s222_s25  ;;  %v241_v23 = vld [vmem:[%s240_s10] sm:$0x1]  ;;  %v382_v24 = vrot.slane %v219_v17, 5  ;;  %v420_v26 = vsel %vm419_vm1, %v418_v21, %v379_v19  ;;  %s4875_s9 = sld [smem:[#allocation5 + $0x80]] }
  0x79   :  { %s236_s28 = smul.u32 %s3823_s11, %s235_s27  ;;  %s253_s22 = scalar_lea.vmem %s4656_s17, %s4842_s18 }
  0x7a   :  { %s5377_s23 = smov (!%p225_p0, %s224_s23), 9  ;;  %s248_s1 = sadd.s32 %s4844_s20, %s235_s27  ;;  %v254_v30 = vld [vmem:[%s253_s22] sm:$0x1]  ;;  %v422_v31 = vsel %vm421_vm2, %v420_v26, %v382_v24 }
  0x7b   :  { %s237_s6 = sadd.s32 1, %s236_s28  ;;  %s229_s0 = scalar_lea.vmem %s4661_s21, %s5377_s23 }
  0x7c   :  { %p238_p1 = scmp.lt.s32.totalorder %s237_s6, 9  ;;  %v230_v20 = vld [vmem:[%s229_s0] sm:$0x1]  ;;  %s249_s7 = smul.u32 %s4844_s20, %s248_s1 }
  0x7d   :  { %s261_s4 = sadd.s32 %s4851_s26, %s248_s1  ;;  %v231_v22 = vadd.f32 %v230_v20, %v228_v18  ;;  %s266_s20 = scalar_lea.vmem %s4656_s17, %s4847_s16 }
  0x7e   :  { %s5379_s6 = smov (!%p238_p1, %s237_s6), 9  ;;  %s250_s2 = sadd.s32 1, %s249_s7  ;;  %v267_v35 = vld [vmem:[%s266_s20] sm:$0x1] }
  0x7f   :  { %s262_s11 = smul.u32 %s4851_s26, %s261_s4  ;;  %v232_v25 = vadd.f32 %v231_v22, %v4832_v2  ;;  %s242_s15 = scalar_lea.vmem %s4661_s21, %s5379_s6 }
  0x80   :  { %p251_p2 = scmp.lt.s32.totalorder %s250_s2, 9  ;;  %v243_v27 = vld [vmem:[%s242_s15] sm:$0x1]  ;;  %s4879_s26 = sld [smem:[#allocation2 + $0x80]] }
  0x81   :  { %s263_s25 = sadd.s32 1, %s262_s11  ;;  %v244_v28 = vadd.f32 %v243_v27, %v241_v23  ;;  %v385_v29 = vrot.slane %v232_v25, 4  ;;  %s4883_s16 = sld [smem:[#allocation5 + $0x81]] }
  0x82   :  { %s5381_s2 = smov (!%p251_p2, %s250_s2), 9  ;;  %p264_p3 = scmp.lt.s32.totalorder %s263_s25, 9 }
  0x83   :  { %v245_v32 = vadd.f32 %v244_v28, %v4832_v2  ;;  %s255_s5 = scalar_lea.vmem %s4661_s21, %s5381_s2  ;;  %v424_v37 = vsel %vm423_vm3, %v422_v31, %v385_v29  ;;  %s4886_s23 = sld [smem:[#allocation2 + $0x81]] }
  0x84   :  { %v256_v33 = vld [vmem:[%s255_s5] sm:$0x1]  ;;  %s5383_s25 = smov (!%p264_p3, %s263_s25), 9  ;;  %s274_s10 = smul.u32 %s4875_s9, %s4875_s9 }
  0x85   :  { %v257_v34 = vadd.f32 %v256_v33, %v254_v30  ;;  %v388_v36 = vrot.slane %v245_v32, 3  ;;  %s268_s18 = scalar_lea.vmem %s4661_s21, %s5383_s25  ;;  %s3833_s27 = sld [smem:[#allocation5 + $0x82]] }
  0x86   :  { %v269_v39 = vld [vmem:[%s268_s18] sm:$0x1]  ;;  %s275_s28 = sadd.s32 1, %s274_s10  ;;  %s4892_s22 = sld [smem:[#allocation5 + $0x83]] }
  0x87   :  { %v258_v38 = vadd.f32 %v257_v34, %v4832_v2  ;;  %v270_v40 = vadd.f32 %v269_v39, %v267_v35  ;;  %v426_v41 = vsel %vm425_vm4, %v424_v37, %v388_v36  ;;  %p276_p4 = scmp.lt.s32.totalorder %s275_s28, 9  ;;  %s278_s6 = scalar_lea.vmem %s4656_s17, %s4879_s26 }
  0x88   :  { %s286_s1 = sadd.s32 %s4883_s16, %s4875_s9  ;;  %s4899_s0 = sld [smem:[#allocation2 + $0x82]]  ;;  %v279_v53 = vld [vmem:[%s278_s6] sm:$0x1] }
  0x89   :  { %v391_v42 = vrot.slane %v258_v38, 2  ;;  %v271_v43 = vadd.f32 %v270_v40, %v4832_v2  ;;  %s5385_s28 = smov (!%p276_p4, %s275_s28), 9  ;;  %s287_s7 = smul.u32 %s4883_s16, %s286_s1 }
  0x8a   :  { %s4909_s11 = sld [smem:[#allocation2 + $0x83]]  ;;  %s291_s25 = scalar_lea.vmem %s4656_s17, %s4886_s23 }
  0x8b   :  { %v428_v44 = vsel %vm427_vm5, %v426_v41, %v391_v42  ;;  %v394_v45 = vrot.slane %v271_v43, 1  ;;  %s299_s4 = sadd.s32 %s3833_s27, %s286_s1  ;;  %s288_s15 = sadd.s32 1, %s287_s7  ;;  %v292_v48 = vld [vmem:[%s291_s25] sm:$0x1]  ;;  %v491_v41 = vld [vmem:[%s4681_s8 + $0x18] sm:$0xff]  ;;  %v490_v43 = vld [vmem:[%s4681_s8 + $0x10] sm:$0xff] }
  0x8c   :  { %s300_s2 = smul.u32 %s3833_s27, %s299_s4  ;;  %p289_p5 = scmp.lt.s32.totalorder %s288_s15, 9  ;;  %v3853_v42 = vld [vmem:[%s4681_s8 + $0x38] sm:$0xff]  ;;  %4138 = vmatprep.subr.mxu0 %v491_v41 }
  0x8d   :  { %v4904_v46 = vsel %vm429_vm6, %v428_v44, %v394_v45  ;;  %s4914_s9 = sadd.s32 %s4892_s22, %s299_s4  ;;  %s4921_s10 = sld [smem:[#allocation2 + $0x84]]  ;;  %4149 = vmatprep.subr.mxu1 %v3853_v42  ;;  %4139 = vmatpush3.msra.mxu0 %v491_v41  ;;  %v3852_v44 = vld [vmem:[%s4681_s8 + $0x30] sm:$0xff]  ;;  %v489_v45 = vld [vmem:[%s4681_s8 + $0x8] sm:$0xff] }
  0x8e   :  { %v441_v47 = vsel %vm440_vm7, %v4904_v46, 0.0  ;;  %s301_s20 = sadd.s32 1, %s300_s2  ;;  %s5387_s15 = smov (!%p289_p5, %s288_s15), 9  ;;  %4150 = vmatpush3.msra.mxu1 %v3853_v42  ;;  %4140 = vmatprep.subr.mxu0 %v490_v43 }
  0x8f   :  { %442 = vadd.xlane.f32.xlu0 %v441_v47  ;;  %p302_p6 = scmp.lt.s32.totalorder %s301_s20, 9  ;;  %s293_s5 = scalar_lea.vmem %s4661_s21, %s5387_s15  ;;  %4151 = vmatprep.subr.mxu1 %v3852_v44  ;;  %v488_v47 = vld [vmem:[%s4681_s8] sm:$0xff] }
  0x90   :  { %s313_s18 = smul.u32 %s4892_s22, %s4914_s9  ;;  %s304_s16 = scalar_lea.vmem %s4656_s17, %s4899_s0  ;;  %v294_v49 = vld [vmem:[%s293_s5] sm:$0x1]  ;;  %4141 = vmatpush3.msra.mxu0 %v490_v43  ;;  %4152 = vmatpush3.msra.mxu1 %v3852_v44 }
  0x91   :  { %s5389_s20 = smov (!%p302_p6, %s301_s20), 9  ;;  %s3837_s1 = sld [smem:[#allocation5 + $0x84]]  ;;  %v295_v50 = vadd.f32 %v294_v49, %v292_v48  ;;  %v305_v51 = vld [vmem:[%s304_s16] sm:$0x1]  ;;  %4142 = vmatprep.subr.mxu0 %v489_v45  ;;  %v3861_v49 = vld [vmem:[%s4681_s8 + $0x58] sm:$0xff] }
  0x92   :  { %s306_s23 = scalar_lea.vmem %s4661_s21, %s5389_s20  ;;  %s314_s27 = sadd.s32 1, %s313_s18  ;;  %4143 = vmatpush3.msra.mxu0 %v489_v45  ;;  %v3850_v48 = vld [vmem:[%s4681_s8 + $0x20] sm:$0xff]  ;;  %v1020_v45 = vlaneseq }
  0x93   :  { %p315_p7 = scmp.lt.s32.totalorder %s314_s27, 9  ;;  %s280_s7 = scalar_lea.vmem %s4661_s21, %s5385_s28  ;;  %v307_v52 = vld [vmem:[%s306_s23] sm:$0x1]  ;;  %v296_v59 = vadd.f32 %v295_v50, %v4832_v2  ;;  %4144 = vmatprep.subr.mxu0 %v488_v47  ;;  %v3869_v50 = vld [vmem:[%s4681_s8 + $0x78] sm:$0xff] }
  0x94   :  { %s4926_s4 = sld [smem:[#allocation2 + $0x85]]  ;;  %s317_s22 = scalar_lea.vmem %s4656_s17, %s4909_s11  ;;  %v281_v54 = vld [vmem:[%s280_s7] sm:$0x1]  ;;  %v308_v55 = vadd.f32 %v307_v52, %v305_v51  ;;  %4145 = vmatpush3.msra.mxu0 %v488_v47  ;;  %v1021_v47 = vshrl.u32 %v1020_v45, 7 }
  0x95   :  { %s5391_s27 = smov (!%p315_p7, %s314_s27), 9  ;;  %s4930_s0 = sld [smem:[#allocation5 + $0x85]]  ;;  %v318_v56 = vld [vmem:[%s317_s22] sm:$0x1]  ;;  %v282_v58 = vadd.f32 %v281_v54, %v279_v53  ;;  %v397_v63 = vrot.slane %v296_v59, 7  ;;  %4160 = vmatprep.subr.mxu0 %v3861_v49 }
  0x96   :  { %s319_s2 = scalar_lea.vmem %s4661_s21, %s5391_s27  ;;  %s4936_s28 = sld [smem:[#allocation2 + $0x86]]  ;;  %v309_v61 = vadd.f32 %v308_v55, %v4832_v2  ;;  %v3844_v55 = vld [vmem:[%s4671_s29] ss:$0 sm:$0xff] }
  0x97   :  { %s4938_s15 = sld [smem:[#allocation5 + $0x86]]  ;;  %v320_v57 = vld [vmem:[%s319_s2] sm:$0x1]  ;;  %s325_s25 = sadd.s32 %s3837_s1, %s4914_s9  ;;  %v283_v62 = vadd.f32 %v282_v58, %v4832_v2 }
  0x98   :  { %s330_s11 = scalar_lea.vmem %s4656_s17, %s4921_s10  ;;  %s326_s26 = smul.u32 %s3837_s1, %s325_s25  ;;  %v321_v60 = vadd.f32 %v320_v57, %v318_v56  ;;  %v400_v3 = vrot.slane %v309_v61, 6  ;;  %v3845_v57 = vld [vmem:[%s4676_s3] ss:$0 sm:$0xff] }
  0x99   :  { %s4944_s6 = sld [smem:[#allocation2 + $0x87]]  ;;  %v331_v1 = vld [vmem:[%s330_s11] sm:$0x1]  ;;  %v431_v5 = vsel %vm417_vm0, %v283_v62, %v397_v63 }
  0x9a   :  { %s343_s20 = scalar_lea.vmem %s4656_s17, %s4926_s4  ;;  %s3843_s5 = sld [smem:[#allocation5 + $0x87]]  ;;  %v322_v0 = vadd.f32 %v321_v60, %v4832_v2  ;;  %v432_v10 = vsel %vm419_vm1, %v431_v5, %v400_v3  ;;  %v3868_v5 = vld [vmem:[%s4681_s8 + $0x70] sm:$0xff]  ;;  %v484_v43 = vld [vmem:[%s4651_s13] sm:$0x3] }
  0x9b   :  { %s327_s18 = sadd.s32 1, %s326_s26  ;;  %s338_s16 = sadd.s32 %s4930_s0, %s325_s25  ;;  %v344_v7 = vld [vmem:[%s343_s20] sm:$0x1]  ;;  %v485_v44 = vcvt.s32.f32 %v484_v43 }
  0x9c   :  { %p328_p8 = scmp.lt.s32.totalorder %s327_s18, 9  ;;  %s339_s9 = smul.u32 %s4930_s0, %s338_s16  ;;  %v403_v8 = vrot.slane %v322_v0, 5 }
  0x9d   :  { %s351_s10 = sadd.s32 %s4938_s15, %s338_s16  ;;  %s356_s23 = scalar_lea.vmem %s4656_s17, %s4936_s28 }
  0x9e   :  { %s5393_s18 = smov (!%p328_p8, %s327_s18), 9  ;;  %s340_s27 = sadd.s32 1, %s339_s9  ;;  %v357_v13 = vld [vmem:[%s356_s23] sm:$0x1]  ;;  %v433_v15 = vsel %vm421_vm2, %v432_v10, %v403_v8  ;;  %v3877_v10 = vld [vmem:[%s4681_s8 + $0x98] sm:$0xff] }
  0x9f   :  { %s352_s1 = smul.u32 %s4938_s15, %s351_s10  ;;  %s332_s7 = scalar_lea.vmem %s4661_s21, %s5393_s18  ;;  %v3858_v8 = vld [vmem:[%s4681_s8 + $0x40] sm:$0xff] }
  0xa0   :  { %p341_p9 = scmp.lt.s32.totalorder %s340_s27, 9  ;;  %v333_v4 = vld [vmem:[%s332_s7] sm:$0x1]  ;;  %s364_s22 = sadd.s32 %s3843_s5, %s351_s10 }
  0xa1   :  { %s353_s4 = sadd.s32 1, %s352_s1  ;;  %v334_v6 = vadd.f32 %v333_v4, %v331_v1  ;;  %s365_s0 = smul.u32 %s3843_s5, %s364_s22  ;;  %v3860_v4 = vld [vmem:[%s4681_s8 + $0x50] sm:$0xff] }
  0xa2   :  { %s5395_s27 = smov (!%p341_p9, %s340_s27), 9  ;;  %p354_p10 = scmp.lt.s32.totalorder %s353_s4, 9 }
  0xa3   :  { %v335_v9 = vadd.f32 %v334_v6, %v4832_v2  ;;  %s345_s2 = scalar_lea.vmem %s4661_s21, %s5395_s27  ;;  %s366_s28 = sadd.s32 1, %s365_s0  ;;  %v3859_v6 = vld [vmem:[%s4681_s8 + $0x48] sm:$0xff] }
  0xa4   :  { %v346_v11 = vld [vmem:[%s345_s2] sm:$0x1]  ;;  %s5397_s4 = smov (!%p354_p10, %s353_s4), 9  ;;  %s369_s15 = scalar_lea.vmem %s4656_s17, %s4944_s6 }
  0xa5   :  { %v347_v12 = vadd.f32 %v346_v11, %v344_v7  ;;  %v406_v14 = vrot.slane %v335_v9, 4  ;;  %s358_s25 = scalar_lea.vmem %s4661_s21, %s5397_s4  ;;  %p367_p11 = scmp.lt.s32.totalorder %s366_s28, 9  ;;  %v370_v19 = vld [vmem:[%s369_s15] sm:$0x1]  ;;  %v3867_v7 = vld [vmem:[%s4681_s8 + $0x68] sm:$0xff]  ;;  %v3885_v11 = vld [vmem:[%s4681_s8 + $0xb8] sm:$0xff] }
  0xa6   :  { %v359_v17 = vld [vmem:[%s358_s25] sm:$0x1]  ;;  %s4631_s13 = smov 16   ;;  %s5347_s17 = sld [smem:[#allocation11_spill]] }
  0xa7   :  { %v348_v16 = vadd.f32 %v347_v12, %v4832_v2  ;;  %v360_v18 = vadd.f32 %v359_v17, %v357_v13  ;;  %s5399_s28 = smov (!%p367_p11, %s366_s28), 9  ;;  %v434_v21 = vsel %vm423_vm3, %v433_v15, %v406_v14  ;;  %v3866_v9 = vld [vmem:[%s4681_s8 + $0x60] sm:$0xff]  ;;  %v3876_v12 = vld [vmem:[%s4681_s8 + $0x90] sm:$0xff]  ;;  %v3875_v14 = vld [vmem:[%s4681_s8 + $0x88] sm:$0xff]  ;;  %s5349_s29 = sld [smem:[#allocation12_spill]] }
  0xa8   :  { %s371_s11 = scalar_lea.vmem %s4661_s21, %s5399_s28  ;;  %v3884_v13 = vld [vmem:[%s4681_s8 + $0xb0] sm:$0xff]  ;;  %v3883_v15 = vld [vmem:[%s4681_s8 + $0xa8] sm:$0xff]  ;;  %v3882_v17 = vld [vmem:[%s4681_s8 + $0xa0] sm:$0xff]  ;;  %s5348_s21 = sld [smem:[#allocation13_spill]] }
  0xa9   :  { %v409_v20 = vrot.slane %v348_v16, 3  ;;  %v361_v22 = vadd.f32 %v360_v18, %v4832_v2  ;;  %v372_v23 = vld [vmem:[%s371_s11] sm:$0x1]  ;;  %v4629_v18 = vmov 0.0   ;;  %s5350_s3 = sld [smem:[#allocation14_spill]]  ;;  %s4632_s1 = smov [#allocation7]  }
  0xaa   :  { %v373_v24 = vadd.f32 %v372_v23, %v370_v19  ;;  %v3874_v16 = vld [vmem:[%s4681_s8 + $0x80] sm:$0xff]  ;;  %s5357_s26 = sld [smem:[#allocation23_spill]]  ;;  %s3738_s7 = sshll.u32 %s4632_s1, 4  ;;  %s3739_s7 = int_to_ptr.vmem [resolvable:$true] %s3738_s7 }
  0xab   :  { %v412_v25 = vrot.slane %v361_v22, 2  ;;  %v435_v26 = vsel %vm425_vm4, %v434_v21, %v409_v20  ;;  %s5358_s6 = sld [smem:[#allocation21_spill]]  ;;  %s4567_s4 = scalar_lea.vmem %s3739_s7, 32 }
  0xac   :  { %v374_v27 = vadd.f32 %v373_v24, %v4832_v2  ;;  %s5359_s20 = sld [smem:[#allocation22_spill]]  ;;  %p4568_p12 = scmp.ne.s32.totalorder %s3739_s7, %s4567_s4 }
  0xad   :  { %v436_v28 = vsel %vm427_vm5, %v435_v26, %v412_v25  ;;  %v3863_v25 = vld [vmem:[%s4686_s14 + $0x2] ss:$0 sm:$0xff]  ;;  %v3871_v26 = vld [vmem:[%s4686_s14 + $0x3] ss:$0 sm:$0xff]  ;;  %s5360_s5 = sld [smem:[#allocation25_spill]]  ;;  %p4572_p13 = scmp.lt.s32.totalorder %s3739_s7, %s3739_s7 }
  0xae   :  { %v415_v29 = vrot.slane %v374_v27, 1  ;;  %s5361_s18 = sld [smem:[#allocation24_spill]]  ;;  %p4573_p0 = scmp.lt.s32.totalorder %s4567_s4, %s4567_s4 }
  0xaf   :  { %s5362_s16 = sld [smem:[#allocation26_spill]] }
  0xb0   :  { %v437_v30 = vsel %vm429_vm6, %v436_v28, %v415_v29  ;;  %s5363_s9 = sld [smem:[#allocation29_spill]]  ;;  %p4574_p1 = por %p4573_p0, %p4572_p13 }
  0xb1   :  { %v444_v31 = vsel %vm440_vm7, %v437_v30, 0.0  ;;  %s5364_s10 = sld [smem:[#allocation27_spill]] }
  0xb2   :  { %445 = vadd.xlane.f32.xlu0 %v444_v31  ;;  %v3847_v31 = vld [vmem:[%s4686_s14] ss:$0 sm:$0xff]  ;;  %s5365_s23 = sld [smem:[#allocation28_spill]]  ;;  %p4575_p2 = pnand %p4574_p1, %p4568_p12 }
  0xb3   :  { %s5366_s27 = sld [smem:[#allocation30_spill]] }
 0x118   :  { %v443_v32 = vpop.xlane.xlu0 %442 }
 0x119   :  { %v448_v33 = vmul.f32 0.03125, %v443_v32  ;;  %v3855_v32 = vld [vmem:[%s4686_s14 + $0x1] ss:$0 sm:$0xff] }
 0x11b   :  { %v450_v34 = vsub.f32 %v4904_v46, %v448_v33  ;;  %v3851_v46 = vld [vmem:[%s4681_s8 + $0x28] sm:$0xff]  ;;  %s5351_s8 = sld [smem:[#allocation17_spill]] }
 0x11c   :  { %4153 = vmatprep.subr.mxu1 %v3851_v46 }
 0x11d   :  { %v452_v35 = vmul.f32 %v450_v34, %v450_v34  ;;  %4154 = vmatpush3.msra.mxu1 %v3851_v46  ;;  %v3846_v46 = vadd.f32 -1.0, %v485_v44 }
 0x11e   :  { %4155 = vmatprep.subr.mxu1 %v3850_v48 }
 0x11f   :  { %v454_v36 = vsel %vm440_vm7, %v452_v35, 0.0  ;;  %4156 = vmatpush3.msra.mxu1 %v3850_v48  ;;  %v487_v48 = vmul.f32 1e+09, %v3846_v46  ;;  %v1682_v46 = vld [vmem:[%s4691_s19 + $0x10] sm:$0xff] }
 0x120   :  { %455 = vadd.xlane.f32.xlu1 %v454_v36  ;;  %4171 = vmatprep.subr.mxu1 %v3869_v50  ;;  %v3879_v36 = vld [vmem:[%s4686_s14 + $0x4] ss:$0 sm:$0xff] }
 0x13b   :  { %v446_v2 = vpop.xlane.xlu0 %445 }
 0x13c   :  { %v449_v37 = vmul.f32 0.03125, %v446_v2 }
 0x13e   :  { %v451_v38 = vsub.f32 %v437_v30, %v449_v37 }
 0x140   :  { %v453_v39 = vmul.f32 %v451_v38, %v451_v38 }
 0x142   :  { %v457_v40 = vsel %vm440_vm7, %v453_v39, 0.0 }
 0x143   :  { %458 = vadd.xlane.f32.xlu1 %v457_v40 }
 0x1a9   :  { %v456_v51 = vpop.xlane.xlu1 %455 }
 0x1aa   :  { %v460_v52 = vmul.f32 0.03125, %v456_v51 }
 0x1ac   :  { %v462_v53 = vadd.f32 1e-05, %v460_v52  ;;  %v1353_v52 = vsub.s32 1, %v1021_v47 }
 0x1ae   :  { %4483 = vrsqrt.f32 %v462_v53 }
 0x1bb   :  { %v4484_v54 = vpop.eup %4483 }
 0x1bc   :  { %v466_v56 = vmul.f32 %v4484_v54, %v450_v34 }
 0x1be   :  { %v474_v58 = vmul.f32 %v3844_v55, %v466_v56 }
 0x1c0   :  { %v4990_v59 = vadd.f32 %v3845_v57, %v474_v58  ;;  %v5072_v58 = vrot.slane %v487_v48, %v1353_v52 }
 0x1c2   :  { %4146 = vmatprep.mubr.msk.f32.mxu0 %vm440_vm7, %v4990_v59  ;;  %4157 = vmatprep.mubr.msk.f32.mxu1 %vm440_vm7, %v4990_v59 }
 0x1cc   :  { %v459_v60 = vpop.xlane.xlu1 %458 }
 0x1cd   :  { %v461_v61 = vmul.f32 0.03125, %v459_v60 }
 0x1cf   :  { %v463_v62 = vadd.f32 1e-05, %v461_v61 }
 0x1d1   :  { %4485 = vrsqrt.f32 %v463_v62 }
 0x1de   :  { %v4486_v63 = vpop.eup %4485 }
 0x1df   :  { %v467_v0 = vmul.f32 %v4486_v63, %v451_v38 }
 0x1e1   :  { %v475_v1 = vmul.f32 %v3844_v55, %v467_v0 }
 0x1e3   :  { %v4996_v3 = vadd.f32 %v3845_v57, %v475_v1 }
 0x1e5   :  { %4147 = vmatmul.mubr.msk.f32.vlgmr.msra.gmra.mxu0 %vm440_vm7, %v4996_v3  ;;  %4158 = vmatmul.mubr.msk.f32.vlgmr.msra.gmra.mxu1 %vm440_vm7, %v4996_v3 }
 0x1e6   :  { %4161 = vmatpush3.msra.mxu0 %v3861_v49  ;;  %4172 = vmatpush3.msra.mxu1 %v3869_v50  ;;  %v1022_v49 = vsub.s32 0, %v1021_v47  ;;  %v1681_v47 = vld [vmem:[%s4691_s19 + $0x8] sm:$0xff] }
 0x1e7   :  { %4162 = vmatprep.subr.mxu0 %v3860_v4  ;;  %4168 = vmatprep.mubr.msk.f32.mxu0 %vm440_vm7, %v4990_v59 }
 0x1e8   :  { %4173 = vmatprep.subr.mxu1 %v3868_v5  ;;  %4179 = vmatprep.mubr.msk.f32.mxu1 %vm440_vm7, %v4990_v59  ;;  %v5066_v51 = vrot.slane %v487_v48, %v1022_v49  ;;  %v1680_v48 = vld [vmem:[%s4691_s19] sm:$0xff] }
 0x1e9   :  { %4163 = vmatpush3.msra.mxu0 %v3860_v4  ;;  %4174 = vmatpush3.msra.mxu1 %v3868_v5 }
 0x1ea   :  { %4164 = vmatprep.subr.mxu0 %v3859_v6  ;;  %4175 = vmatprep.subr.mxu1 %v3867_v7 }
 0x1eb   :  { %4165 = vmatpush3.msra.mxu0 %v3859_v6  ;;  %4176 = vmatpush3.msra.mxu1 %v3867_v7 }
 0x1ec   :  { %4166 = vmatprep.subr.mxu0 %v3858_v8  ;;  %4177 = vmatprep.subr.mxu1 %v3866_v9 }
 0x1ed   :  { %4167 = vmatpush3.msra.mxu0 %v3858_v8  ;;  %4178 = vmatpush3.msra.mxu1 %v3866_v9 }
 0x1ee   :  { %4169 = vmatmul.mubr.msk.f32.vlgmr.msra.gmra.mxu0 %vm440_vm7, %v4996_v3  ;;  %4180 = vmatmul.mubr.msk.f32.vlgmr.msra.gmra.mxu1 %vm440_vm7, %v4996_v3 }
 0x1ef   :  { %4182 = vmatprep.subr.mxu0 %v3877_v10  ;;  %4193 = vmatprep.subr.mxu1 %v3885_v11 }
 0x1f0   :  { %4183 = vmatpush3.msra.mxu0 %v3877_v10  ;;  %4190 = vmatprep.mubr.msk.f32.mxu0 %vm440_vm7, %v4990_v59 }
 0x1f1   :  { %4194 = vmatpush3.msra.mxu1 %v3885_v11  ;;  %4201 = vmatprep.mubr.msk.f32.mxu1 %vm440_vm7, %v4990_v59 }
 0x1f2   :  { %4184 = vmatprep.subr.mxu0 %v3876_v12  ;;  %4195 = vmatprep.subr.mxu1 %v3884_v13 }
 0x1f3   :  { %4185 = vmatpush3.msra.mxu0 %v3876_v12  ;;  %4196 = vmatpush3.msra.mxu1 %v3884_v13 }
 0x1f4   :  { %4186 = vmatprep.subr.mxu0 %v3875_v14  ;;  %4197 = vmatprep.subr.mxu1 %v3883_v15 }
 0x1f5   :  { %4187 = vmatpush3.msra.mxu0 %v3875_v14  ;;  %4198 = vmatpush3.msra.mxu1 %v3883_v15 }
 0x1f6   :  { %4188 = vmatprep.subr.mxu0 %v3874_v16  ;;  %4199 = vmatprep.subr.mxu1 %v3882_v17 }
 0x1f7   :  { %4189 = vmatpush3.msra.mxu0 %v3874_v16  ;;  %4200 = vmatpush3.msra.mxu1 %v3882_v17 }
 0x1f8   :  { %4191 = vmatmul.mubr.msk.f32.vlgmr.msra.gmra.mxu0 %vm440_vm7, %v4996_v3  ;;  %4202 = vmatmul.mubr.msk.f32.vlgmr.msra.gmra.mxu1 %vm440_vm7, %v4996_v3 }
 0x1f9   :  { %4204 = vmatprep.subr.mxu1 %v4629_v18  ;;  %4214 = vmatprep.subr.mxu0 %v4629_v18 }
 0x1fa   :  { %4206 = vmatprep.mubr.msk.f32.mxu1 %vm4630_vm8, %v4629_v18  ;;  %4216 = vmatprep.mubr.msk.f32.mxu0 %vm4630_vm8, %v4629_v18 }
 0x2a5   :  { %v4148_v19 = vpop.f32.mrf.mxu0  ;;  %v4159_v20 = vpop.f32.mrf.mxu1 }
 0x2a6   :  { %v577_v2 = vadd.f32 %v4148_v19, %v3847_v31  ;;  %v665_v42 = vadd.f32 %v4159_v20, %v3855_v32 }
 0x2a7   :  { %v571_v21 = vpop.f32.mrf.mxu0  ;;  %v659_v22 = vpop.f32.mrf.mxu1 }
 0x2a8   :  { %v572_v33 = vadd.f32 %v3847_v31, %v571_v21  ;;  %v660_v34 = vadd.f32 %v3855_v32, %v659_v22 }
 0x2ae   :  { %v4170_v23 = vpop.f32.mrf.mxu0  ;;  %v4181_v24 = vpop.f32.mrf.mxu1 }
 0x2af   :  { %v753_v35 = vadd.f32 %v4170_v23, %v3863_v25  ;;  %v841_v38 = vadd.f32 %v4181_v24, %v3871_v26 }
 0x2b0   :  { %v747_v27 = vpop.f32.mrf.mxu0  ;;  %v835_v28 = vpop.f32.mrf.mxu1 }
 0x2b1   :  { %v748_v29 = vadd.f32 %v3863_v25, %v747_v27  ;;  %v836_v30 = vadd.f32 %v3871_v26, %v835_v28 }
 0x2b3   :  { %4205 = vmatpush3.xpose.msk.msra.mxu1 %vm1024_vm9, %v748_v29  ;;  %4215 = vmatpush3.xpose.msk.msra.mxu0 %vm1024_vm9, %v836_v30 }
 0x2b4   :  { %4224 = vmatprep.subr.mxu0 %v4629_v18  ;;  %4209 = vmatprep.subr.mxu1 %v4629_v18 }
 0x2b6   :  { %4207 = vmatmul.mubr.msk.f32.vlgmr.msra.gmra.mxu1 %vm1024_vm9, %v572_v33  ;;  %4217 = vmatmul.mubr.msk.f32.vlgmr.msra.gmra.mxu0 %vm1024_vm9, %v660_v34 }
 0x2b7   :  { %4225 = vmatpush3.xpose.msk.msra.mxu0 %vm1024_vm9, %v753_v35  ;;  %4226 = vmatprep.mubr.msk.f32.mxu0 %vm4630_vm8, %v4629_v18 }
 0x2b8   :  { %v4192_v37 = vpop.f32.mrf.mxu0  ;;  %4234 = vmatprep.subr.mxu0 %v4629_v18  ;;  %4211 = vmatprep.mubr.msk.f32.mxu1 %vm4630_vm8, %v4629_v18  ;;  %v5064_v50 = vpop.f32.mrf.mxu1 }
 0x2b9   :  { %v5055_v39 = vadd.f32 %v4192_v37, %v3879_v36 }
 0x2ba   :  { %v923_v40 = vpop.f32.mrf.mxu0  ;;  %4227 = vmatmul.mubr.msk.f32.vlgmr.msra.gmra.mxu0 %vm1024_vm9, %v577_v2  ;;  %v5068_v53 = vpop.f32.mrf.mxu1 }
 0x2bb   :  { %v924_v41 = vadd.f32 %v3879_v36, %v923_v40  ;;  %4235 = vmatpush3.xpose.msk.msra.mxu0 %vm1024_vm9, %v841_v38  ;;  %4236 = vmatprep.mubr.msk.f32.mxu0 %vm4630_vm8, %v4629_v18  ;;  %v3887_v36 = vld [vmem:[%s4686_s14 + $0x5] ss:$0 sm:$0xff]  ;;  %s5352_s14 = sld [smem:[#allocation15_spill]] }
 0x2bc   :  { %v1012_v38 = vadd.f32 %v3887_v36, %v5068_v53  ;;  %v1017_v44 = vadd.f32 %v5064_v50, %v3887_v36  ;;  %v3906_v36 = vld [vmem:[%s5347_s17] ss:$0 sm:$0xff] }
 0x2bd   :  { %4210 = vmatpush3.msra.mxu1 %v924_v41 }
 0x2be   :  { %4237 = vmatmul.mubr.msk.f32.vlgmr.msra.gmra.mxu0 %vm1024_vm9, %v665_v42  ;;  %4219 = vmatprep.subr.mxu1 %v4629_v18 }
 0x376   :  { %v1097_v54 = vpop.f32.mrf.mxu1  ;;  %v1258_v55 = vpop.f32.mrf.mxu0 }
 0x377   :  { %v1098_v56 = vadd.f32 %v1097_v54, %v5066_v51  ;;  %v1259_v57 = vadd.f32 %v1258_v55, %v5066_v51 }
 0x378   :  { %v4208_v60 = vpop.f32.mrf.mxu1  ;;  %v4218_v61 = vpop.f32.mrf.mxu0 }
 0x379   :  { %v1262_v62 = vsel %vm1101_vm10, %v1259_v57, -inf  ;;  %v1102_v63 = vsel %vm1101_vm10, %v1098_v56, -inf }
 0x37a   :  { %1263 = vmax.xlane.f32.xlu1 %v1262_v62  ;;  %v1427_v0 = vpop.f32.mrf.mxu0  ;;  %1103 = vmax.xlane.f32.xlu0 %v1102_v63 }
 0x37b   :  { %v1428_v1 = vadd.f32 %v1427_v0, %v5072_v58  ;;  %v3902_v0 = vld [vmem:[%s4696_s24] ss:$0 sm:$0xff]  ;;  %s5354_s24 = sld [smem:[#allocation18_spill]] }
 0x37c   :  { %v4228_v4 = vpop.f32.mrf.mxu0 }
 0x37d   :  { %v1431_v5 = vsel %vm1101_vm10, %v1428_v1, -inf }
 0x37e   :  { %v1587_v6 = vpop.f32.mrf.mxu0  ;;  %1432 = vmax.xlane.f32.xlu0 %v1431_v5 }
 0x37f   :  { %v1588_v7 = vadd.f32 %v1587_v6, %v5072_v58 }
 0x380   :  { %v4238_v8 = vpop.f32.mrf.mxu0 }
 0x381   :  { %v1591_v9 = vsel %vm1101_vm10, %v1588_v7, -inf }
 0x382   :  { %1592 = vmax.xlane.f32.xlu1 %v1591_v9 }
 0x403   :  { %v1264_v10 = vpop.xlane.xlu1 %1263  ;;  %v1104_v11 = vpop.xlane.xlu0 %1103 }
 0x404   :  { %v1265_v12 = vsub.f32 %v1259_v57, %v1264_v10  ;;  %v1105_v13 = vsub.f32 %v1098_v56, %v1104_v11 }
 0x406   :  { %v1266_v14 = vmul.f32 1.442695, %v1265_v12  ;;  %v1106_v15 = vmul.f32 1.442695, %v1105_v13 }
 0x407   :  { %v1433_v16 = vpop.xlane.xlu0 %1432 }
 0x408   :  { %4487 = vpow2.f32 %v1266_v14  ;;  %v1434_v17 = vsub.f32 %v1428_v1, %v1433_v16 }
 0x409   :  { %4489 = vpow2.f32 %v1106_v15 }
 0x40a   :  { %v1435_v19 = vmul.f32 1.442695, %v1434_v17 }
 0x40b   :  { %v1593_v20 = vpop.xlane.xlu1 %1592 }
 0x40c   :  { %4491 = vpow2.f32 %v1435_v19  ;;  %v1594_v21 = vsub.f32 %v1588_v7, %v1593_v20  ;;  %v1821_v20 = vld [vmem:[%s4711_s12 + $0x18] sm:$0xff] }
 0x40e   :  { %v1595_v22 = vmul.f32 1.442695, %v1594_v21  ;;  %v1820_v21 = vld [vmem:[%s4711_s12 + $0x10] sm:$0xff] }
 0x410   :  { %4493 = vpow2.f32 %v1595_v22  ;;  %v1819_v22 = vld [vmem:[%s4711_s12 + $0x8] sm:$0xff] }
 0x415   :  { %v4488_v23 = vpop.eup %4487 }
 0x416   :  { %v4490_v24 = vpop.eup %4489  ;;  %v1268_v25 = vsel %vm1101_vm10, %v4488_v23, 0.0 }
 0x417   :  { %1269 = vadd.xlane.f32.xlu1 %v1268_v25  ;;  %v1108_v26 = vsel %vm1101_vm10, %v4490_v24, 0.0 }
 0x418   :  { %1109 = vadd.xlane.f32.xlu0 %v1108_v26 }
 0x419   :  { %v4492_v27 = vpop.eup %4491 }
 0x41a   :  { %v1437_v28 = vsel %vm1101_vm10, %v4492_v27, 0.0 }
 0x41c   :  { %1438 = vadd.xlane.f32.xlu0 %v1437_v28 }
 0x41d   :  { %v4494_v29 = vpop.eup %4493 }
 0x41e   :  { %v1597_v30 = vsel %vm1101_vm10, %v4494_v29, 0.0 }
 0x41f   :  { %1598 = vadd.xlane.f32.xlu1 %v1597_v30 }
 0x4a0   :  { %v1270_v31 = vpop.xlane.xlu1 %1269 }
 0x4a1   :  { %v1110_v32 = vpop.xlane.xlu0 %1109 }
 0x4a2   :  { %4495 = vrcp.f32 %v1110_v32 }
 0x4a3   :  { %4497 = vrcp.f32 %v1270_v31  ;;  %v3905_v31 = vld [vmem:[%s4701_s30] ss:$0 sm:$0xff]  ;;  %s5355_s30 = sld [smem:[#allocation19_spill]] }
 0x4a5   :  { %v1439_v33 = vpop.xlane.xlu0 %1438 }
 0x4a6   :  { %4499 = vrcp.f32 %v1439_v33 }
 0x4a8   :  { %v1599_v34 = vpop.xlane.xlu1 %1598 }
 0x4a9   :  { %4501 = vrcp.f32 %v1599_v34 }
 0x4af   :  { %v4496_v35 = vpop.eup %4495 }
 0x4b0   :  { %v1112_v2 = vmul.f32 %v4496_v35, %v4490_v24  ;;  %v4498_v37 = vpop.eup %4497 }
 0x4b1   :  { %v1272_v40 = vmul.f32 %v4498_v37, %v4488_v23  ;;  %v1818_v23 = vld [vmem:[%s4711_s12] sm:$0xff]  ;;  %s5356_s12 = sld [smem:[#allocation20_spill]] }
 0x4b2   :  { %4212 = vmatmul.mubr.msk.f32.vlgmr.msra.gmra.mxu1 %vm1101_vm10, %v1112_v2 }
 0x4b3   :  { %4220 = vmatpush3.msra.mxu1 %v1012_v38  ;;  %4221 = vmatprep.mubr.msk.f32.mxu1 %vm4630_vm8, %v4629_v18  ;;  %v4500_v41 = vpop.eup %4499 }
 0x4b4   :  { %4229 = vmatprep.subr.mxu1 %v4629_v18  ;;  %v1441_v42 = vmul.f32 %v4500_v41, %v4492_v27  ;;  %v1934_v41 = vld [vmem:[%s5348_s21 + $0x30] sm:$0xff] }
 0x4b6   :  { %4222 = vmatmul.mubr.msk.f32.vlgmr.msra.gmra.mxu1 %vm1101_vm10, %v1272_v40  ;;  %v4502_v43 = vpop.eup %4501  ;;  %v1935_v40 = vld [vmem:[%s5348_s21 + $0x38] sm:$0xff] }
 0x4b7   :  { %4230 = vmatpush3.msra.mxu1 %v5055_v39  ;;  %4231 = vmatprep.mubr.msk.f32.mxu1 %vm4630_vm8, %v4629_v18  ;;  %v1601_v45 = vmul.f32 %v4502_v43, %v4494_v29  ;;  %v1683_v39 = vld [vmem:[%s4691_s19 + $0x18] sm:$0xff]  ;;  %v1932_v43 = vld [vmem:[%s5348_s21 + $0x20] sm:$0xff]  ;;  %s5353_s19 = sld [smem:[#allocation16_spill]] }
 0x4b8   :  { %4239 = vmatprep.subr.mxu1 %v4629_v18  ;;  %4244 = vmatprep.subr.mxu0 %v1683_v39 }
 0x4b9   :  { %4245 = vmatpush3.msra.mxu0 %v1683_v39  ;;  %v1929_v39 = vld [vmem:[%s5348_s21 + $0x8] sm:$0xff] }
 0x4ba   :  { %4232 = vmatmul.mubr.msk.f32.vlgmr.msra.gmra.mxu1 %vm1101_vm10, %v1441_v42  ;;  %4246 = vmatprep.subr.mxu0 %v1682_v46  ;;  %v1933_v42 = vld [vmem:[%s5348_s21 + $0x28] sm:$0xff] }
 0x4bb   :  { %4240 = vmatpush3.msra.mxu1 %v1017_v44  ;;  %4241 = vmatprep.mubr.msk.f32.mxu1 %vm4630_vm8, %v4629_v18  ;;  %v1931_v44 = vld [vmem:[%s5348_s21 + $0x18] sm:$0xff] }
 0x4bc   :  { %4247 = vmatpush3.msra.mxu0 %v1682_v46  ;;  %4255 = vmatprep.subr.mxu1 %v1821_v20  ;;  %v1928_v46 = vld [vmem:[%s5348_s21] sm:$0xff] }
 0x4bd   :  { %4248 = vmatprep.subr.mxu0 %v1681_v47 }
 0x4be   :  { %4242 = vmatmul.mubr.msk.f32.vlgmr.msra.gmra.mxu1 %vm1101_vm10, %v1601_v45  ;;  %4249 = vmatpush3.msra.mxu0 %v1681_v47  ;;  %v1930_v45 = vld [vmem:[%s5348_s21 + $0x10] sm:$0xff]  ;;  %v3907_v47 = vld [vmem:[%s5349_s29] ss:$0 sm:$0xff] }
 0x4bf   :  { %4250 = vmatprep.subr.mxu0 %v1680_v48  ;;  %4256 = vmatpush3.msra.mxu1 %v1821_v20 }
 0x4c0   :  { %4251 = vmatpush3.msra.mxu0 %v1680_v48  ;;  %4257 = vmatprep.subr.mxu1 %v1820_v21 }
 0x4c1   :  { %4258 = vmatpush3.msra.mxu1 %v1820_v21  ;;  %4266 = vmatprep.subr.mxu0 %v1935_v40 }
 0x4c2   :  { %4259 = vmatprep.subr.mxu1 %v1819_v22 }
 0x4c3   :  { %4260 = vmatpush3.msra.mxu1 %v1819_v22 }
 0x4c4   :  { %4261 = vmatprep.subr.mxu1 %v1818_v23 }
 0x4c5   :  { %4262 = vmatpush3.msra.mxu1 %v1818_v23 }
 0x572   :  { %v1182_v49 = vpop.f32.mrf.mxu1 }
 0x574   :  { %v4213_v50 = vpop.f32.mrf.mxu1 }
 0x576   :  { %v1342_v52 = vpop.f32.mrf.mxu1 }
 0x577   :  { %1347 = vrot.lane.b32.xlu0 %v1342_v52, %s4631_s13 }
 0x578   :  { %v4223_v53 = vpop.f32.mrf.mxu1 }
 0x57a   :  { %v1511_v54 = vpop.f32.mrf.mxu1 }
 0x57c   :  { %v4233_v55 = vpop.f32.mrf.mxu1 }
 0x57e   :  { %v1671_v56 = vpop.f32.mrf.mxu1 }
 0x57f   :  { %1676 = vrot.lane.b32.xlu1 %v1671_v56, %s4631_s13 }
 0x580   :  { %v4243_v57 = vpop.f32.mrf.mxu1 }
 0x5e9   :  { %v1348_v60 = vpop.permute.xlu0 %1347 }
 0x5ea   :  { %v1350_v61 = vsel %vm1024_vm9, %v1182_v49, %v1348_v60 }
 0x5eb   :  { %4252 = vmatprep.mubr.msk.f32.mxu0 %vm440_vm7, %v1350_v61 }
 0x5f1   :  { %v1677_v62 = vpop.permute.xlu1 %1676 }
 0x5f2   :  { %v1679_v63 = vsel %vm1024_vm9, %v1511_v54, %v1677_v62 }
 0x5f3   :  { %4253 = vmatmul.mubr.msk.f32.vlgmr.msra.gmra.mxu0 %vm440_vm7, %v1679_v63 }
 0x5f4   :  { %4267 = vmatpush3.msra.mxu0 %v1935_v40 }
 0x5f5   :  { %4268 = vmatprep.subr.mxu0 %v1934_v41 }
 0x5f6   :  { %4269 = vmatpush3.msra.mxu0 %v1934_v41 }
 0x5f7   :  { %4270 = vmatprep.subr.mxu0 %v1933_v42 }
 0x5f8   :  { %4271 = vmatpush3.msra.mxu0 %v1933_v42 }
 0x5f9   :  { %4272 = vmatprep.subr.mxu0 %v1932_v43 }
 0x5fa   :  { %4273 = vmatpush3.msra.mxu0 %v1932_v43 }
 0x5fb   :  { %4274 = vmatprep.subr.mxu0 %v1931_v44 }
 0x5fc   :  { %4275 = vmatpush3.msra.mxu0 %v1931_v44 }
 0x5fd   :  { %4276 = vmatprep.subr.mxu0 %v1930_v45 }
 0x5fe   :  { %4277 = vmatpush3.msra.mxu0 %v1930_v45 }
 0x5ff   :  { %4278 = vmatprep.subr.mxu0 %v1929_v39 }
 0x600   :  { %4279 = vmatpush3.msra.mxu0 %v1929_v39  ;;  %v3913_v39 = vld [vmem:[%s5352_s14] ss:$0 sm:$0xff] }
 0x601   :  { %4280 = vmatprep.subr.mxu0 %v1928_v46 }
 0x602   :  { %4281 = vmatpush3.msra.mxu0 %v1928_v46 }
 0x6b3   :  { %v4254_v1 = vpop.f32.mrf.mxu0 }
 0x6b4   :  { %v1769_v4 = vadd.f32 %v4254_v1, %v3902_v0 }
 0x6b5   :  { %v1763_v5 = vpop.f32.mrf.mxu0 }
 0x6b6   :  { %v1764_v6 = vadd.f32 %v3902_v0, %v1763_v5  ;;  %v1773_v7 = vadd.f32 %v1769_v4, %v4996_v3 }
 0x6b8   :  { %v1779_v8 = vsel %vm440_vm7, %v1773_v7, 0.0  ;;  %v1772_v9 = vadd.f32 %v1764_v6, %v4990_v59 }
 0x6b9   :  { %1780 = vadd.xlane.f32.xlu0 %v1779_v8 }
 0x6ba   :  { %v1776_v10 = vsel %vm440_vm7, %v1772_v9, 0.0 }
 0x6bb   :  { %1777 = vadd.xlane.f32.xlu1 %v1776_v10 }
 0x742   :  { %v1781_v11 = vpop.xlane.xlu0 %1780 }
 0x743   :  { %v1783_v12 = vmul.f32 0.03125, %v1781_v11  ;;  %v3910_v11 = vld [vmem:[%s5350_s3] ss:$0 sm:$0xff] }
 0x744   :  { %v1778_v13 = vpop.xlane.xlu1 %1777 }
 0x745   :  { %v1785_v14 = vsub.f32 %v1773_v7, %v1783_v12  ;;  %v1782_v15 = vmul.f32 0.03125, %v1778_v13 }
 0x747   :  { %v1784_v16 = vsub.f32 %v1772_v9, %v1782_v15  ;;  %v1787_v17 = vmul.f32 %v1785_v14, %v1785_v14 }
 0x749   :  { %v1791_v3 = vsel %vm440_vm7, %v1787_v17, 0.0  ;;  %v1786_v19 = vmul.f32 %v1784_v16, %v1784_v16 }
 0x74a   :  { %1792 = vadd.xlane.f32.xlu1 %v1791_v3 }
 0x74b   :  { %v1788_v59 = vsel %vm440_vm7, %v1786_v19, 0.0 }
 0x74c   :  { %1789 = vadd.xlane.f32.xlu0 %v1788_v59 }
 0x7d3   :  { %v1793_v24 = vpop.xlane.xlu1 %1792 }
 0x7d4   :  { %v1795_v25 = vmul.f32 0.03125, %v1793_v24 }
 0x7d5   :  { %v1790_v26 = vpop.xlane.xlu0 %1789 }
 0x7d6   :  { %v1797_v27 = vadd.f32 1e-05, %v1795_v25  ;;  %v1794_v28 = vmul.f32 0.03125, %v1790_v26 }
 0x7d8   :  { %4503 = vrsqrt.f32 %v1797_v27  ;;  %v1796_v29 = vadd.f32 1e-05, %v1794_v28 }
 0x7da   :  { %4505 = vrsqrt.f32 %v1796_v29  ;;  %v2074_v29 = vld [vmem:[%s5351_s8 + $0x18] sm:$0xff] }
 0x7db   :  { %4285 = vmatprep.subr.mxu1 %v2074_v29 }
 0x7e5   :  { %v4504_v30 = vpop.eup %4503 }
 0x7e6   :  { %v1801_v32 = vmul.f32 %v4504_v30, %v1785_v14  ;;  %v3929_v30 = vld [vmem:[%s5351_s8 + $0x58] sm:$0xff] }
 0x7e7   :  { %v4506_v33 = vpop.eup %4505  ;;  %4307 = vmatprep.subr.mxu0 %v3929_v30 }
 0x7e8   :  { %v1800_v34 = vmul.f32 %v4506_v33, %v1784_v16  ;;  %v1809_v35 = vmul.f32 %v3905_v31, %v1801_v32  ;;  %v3928_v32 = vld [vmem:[%s5351_s8 + $0x50] sm:$0xff]  ;;  %v2072_v33 = vld [vmem:[%s5351_s8 + $0x8] sm:$0xff] }
 0x7ea   :  { %v1808_v2 = vmul.f32 %v3905_v31, %v1800_v34  ;;  %v1817_v38 = vadd.f32 %v3906_v36, %v1809_v35  ;;  %v2073_v31 = vld [vmem:[%s5351_s8 + $0x10] sm:$0xff]  ;;  %v3927_v34 = vld [vmem:[%s5351_s8 + $0x48] sm:$0xff]  ;;  %v2071_v35 = vld [vmem:[%s5351_s8] sm:$0xff] }
 0x7ec   :  { %v5123_v37 = vadd.f32 %v3906_v36, %v1808_v2  ;;  %v3926_v36 = vld [vmem:[%s5351_s8 + $0x40] sm:$0xff]  ;;  %v3921_v2 = vld [vmem:[%s5351_s8 + $0x38] sm:$0xff] }
 0x7ee   :  { %4263 = vmatprep.mubr.msk.f32.mxu1 %vm440_vm7, %v5123_v37 }
 0x7ef   :  { %4264 = vmatmul.mubr.msk.f32.vlgmr.msra.gmra.mxu1 %vm440_vm7, %v1817_v38 }
 0x7f0   :  { %4286 = vmatpush3.msra.mxu1 %v2074_v29 }
 0x7f1   :  { %4287 = vmatprep.subr.mxu1 %v2073_v31 }
 0x7f2   :  { %4288 = vmatpush3.msra.mxu1 %v2073_v31 }
 0x7f3   :  { %4289 = vmatprep.subr.mxu1 %v2072_v33 }
 0x7f4   :  { %4290 = vmatpush3.msra.mxu1 %v2072_v33 }
 0x7f5   :  { %4291 = vmatprep.subr.mxu1 %v2071_v35 }
 0x7f6   :  { %4292 = vmatpush3.msra.mxu1 %v2071_v35 }
 0x7f7   :  { %4296 = vmatprep.subr.mxu1 %v3921_v2 }
 0x8af   :  { %v4265_v48 = vpop.f32.mrf.mxu1 }
 0x8b0   :  { %v1907_v49 = vadd.f32 %v4265_v48, %v3907_v47 }
 0x8b1   :  { %v1901_v50 = vpop.f32.mrf.mxu1 }
 0x8b2   :  { %v1911_v52 = vmul.f32 %v1907_v49, %v1907_v49  ;;  %v1902_v53 = vadd.f32 %v3907_v47, %v1901_v50  ;;  %v3914_v50 = vld [vmem:[%s5353_s19] ss:$0 sm:$0xff] }
 0x8b4   :  { %v1913_v54 = vmul.f32 %v1911_v52, %v1907_v49  ;;  %v1910_v55 = vmul.f32 %v1902_v53, %v1902_v53 }
 0x8b6   :  { %v1915_v56 = vmul.f32 0.044715, %v1913_v54  ;;  %v1912_v57 = vmul.f32 %v1910_v55, %v1902_v53  ;;  %v3920_v55 = vld [vmem:[%s5351_s8 + $0x30] sm:$0xff] }
 0x8b8   :  { %v1917_v60 = vadd.f32 %v1915_v56, %v1907_v49  ;;  %v1914_v61 = vmul.f32 0.044715, %v1912_v57  ;;  %v3944_v56 = vld [vmem:[%s5351_s8 + $0x90] sm:$0xff]  ;;  %v3919_v57 = vld [vmem:[%s5351_s8 + $0x28] sm:$0xff] }
 0x8ba   :  { %v1919_v62 = vmul.f32 0.7978846, %v1917_v60  ;;  %v1916_v63 = vadd.f32 %v1914_v61, %v1902_v53  ;;  %v3943_v60 = vld [vmem:[%s5351_s8 + $0x88] sm:$0xff]  ;;  %v3918_v61 = vld [vmem:[%s5351_s8 + $0x20] sm:$0xff] }
 0x8bc   :  { %4507 = vtanh.f32 %v1919_v62  ;;  %v1918_v0 = vmul.f32 0.7978846, %v1916_v63  ;;  %v3942_v62 = vld [vmem:[%s5351_s8 + $0x80] sm:$0xff]  ;;  %v3937_v63 = vld [vmem:[%s5351_s8 + $0x78] sm:$0xff] }
 0x8be   :  { %4509 = vtanh.f32 %v1918_v0  ;;  %v3936_v0 = vld [vmem:[%s5351_s8 + $0x70] sm:$0xff] }
 0x8c9   :  { %v4508_v1 = vpop.eup %4507 }
 0x8ca   :  { %v1923_v4 = vadd.f32 1.0, %v4508_v1  ;;  %v3935_v1 = vld [vmem:[%s5351_s8 + $0x68] sm:$0xff] }
 0x8cb   :  { %v4510_v5 = vpop.eup %4509 }
 0x8cc   :  { %v1922_v6 = vadd.f32 1.0, %v4510_v5  ;;  %v1925_v7 = vmul.f32 0.5, %v1923_v4  ;;  %v3934_v4 = vld [vmem:[%s5351_s8 + $0x60] sm:$0xff]  ;;  %v3953_v5 = vld [vmem:[%s5351_s8 + $0xb8] sm:$0xff] }
 0x8ce   :  { %v1924_v8 = vmul.f32 0.5, %v1922_v6  ;;  %v1927_v10 = vmul.f32 %v1925_v7, %v1907_v49  ;;  %v3952_v6 = vld [vmem:[%s5351_s8 + $0xb0] sm:$0xff]  ;;  %v3951_v7 = vld [vmem:[%s5351_s8 + $0xa8] sm:$0xff] }
 0x8d0   :  { %v1926_v9 = vmul.f32 %v1924_v8, %v1902_v53  ;;  %v3950_v8 = vld [vmem:[%s5351_s8 + $0xa0] sm:$0xff] }
 0x8d2   :  { %4282 = vmatprep.mubr.msk.f32.mxu0 %vm1943_vm11, %v1926_v9 }
 0x8d3   :  { %4283 = vmatmul.mubr.msk.f32.vlgmr.msra.gmra.mxu0 %vm1943_vm11, %v1927_v10 }
 0x8d4   :  { %4308 = vmatpush3.msra.mxu0 %v3929_v30 }
 0x8d5   :  { %4309 = vmatprep.subr.mxu0 %v3928_v32 }
 0x8d6   :  { %4310 = vmatpush3.msra.mxu0 %v3928_v32 }
 0x8d7   :  { %4311 = vmatprep.subr.mxu0 %v3927_v34 }
 0x8d8   :  { %4312 = vmatpush3.msra.mxu0 %v3927_v34 }
 0x8d9   :  { %4313 = vmatprep.subr.mxu0 %v3926_v36 }
 0x8da   :  { %4314 = vmatpush3.msra.mxu0 %v3926_v36 }
 0x993   :  { %v4284_v12 = vpop.f32.mrf.mxu0 }
 0x994   :  { %v2022_v13 = vadd.f32 %v4284_v12, %v3910_v11 }
 0x995   :  { %v2016_v14 = vpop.f32.mrf.mxu0 }
 0x996   :  { %v2017_v15 = vadd.f32 %v3910_v11, %v2016_v14  ;;  %v2026_v16 = vadd.f32 %v2022_v13, %v1817_v38  ;;  %v3931_v11 = vld [vmem:[%s5354_s24 + $0x2] ss:$0 sm:$0xff] }
 0x998   :  { %v2032_v17 = vsel %vm440_vm7, %v2026_v16, 0.0  ;;  %v2025_v3 = vadd.f32 %v2017_v15, %v5123_v37  ;;  %v3945_v37 = vld [vmem:[%s5351_s8 + $0x98] sm:$0xff]  ;;  %v3915_v15 = vld [vmem:[%s5354_s24] ss:$0 sm:$0xff] }
 0x999   :  { %2033 = vadd.xlane.f32.xlu1 %v2032_v17  ;;  %4329 = vmatprep.subr.mxu0 %v3945_v37  ;;  %v3947_v17 = vld [vmem:[%s5354_s24 + $0x4] ss:$0 sm:$0xff] }
 0x99a   :  { %v2029_v19 = vsel %vm440_vm7, %v2025_v3, 0.0 }
 0x99b   :  { %2030 = vadd.xlane.f32.xlu0 %v2029_v19 }
 0xa22   :  { %v2034_v59 = vpop.xlane.xlu1 %2033 }
 0xa23   :  { %v2036_v20 = vmul.f32 0.03125, %v2034_v59 }
 0xa24   :  { %v2031_v21 = vpop.xlane.xlu0 %2030 }
 0xa25   :  { %v2038_v22 = vsub.f32 %v2026_v16, %v2036_v20  ;;  %v2035_v23 = vmul.f32 0.03125, %v2031_v21 }
 0xa27   :  { %v2037_v24 = vsub.f32 %v2025_v3, %v2035_v23  ;;  %v2040_v25 = vmul.f32 %v2038_v22, %v2038_v22 }
 0xa29   :  { %v2044_v26 = vsel %vm440_vm7, %v2040_v25, 0.0  ;;  %v2039_v27 = vmul.f32 %v2037_v24, %v2037_v24 }
 0xa2a   :  { %2045 = vadd.xlane.f32.xlu1 %v2044_v26 }
 0xa2b   :  { %v2041_v28 = vsel %vm440_vm7, %v2039_v27, 0.0  ;;  %v3923_v27 = vld [vmem:[%s5354_s24 + $0x1] ss:$0 sm:$0xff] }
 0xa2c   :  { %2042 = vadd.xlane.f32.xlu0 %v2041_v28 }
 0xab3   :  { %v2046_v38 = vpop.xlane.xlu1 %2045 }
 0xab4   :  { %v2048_v40 = vmul.f32 0.03125, %v2046_v38 }
 0xab5   :  { %v2043_v41 = vpop.xlane.xlu0 %2042 }
 0xab6   :  { %v2050_v42 = vadd.f32 1e-05, %v2048_v40  ;;  %v2047_v43 = vmul.f32 0.03125, %v2043_v41 }
 0xab8   :  { %4511 = vrsqrt.f32 %v2050_v42  ;;  %v2049_v44 = vadd.f32 1e-05, %v2047_v43 }
 0xaba   :  { %4513 = vrsqrt.f32 %v2049_v44 }
 0xac5   :  { %v4512_v45 = vpop.eup %4511 }
 0xac6   :  { %v2054_v46 = vmul.f32 %v4512_v45, %v2038_v22 }
 0xac7   :  { %v4514_v47 = vpop.eup %4513 }
 0xac8   :  { %v2053_v48 = vmul.f32 %v4514_v47, %v2037_v24  ;;  %v2062_v49 = vmul.f32 %v3913_v39, %v2054_v46  ;;  %v3939_v24 = vld [vmem:[%s5354_s24 + $0x3] ss:$0 sm:$0xff] }
 0xaca   :  { %v2061_v52 = vmul.f32 %v3913_v39, %v2053_v48  ;;  %v5159_v54 = vadd.f32 %v3914_v50, %v2062_v49 }
 0xacc   :  { %v5157_v53 = vadd.f32 %v3914_v50, %v2061_v52 }
 0xace   :  { %4293 = vmatprep.mubr.msk.f32.mxu1 %vm440_vm7, %v5157_v53  ;;  %4315 = vmatprep.mubr.msk.f32.mxu0 %vm440_vm7, %v5157_v53 }
 0xacf   :  { %4294 = vmatmul.mubr.msk.f32.vlgmr.msra.gmra.mxu1 %vm440_vm7, %v5159_v54  ;;  %4316 = vmatmul.mubr.msk.f32.vlgmr.msra.gmra.mxu0 %vm440_vm7, %v5159_v54 }
 0xad0   :  { %4297 = vmatpush3.msra.mxu1 %v3921_v2  ;;  %4330 = vmatpush3.msra.mxu0 %v3945_v37 }
 0xad1   :  { %4298 = vmatprep.subr.mxu1 %v3920_v55  ;;  %4304 = vmatprep.mubr.msk.f32.mxu1 %vm440_vm7, %v5157_v53 }
 0xad2   :  { %4331 = vmatprep.subr.mxu0 %v3944_v56  ;;  %4337 = vmatprep.mubr.msk.f32.mxu0 %vm440_vm7, %v5157_v53 }
 0xad3   :  { %4299 = vmatpush3.msra.mxu1 %v3920_v55  ;;  %4332 = vmatpush3.msra.mxu0 %v3944_v56 }
 0xad4   :  { %4300 = vmatprep.subr.mxu1 %v3919_v57  ;;  %4333 = vmatprep.subr.mxu0 %v3943_v60 }
 0xad5   :  { %4301 = vmatpush3.msra.mxu1 %v3919_v57  ;;  %4334 = vmatpush3.msra.mxu0 %v3943_v60 }
 0xad6   :  { %4302 = vmatprep.subr.mxu1 %v3918_v61  ;;  %4335 = vmatprep.subr.mxu0 %v3942_v62 }
 0xad7   :  { %4303 = vmatpush3.msra.mxu1 %v3918_v61  ;;  %4336 = vmatpush3.msra.mxu0 %v3942_v62 }
 0xad8   :  { %4305 = vmatmul.mubr.msk.f32.vlgmr.msra.gmra.mxu1 %vm440_vm7, %v5159_v54  ;;  %4318 = vmatprep.subr.mxu1 %v3937_v63 }
 0xad9   :  { %4338 = vmatmul.mubr.msk.f32.vlgmr.msra.gmra.mxu0 %vm440_vm7, %v5159_v54  ;;  %4319 = vmatpush3.msra.mxu1 %v3937_v63 }
 0xada   :  { %4326 = vmatprep.mubr.msk.f32.mxu1 %vm440_vm7, %v5157_v53  ;;  %4320 = vmatprep.subr.mxu1 %v3936_v0 }
 0xadb   :  { %4321 = vmatpush3.msra.mxu1 %v3936_v0  ;;  %4351 = vmatprep.subr.mxu0 %v4629_v18 }
 0xadc   :  { %4322 = vmatprep.subr.mxu1 %v3935_v1  ;;  %4353 = vmatprep.mubr.msk.f32.mxu0 %vm4630_vm8, %v4629_v18 }
 0xadd   :  { %4323 = vmatpush3.msra.mxu1 %v3935_v1 }
 0xade   :  { %4324 = vmatprep.subr.mxu1 %v3934_v4 }
 0xadf   :  { %4325 = vmatpush3.msra.mxu1 %v3934_v4 }
 0xae0   :  { %4327 = vmatmul.mubr.msk.f32.vlgmr.msra.gmra.mxu1 %vm440_vm7, %v5159_v54  ;;  %4340 = vmatprep.subr.mxu1 %v3953_v5 }
 0xae1   :  { %4341 = vmatpush3.msra.mxu1 %v3953_v5  ;;  %4348 = vmatprep.mubr.msk.f32.mxu1 %vm440_vm7, %v5157_v53 }
 0xae2   :  { %4342 = vmatprep.subr.mxu1 %v3952_v6 }
 0xae3   :  { %4343 = vmatpush3.msra.mxu1 %v3952_v6 }
 0xae4   :  { %4344 = vmatprep.subr.mxu1 %v3951_v7 }
 0xae5   :  { %4345 = vmatpush3.msra.mxu1 %v3951_v7 }
 0xae6   :  { %4346 = vmatprep.subr.mxu1 %v3950_v8 }
 0xae7   :  { %4347 = vmatpush3.msra.mxu1 %v3950_v8 }
 0xae8   :  { %4349 = vmatmul.mubr.msk.f32.vlgmr.msra.gmra.mxu1 %vm440_vm7, %v5159_v54  ;;  %4356 = vmatprep.subr.mxu1 %v4629_v18 }
 0xae9   :  { %4358 = vmatprep.mubr.msk.f32.mxu1 %vm4630_vm8, %v4629_v18 }
 0xb8f   :  { %v4295_v9 = vpop.f32.mrf.mxu1  ;;  %v4317_v10 = vpop.f32.mrf.mxu0 }
 0xb90   :  { %v2336_v29 = vadd.f32 %v4317_v10, %v3931_v11  ;;  %v2160_v30 = vadd.f32 %v4295_v9, %v3915_v15 }
 0xb91   :  { %v2330_v12 = vpop.f32.mrf.mxu0  ;;  %v2154_v13 = vpop.f32.mrf.mxu1 }
 0xb92   :  { %v2331_v14 = vadd.f32 %v3931_v11, %v2330_v12  ;;  %v2155_v16 = vadd.f32 %v3915_v15, %v2154_v13  ;;  %v3955_v13 = vld [vmem:[%s5354_s24 + $0x5] ss:$0 sm:$0xff] }
 0xb94   :  { %4352 = vmatpush3.xpose.msk.msra.mxu0 %vm1024_vm9, %v2331_v14 }
 0xb95   :  { %4361 = vmatprep.subr.mxu0 %v4629_v18 }
 0xb97   :  { %4354 = vmatmul.mubr.msk.f32.vlgmr.msra.gmra.mxu0 %vm1024_vm9, %v2155_v16 }
 0xb98   :  { %4363 = vmatprep.mubr.msk.f32.mxu0 %vm4630_vm8, %v4629_v18  ;;  %v4306_v19 = vpop.f32.mrf.mxu1 }
 0xb99   :  { %v4339_v3 = vpop.f32.mrf.mxu0  ;;  %v2248_v32 = vadd.f32 %v4306_v19, %v3923_v27 }
 0xb9a   :  { %v5213_v59 = vadd.f32 %v4339_v3, %v3947_v17  ;;  %v2242_v22 = vpop.f32.mrf.mxu1 }
 0xb9b   :  { %v2506_v20 = vpop.f32.mrf.mxu0  ;;  %v2243_v28 = vadd.f32 %v3923_v27, %v2242_v22  ;;  %v3256_v27 = vld [vmem:[%s5355_s30 + $0x18] sm:$0xff] }
 0xb9c   :  { %v2507_v21 = vadd.f32 %v3947_v17, %v2506_v20 }
 0xb9e   :  { %4357 = vmatpush3.msra.mxu1 %v2507_v21 }
 0xb9f   :  { %4366 = vmatprep.subr.mxu1 %v4629_v18 }
 0xba0   :  { %v4328_v23 = vpop.f32.mrf.mxu1 }
 0xba1   :  { %v2424_v31 = vadd.f32 %v4328_v23, %v3939_v24 }
 0xba2   :  { %v2418_v25 = vpop.f32.mrf.mxu1 }
 0xba3   :  { %v2419_v26 = vadd.f32 %v3939_v24, %v2418_v25 }
 0xba5   :  { %4362 = vmatpush3.xpose.msk.msra.mxu0 %vm1024_vm9, %v2419_v26 }
 0xba6   :  { %4371 = vmatprep.subr.mxu0 %v4629_v18 }
 0xba8   :  { %4364 = vmatmul.mubr.msk.f32.vlgmr.msra.gmra.mxu0 %vm1024_vm9, %v2243_v28  ;;  %v4350_v10 = vpop.f32.mrf.mxu1  ;;  %v3255_v28 = vld [vmem:[%s5355_s30 + $0x10] sm:$0xff] }
 0xba9   :  { %4372 = vmatpush3.xpose.msk.msra.mxu0 %vm1024_vm9, %v2336_v29  ;;  %4373 = vmatprep.mubr.msk.f32.mxu0 %vm4630_vm8, %v4629_v18  ;;  %v2600_v23 = vadd.f32 %v4350_v10, %v3955_v13  ;;  %v3254_v29 = vld [vmem:[%s5355_s30 + $0x8] sm:$0xff] }
 0xbaa   :  { %4381 = vmatprep.subr.mxu0 %v4629_v18  ;;  %v2594_v11 = vpop.f32.mrf.mxu1 }
 0xbab   :  { %v2595_v15 = vadd.f32 %v3955_v13, %v2594_v11 }
 0xbac   :  { %4374 = vmatmul.mubr.msk.f32.vlgmr.msra.gmra.mxu0 %vm1024_vm9, %v2160_v30  ;;  %v3253_v30 = vld [vmem:[%s5355_s30] sm:$0xff] }
 0xbad   :  { %4382 = vmatpush3.xpose.msk.msra.mxu0 %vm1024_vm9, %v2424_v31  ;;  %4383 = vmatprep.mubr.msk.f32.mxu0 %vm4630_vm8, %v4629_v18 }
 0xbae   :  { %4391 = vmatprep.subr.mxu0 %v3256_v27 }
 0xbb0   :  { %4384 = vmatmul.mubr.msk.f32.vlgmr.msra.gmra.mxu0 %vm1024_vm9, %v2248_v32 }
 0xbb1   :  { %4392 = vmatpush3.msra.mxu0 %v3256_v27 }
 0xbb2   :  { %4393 = vmatprep.subr.mxu0 %v3255_v28 }
 0xbb3   :  { %4394 = vmatpush3.msra.mxu0 %v3255_v28 }
 0xbb4   :  { %4395 = vmatprep.subr.mxu0 %v3254_v29 }
 0xbb5   :  { %4396 = vmatpush3.msra.mxu0 %v3254_v29 }
 0xbb6   :  { %4397 = vmatprep.subr.mxu0 %v3253_v30 }
 0xbb7   :  { %4398 = vmatpush3.msra.mxu0 %v3253_v30 }
 0xc57   :  { %v2675_v33 = vpop.f32.mrf.mxu0 }
 0xc58   :  { %v2676_v34 = vadd.f32 %v2675_v33, %v5066_v51 }
 0xc59   :  { %v4355_v35 = vpop.f32.mrf.mxu0 }
 0xc5a   :  { %v2679_v36 = vsel %vm1101_vm10, %v2676_v34, -inf }
 0xc5b   :  { %2680 = vmax.xlane.f32.xlu0 %v2679_v36 }
 0xc68   :  { %v2835_v2 = vpop.f32.mrf.mxu0 }
 0xc69   :  { %v2836_v37 = vadd.f32 %v2835_v2, %v5066_v51 }
 0xc6a   :  { %v4365_v38 = vpop.f32.mrf.mxu0 }
 0xc6b   :  { %v2839_v40 = vsel %vm1101_vm10, %v2836_v37, -inf }
 0xc6c   :  { %2840 = vmax.xlane.f32.xlu1 %v2839_v40  ;;  %v3000_v41 = vpop.f32.mrf.mxu0 }
 0xc6d   :  { %v3001_v42 = vadd.f32 %v3000_v41, %v5072_v58  ;;  %v3970_v41 = vld [vmem:[%s5356_s12] ss:$0 sm:$0xff] }
 0xc6e   :  { %v4375_v43 = vpop.f32.mrf.mxu0 }
 0xc6f   :  { %v3004_v44 = vsel %vm1101_vm10, %v3001_v42, -inf }
 0xc70   :  { %3005 = vmax.xlane.f32.xlu0 %v3004_v44  ;;  %v3160_v45 = vpop.f32.mrf.mxu0 }
 0xc71   :  { %v3161_v39 = vadd.f32 %v3160_v45, %v5072_v58 }
 0xc72   :  { %v4385_v46 = vpop.f32.mrf.mxu0 }
 0xc73   :  { %v3164_v47 = vsel %vm1101_vm10, %v3161_v39, -inf }
 0xc74   :  { %3165 = vmax.xlane.f32.xlu1 %v3164_v47 }
 0xce4   :  { %v2681_v48 = vpop.xlane.xlu0 %2680 }
 0xce5   :  { %v2682_v51 = vsub.f32 %v2676_v34, %v2681_v48 }
 0xce7   :  { %v2683_v49 = vmul.f32 1.442695, %v2682_v51 }
 0xce9   :  { %4515 = vpow2.f32 %v2683_v49 }
 0xcf5   :  { %v2841_v50 = vpop.xlane.xlu1 %2840 }
 0xcf6   :  { %v4516_v52 = vpop.eup %4515  ;;  %v2842_v55 = vsub.f32 %v2836_v37, %v2841_v50 }
 0xcf7   :  { %v2685_v56 = vsel %vm1101_vm10, %v4516_v52, 0.0 }
 0xcf8   :  { %v2843_v57 = vmul.f32 1.442695, %v2842_v55  ;;  %2686 = vadd.xlane.f32.xlu0 %v2685_v56 }
 0xcf9   :  { %v3006_v60 = vpop.xlane.xlu0 %3005 }
 0xcfa   :  { %4517 = vpow2.f32 %v2843_v57  ;;  %v3007_v61 = vsub.f32 %v3001_v42, %v3006_v60 }
 0xcfc   :  { %v3008_v62 = vmul.f32 1.442695, %v3007_v61  ;;  %v3394_v61 = vld [vmem:[%s5357_s26 + $0x18] sm:$0xff] }
 0xcfd   :  { %v3166_v58 = vpop.xlane.xlu1 %3165 }
 0xcfe   :  { %4519 = vpow2.f32 %v3008_v62  ;;  %v3167_v63 = vsub.f32 %v3161_v39, %v3166_v58  ;;  %v3393_v62 = vld [vmem:[%s5357_s26 + $0x10] sm:$0xff]  ;;  %v3392_v58 = vld [vmem:[%s5357_s26 + $0x8] sm:$0xff] }
 0xd00   :  { %v3168_v0 = vmul.f32 1.442695, %v3167_v63  ;;  %v3391_v63 = vld [vmem:[%s5357_s26] sm:$0xff] }
 0xd02   :  { %4521 = vpow2.f32 %v3168_v0 }
 0xd07   :  { %v4518_v1 = vpop.eup %4517 }
 0xd08   :  { %v2845_v4 = vsel %vm1101_vm10, %v4518_v1, 0.0 }
 0xd09   :  { %2846 = vadd.xlane.f32.xlu1 %v2845_v4 }
 0xd0b   :  { %v4520_v5 = vpop.eup %4519 }
 0xd0c   :  { %v3010_v6 = vsel %vm1101_vm10, %v4520_v5, 0.0 }
 0xd0d   :  { %3011 = vadd.xlane.f32.xlu0 %v3010_v6 }
 0xd0f   :  { %v4522_v7 = vpop.eup %4521 }
 0xd10   :  { %v3170_v8 = vsel %vm1101_vm10, %v4522_v7, 0.0 }
 0xd11   :  { %3171 = vadd.xlane.f32.xlu1 %v3170_v8 }
 0xd81   :  { %v2687_v9 = vpop.xlane.xlu0 %2686 }
 0xd82   :  { %4523 = vrcp.f32 %v2687_v9  ;;  %v3973_v9 = vld [vmem:[%s5358_s6] ss:$0 sm:$0xff] }
 0xd8f   :  { %v4524_v12 = vpop.eup %4523 }
 0xd90   :  { %v2689_v14 = vmul.f32 %v4524_v12, %v4516_v52 }
 0xd92   :  { %v2847_v16 = vpop.xlane.xlu1 %2846  ;;  %4359 = vmatmul.mubr.msk.f32.vlgmr.msra.gmra.mxu1 %vm1101_vm10, %v2689_v14  ;;  %v3974_v14 = vld [vmem:[%s5359_s20] ss:$0 sm:$0xff] }
 0xd93   :  { %4525 = vrcp.f32 %v2847_v16  ;;  %4367 = vmatpush3.msra.mxu1 %v2595_v15  ;;  %4368 = vmatprep.mubr.msk.f32.mxu1 %vm4630_vm8, %v4629_v18 }
 0xd94   :  { %4376 = vmatprep.subr.mxu1 %v4629_v18 }
 0xd96   :  { %v3012_v17 = vpop.xlane.xlu0 %3011 }
 0xd97   :  { %4527 = vrcp.f32 %v3012_v17 }
 0xd9a   :  { %v3172_v3 = vpop.xlane.xlu1 %3171 }
 0xd9b   :  { %4529 = vrcp.f32 %v3172_v3  ;;  %v3508_v3 = vld [vmem:[%s5360_s5 + $0x38] sm:$0xff] }
 0xd9c   :  { %4413 = vmatprep.subr.mxu0 %v3508_v3 }
 0xda0   :  { %v4526_v19 = vpop.eup %4525 }
 0xda1   :  { %v2849_v20 = vmul.f32 %v4526_v19, %v4518_v1  ;;  %v3507_v19 = vld [vmem:[%s5360_s5 + $0x30] sm:$0xff] }
 0xda3   :  { %4369 = vmatmul.mubr.msk.f32.vlgmr.msra.gmra.mxu1 %vm1101_vm10, %v2849_v20  ;;  %v3506_v20 = vld [vmem:[%s5360_s5 + $0x28] sm:$0xff] }
 0xda4   :  { %v4528_v21 = vpop.eup %4527  ;;  %4377 = vmatpush3.msra.mxu1 %v5213_v59  ;;  %4378 = vmatprep.mubr.msk.f32.mxu1 %vm4630_vm8, %v4629_v18 }
 0xda5   :  { %4386 = vmatprep.subr.mxu1 %v4629_v18  ;;  %v3014_v22 = vmul.f32 %v4528_v21, %v4520_v5  ;;  %v3505_v21 = vld [vmem:[%s5360_s5 + $0x20] sm:$0xff] }
 0xda7   :  { %4379 = vmatmul.mubr.msk.f32.vlgmr.msra.gmra.mxu1 %vm1101_vm10, %v3014_v22  ;;  %v3504_v22 = vld [vmem:[%s5360_s5 + $0x18] sm:$0xff] }
 0xda8   :  { %v4530_v24 = vpop.eup %4529  ;;  %4387 = vmatpush3.msra.mxu1 %v2600_v23  ;;  %4388 = vmatprep.mubr.msk.f32.mxu1 %vm4630_vm8, %v4629_v18  ;;  %v3503_v23 = vld [vmem:[%s5360_s5 + $0x10] sm:$0xff] }
 0xda9   :  { %v3174_v25 = vmul.f32 %v4530_v24, %v4522_v7  ;;  %4402 = vmatprep.subr.mxu1 %v3394_v61  ;;  %v3502_v24 = vld [vmem:[%s5360_s5 + $0x8] sm:$0xff] }
 0xdab   :  { %4389 = vmatmul.mubr.msk.f32.vlgmr.msra.gmra.mxu1 %vm1101_vm10, %v3174_v25  ;;  %v3501_v25 = vld [vmem:[%s5360_s5] sm:$0xff] }
 0xdac   :  { %4403 = vmatpush3.msra.mxu1 %v3394_v61 }
 0xdad   :  { %4404 = vmatprep.subr.mxu1 %v3393_v62 }
 0xdae   :  { %4405 = vmatpush3.msra.mxu1 %v3393_v62 }
 0xdaf   :  { %4406 = vmatprep.subr.mxu1 %v3392_v58 }
 0xdb0   :  { %4407 = vmatpush3.msra.mxu1 %v3392_v58 }
 0xdb1   :  { %4408 = vmatprep.subr.mxu1 %v3391_v63 }
 0xdb2   :  { %4409 = vmatpush3.msra.mxu1 %v3391_v63 }
 0xdb3   :  { %4432 = vmatprep.subr.mxu1 %v4629_v18 }
 0xe52   :  { %v2759_v59 = vpop.f32.mrf.mxu1 }
 0xe54   :  { %v4360_v26 = vpop.f32.mrf.mxu1 }
 0xe63   :  { %v2919_v31 = vpop.f32.mrf.mxu1 }
 0xe64   :  { %2924 = vrot.lane.b32.xlu0 %v2919_v31, %s4631_s13 }
 0xe65   :  { %v4370_v32 = vpop.f32.mrf.mxu1 }
 0xe67   :  { %v3084_v33 = vpop.f32.mrf.mxu1 }
 0xe69   :  { %v4380_v34 = vpop.f32.mrf.mxu1 }
 0xe6b   :  { %v3244_v35 = vpop.f32.mrf.mxu1 }
 0xe6c   :  { %3249 = vrot.lane.b32.xlu1 %v3244_v35, %s4631_s13 }
 0xe6d   :  { %v4390_v36 = vpop.f32.mrf.mxu1 }
 0xed6   :  { %v2925_v2 = vpop.permute.xlu0 %2924 }
 0xed7   :  { %v2927_v37 = vsel %vm1024_vm9, %v2759_v59, %v2925_v2  ;;  %v3975_v59 = vld [vmem:[%s5361_s18] ss:$0 sm:$0xff] }
 0xed8   :  { %4399 = vmatprep.mubr.msk.f32.mxu0 %vm440_vm7, %v2927_v37 }
 0xede   :  { %v3250_v38 = vpop.permute.xlu1 %3249 }
 0xedf   :  { %v3252_v40 = vsel %vm1024_vm9, %v3084_v33, %v3250_v38 }
 0xee0   :  { %4400 = vmatmul.mubr.msk.f32.vlgmr.msra.gmra.mxu0 %vm440_vm7, %v3252_v40 }
 0xee1   :  { %4414 = vmatpush3.msra.mxu0 %v3508_v3 }
 0xee2   :  { %4415 = vmatprep.subr.mxu0 %v3507_v19 }
 0xee3   :  { %4416 = vmatpush3.msra.mxu0 %v3507_v19  ;;  %v3982_v19 = vld [vmem:[%s5365_s23] ss:$0 sm:$0xff] }
 0xee4   :  { %4417 = vmatprep.subr.mxu0 %v3506_v20 }
 0xee5   :  { %4418 = vmatpush3.msra.mxu0 %v3506_v20 }
 0xee6   :  { %4419 = vmatprep.subr.mxu0 %v3505_v21 }
 0xee7   :  { %4420 = vmatpush3.msra.mxu0 %v3505_v21 }
 0xee8   :  { %4421 = vmatprep.subr.mxu0 %v3504_v22 }
 0xee9   :  { %4422 = vmatpush3.msra.mxu0 %v3504_v22 }
 0xeea   :  { %4423 = vmatprep.subr.mxu0 %v3503_v23 }
 0xeeb   :  { %4424 = vmatpush3.msra.mxu0 %v3503_v23 }
 0xeec   :  { %4425 = vmatprep.subr.mxu0 %v3502_v24 }
 0xeed   :  { %4426 = vmatpush3.msra.mxu0 %v3502_v24 }
 0xeee   :  { %4427 = vmatprep.subr.mxu0 %v3501_v25 }
 0xeef   :  { %4428 = vmatpush3.msra.mxu0 %v3501_v25 }
 0xfa0   :  { %v4401_v42 = vpop.f32.mrf.mxu0 }
 0xfa1   :  { %v3342_v43 = vadd.f32 %v4401_v42, %v3970_v41 }
 0xfa2   :  { %v3336_v44 = vpop.f32.mrf.mxu0 }
 0xfa3   :  { %v3337_v45 = vadd.f32 %v3970_v41, %v3336_v44  ;;  %v3346_v39 = vadd.f32 %v3342_v43, %v5159_v54 }
 0xfa5   :  { %v3352_v46 = vsel %vm440_vm7, %v3346_v39, 0.0  ;;  %v3345_v47 = vadd.f32 %v3337_v45, %v5157_v53 }
 0xfa6   :  { %3353 = vadd.xlane.f32.xlu0 %v3352_v46 }
 0xfa7   :  { %v3349_v48 = vsel %vm440_vm7, %v3345_v47, 0.0 }
 0xfa8   :  { %3350 = vadd.xlane.f32.xlu1 %v3349_v48 }
0x102f   :  { %v3354_v51 = vpop.xlane.xlu0 %3353 }
0x1030   :  { %v3356_v49 = vmul.f32 0.03125, %v3354_v51 }
0x1031   :  { %v3351_v50 = vpop.xlane.xlu1 %3350 }
0x1032   :  { %v3358_v52 = vsub.f32 %v3346_v39, %v3356_v49  ;;  %v3355_v55 = vmul.f32 0.03125, %v3351_v50 }
0x1034   :  { %v3357_v56 = vsub.f32 %v3345_v47, %v3355_v55  ;;  %v3360_v57 = vmul.f32 %v3358_v52, %v3358_v52  ;;  %v3978_v47 = vld [vmem:[%s5362_s16] ss:$0 sm:$0xff] }
0x1036   :  { %v3364_v54 = vsel %vm440_vm7, %v3360_v57, 0.0  ;;  %v3359_v60 = vmul.f32 %v3357_v56, %v3357_v56 }
0x1037   :  { %3365 = vadd.xlane.f32.xlu1 %v3364_v54 }
0x1038   :  { %v3361_v53 = vsel %vm440_vm7, %v3359_v60, 0.0 }
0x1039   :  { %3362 = vadd.xlane.f32.xlu0 %v3361_v53 }
0x10c0   :  { %v3366_v0 = vpop.xlane.xlu1 %3365 }
0x10c1   :  { %v3368_v1 = vmul.f32 0.03125, %v3366_v0 }
0x10c2   :  { %v3363_v4 = vpop.xlane.xlu0 %3362 }
0x10c3   :  { %v3370_v5 = vadd.f32 1e-05, %v3368_v1  ;;  %v3367_v6 = vmul.f32 0.03125, %v3363_v4 }
0x10c5   :  { %4531 = vrsqrt.f32 %v3370_v5  ;;  %v3369_v7 = vadd.f32 1e-05, %v3367_v6  ;;  %v3650_v5 = vld [vmem:[%s5363_s9 + $0x18] sm:$0xff]  ;;  %v3649_v6 = vld [vmem:[%s5363_s9 + $0x10] sm:$0xff] }
0x10c7   :  { %4533 = vrsqrt.f32 %v3369_v7  ;;  %v3648_v7 = vld [vmem:[%s5363_s9 + $0x8] sm:$0xff] }
0x10d2   :  { %v4532_v8 = vpop.eup %4531 }
0x10d3   :  { %v3374_v10 = vmul.f32 %v4532_v8, %v3358_v52  ;;  %v3647_v8 = vld [vmem:[%s5363_s9] sm:$0xff] }
0x10d4   :  { %v4534_v11 = vpop.eup %4533 }
0x10d5   :  { %v3373_v12 = vmul.f32 %v4534_v11, %v3357_v56  ;;  %v3382_v13 = vmul.f32 %v3973_v9, %v3374_v10 }
0x10d7   :  { %v3381_v15 = vmul.f32 %v3973_v9, %v3373_v12  ;;  %v3390_v17 = vadd.f32 %v3974_v14, %v3382_v13 }
0x10d9   :  { %v5280_v16 = vadd.f32 %v3974_v14, %v3381_v15 }
0x10db   :  { %4410 = vmatprep.mubr.msk.f32.mxu1 %vm440_vm7, %v5280_v16 }
0x10dc   :  { %4411 = vmatmul.mubr.msk.f32.vlgmr.msra.gmra.mxu1 %vm440_vm7, %v3390_v17 }
0x10dd   :  { %4440 = vmatprep.mubr.msk.f32.mxu1 %vm4630_vm8, %v4629_v18  ;;  %4433 = vmatpush3.msra.mxu1 %v3650_v5 }
0x10de   :  { %4434 = vmatprep.subr.mxu1 %v4629_v18 }
0x10df   :  { %4435 = vmatpush3.msra.mxu1 %v3649_v6 }
0x10e0   :  { %4436 = vmatprep.subr.mxu1 %v4629_v18 }
0x10e1   :  { %4437 = vmatpush3.msra.mxu1 %v3648_v7 }
0x10e2   :  { %4438 = vmatprep.subr.mxu1 %v4629_v18 }
0x10e3   :  { %4439 = vmatpush3.msra.mxu1 %v3647_v8 }
0x119c   :  { %v4412_v26 = vpop.f32.mrf.mxu1 }
0x119d   :  { %v3480_v27 = vadd.f32 %v4412_v26, %v3975_v59 }
0x119e   :  { %v3474_v28 = vpop.f32.mrf.mxu1 }
0x119f   :  { %v3484_v29 = vmul.f32 %v3480_v27, %v3480_v27  ;;  %v3475_v30 = vadd.f32 %v3975_v59, %v3474_v28  ;;  %v3983_v59 = vld [vmem:[%s5366_s27] ss:$0 sm:$0xff] }
0x11a1   :  { %v3486_v31 = vmul.f32 %v3484_v29, %v3480_v27  ;;  %v3483_v32 = vmul.f32 %v3475_v30, %v3475_v30 }
0x11a3   :  { %v3488_v33 = vmul.f32 0.044715, %v3486_v31  ;;  %v3485_v34 = vmul.f32 %v3483_v32, %v3475_v30 }
0x11a5   :  { %v3490_v35 = vadd.f32 %v3488_v33, %v3480_v27  ;;  %v3487_v36 = vmul.f32 0.044715, %v3485_v34 }
0x11a7   :  { %v3492_v2 = vmul.f32 0.7978846, %v3490_v35  ;;  %v3489_v37 = vadd.f32 %v3487_v36, %v3475_v30 }
0x11a9   :  { %4535 = vtanh.f32 %v3492_v2  ;;  %v3491_v38 = vmul.f32 0.7978846, %v3489_v37 }
0x11ab   :  { %4537 = vtanh.f32 %v3491_v38 }
0x11b6   :  { %v4536_v40 = vpop.eup %4535 }
0x11b7   :  { %v3496_v41 = vadd.f32 1.0, %v4536_v40 }
0x11b8   :  { %v4538_v42 = vpop.eup %4537 }
0x11b9   :  { %v3495_v43 = vadd.f32 1.0, %v4538_v42  ;;  %v3498_v44 = vmul.f32 0.5, %v3496_v41 }
0x11bb   :  { %v3497_v45 = vmul.f32 0.5, %v3495_v43  ;;  %v3500_v46 = vmul.f32 %v3498_v44, %v3480_v27 }
0x11bd   :  { %v3499_v39 = vmul.f32 %v3497_v45, %v3475_v30 }
0x11bf   :  { %4429 = vmatprep.mubr.msk.f32.mxu0 %vm1943_vm11, %v3499_v39 }
0x11c0   :  { %4430 = vmatmul.mubr.msk.f32.vlgmr.msra.gmra.mxu0 %vm1943_vm11, %v3500_v46 }
0x1280   :  { %v4431_v48 = vpop.f32.mrf.mxu0 }
0x1281   :  { %v3594_v51 = vadd.f32 %v4431_v48, %v3978_v47 }
0x1282   :  { %v3588_v49 = vpop.f32.mrf.mxu0 }
0x1283   :  { %v3589_v50 = vadd.f32 %v3978_v47, %v3588_v49  ;;  %v3598_v52 = vadd.f32 %v3594_v51, %v3390_v17 }
0x1285   :  { %v3604_v55 = vsel %vm440_vm7, %v3598_v52, 0.0  ;;  %v3597_v56 = vadd.f32 %v3589_v50, %v5280_v16  ;;  %v3981_v16 = vld [vmem:[%s5364_s10] ss:$0 sm:$0xff] }
0x1286   :  { %3605 = vadd.xlane.f32.xlu0 %v3604_v55 }
0x1287   :  { %v3601_v57 = vsel %vm440_vm7, %v3597_v56, 0.0 }
0x1288   :  { %3602 = vadd.xlane.f32.xlu1 %v3601_v57 }
0x130f   :  { %v3606_v54 = vpop.xlane.xlu0 %3605 }
0x1310   :  { %v3608_v60 = vmul.f32 0.03125, %v3606_v54 }
0x1311   :  { %v3603_v53 = vpop.xlane.xlu1 %3602 }
0x1312   :  { %v3610_v61 = vsub.f32 %v3598_v52, %v3608_v60  ;;  %v3607_v62 = vmul.f32 0.03125, %v3603_v53 }
0x1314   :  { %v3609_v58 = vsub.f32 %v3597_v56, %v3607_v62  ;;  %v3612_v63 = vmul.f32 %v3610_v61, %v3610_v61 }
0x1316   :  { %v3616_v0 = vsel %vm440_vm7, %v3612_v63, 0.0  ;;  %v3611_v1 = vmul.f32 %v3609_v58, %v3609_v58 }
0x1317   :  { %3617 = vadd.xlane.f32.xlu0 %v3616_v0 }
0x1318   :  { %v3613_v4 = vsel %vm440_vm7, %v3611_v1, 0.0 }
0x1319   :  { %3614 = vadd.xlane.f32.xlu1 %v3613_v4 }
0x13a0   :  { %v3618_v9 = vpop.xlane.xlu0 %3617 }
0x13a1   :  { %v3620_v10 = vmul.f32 0.03125, %v3618_v9 }
0x13a2   :  { %v3615_v11 = vpop.xlane.xlu1 %3614 }
0x13a3   :  { %v3622_v12 = vadd.f32 1e-05, %v3620_v10  ;;  %v3619_v13 = vmul.f32 0.03125, %v3615_v11 }
0x13a5   :  { %4539 = vrsqrt.f32 %v3622_v12  ;;  %v3621_v14 = vadd.f32 1e-05, %v3619_v13 }
0x13a7   :  { %4541 = vrsqrt.f32 %v3621_v14 }
0x13b2   :  { %v4540_v15 = vpop.eup %4539 }
0x13b3   :  { %v3626_v17 = vmul.f32 %v4540_v15, %v3610_v61 }
0x13b4   :  { %v4542_v3 = vpop.eup %4541 }
0x13b5   :  { %v3625_v20 = vmul.f32 %v4542_v3, %v3609_v58  ;;  %v3634_v21 = vmul.f32 %v3981_v16, %v3626_v17 }
0x13b7   :  { %v3633_v22 = vmul.f32 %v3981_v16, %v3625_v20  ;;  %v3642_v23 = vadd.f32 %v3982_v19, %v3634_v21 }
0x13b9   :  { %v3641_v18 = vadd.f32 %v3982_v19, %v3633_v22  ;;  %v3644_v24 = vrot.slane %v3642_v23, 7 }
0x13bb   :  { %v3646_v25 = vsel %vm417_vm0, %v3641_v18, %v3644_v24 }
0x13bc   :  { %4441 = vmatmul.mubr.msk.f32.vlgmr.msra.gmra.mxu1 %vm440_vm7, %v3646_v25 }
0x147c   :  { %v3727_v26 = vpop.f32.mrf.mxu1 }
0x147d   :  { %v3728_v27 = vadd.f32 %v3983_v59, %v3727_v26 }
0x147e   :  { %v4442_v28 = vpop.f32.mrf.mxu1 }
0x147f   :  { %3731 = vst [vmem:[#allocation7] sm:$0x3] %v3728_v27 }
0x1480   :  { %4578 = shalt.err (!%p4575_p2)
}
0x1481   :  { %s5367_s22 = sld [smem:[#allocation31_spill]] }
0x1487   :  { %3741 = dma.vmem_to_hbm [thread:$0]  %s3739_s7, 32, %s5367_s22, [#allocation3]  }
0x1488   :  { %4591 = dma.done.wait [#allocation3], 32  }
0x1489   :  { %4592 = vsyncadd [#allocation3], 4294967264 }
0x148a   :  { %3745 = vsyncpa [#allocation3], 1 }
0x148b   :  { %3746 = vsyncpa [#allocation4], 1 }
0x148c   :  { %3747 = vsyncpa [#allocation6], 1 }

</bundles_post_ra>
